<compile_context>
chip_gen: v7x
topology: tpu7x:2x2x1
jax: 0.10.0
libtpu: 0.0.40
codegen_flags: <defaults>
</compile_context>

<pallas_src>
import functools

import jax
import jax.numpy as jnp
from jax import lax
from jax.experimental import pallas as pl
from jax.experimental.pallas import tpu as pltpu


def _convnext_kernel(x_ref, wdw_ref, bdw_ref, gamma_ref, beta_ref,
                     w1_ref, b1_ref, wproj_ref, wsc_ref, bcat_ref,
                     o_ref, xp_ref, acc_ref, gn_ref,
                     *, H, W, K, C, R, S, wpad):
    j = pl.program_id(1)                 # chunk index (row group of the 1x1 chain)
    pad = K // 2
    HW = H * W
    PW = W + 2 * wpad
    TF = R * W                           # flattened chunk length (output lanes)
    SW = S * W
    n_strips = H // S
    a0 = wpad - pad                      # first padded column read by the conv

    # ------------------- per-image prep (chunk 0 only) -----------------------
    @pl.when(j == 0)
    def _prep():
        # Zero only the halo; the interior is fully rewritten below.  Done per
        # image (scratch is per-core; the batch axis may be megacore-split).
        if pad > 0:
            xp_ref[0:pad, :, :] = jnp.zeros((pad, PW, C), jnp.float32)
            xp_ref[pad + H:pad + H + pad, :, :] = jnp.zeros((pad, PW, C), jnp.float32)
        if wpad > 0:
            xp_ref[pad:pad + H, 0:wpad, :] = jnp.zeros((H, wpad, C), jnp.float32)
            xp_ref[pad:pad + H, wpad + W:PW, :] = jnp.zeros((H, wpad, C), jnp.float32)
        xp_ref[pad:pad + H, wpad:wpad + W, :] = x_ref[0]

        # Hoisted loop invariants: depthwise tap rows and bias.
        wdw = wdw_ref[...]                                   # (K*K, C)
        wtaps = [wdw[t] for t in range(K * K)]               # K*K lane vectors
        bdw = bdw_ref[...]                                   # (1, C)

        # Depthwise KxK conv ('same', cross-correlation like PyTorch) over row
        # strips; the strip accumulator stays a value through all taps -> one
        # store per strip.  dy offsets are free leading-dim slices; the K dx
        # offsets are ref slices (sublane realign) per strip.
        def strip_body(s, running_sum):
            h0 = s * S
            acc = jnp.zeros((S, W, C), jnp.float32)
            for dx in range(K):
                col = xp_ref[pl.ds(h0, S + K - 1), a0 + dx:a0 + dx + W, :]
                for dy in range(K):
                    acc = acc + col[dy:dy + S] * wtaps[dy * K + dx]
            st = acc.reshape(SW, C) + bdw      # free relayout when W % 8 == 0
            off = s * SW
            if SW % 8 == 0:
                off = pl.multiple_of(off, 8)
            acc_ref[pl.ds(off, SW), :] = st
            return running_sum + jnp.sum(st)

        total = lax.fori_loop(0, n_strips, strip_body, jnp.zeros((), jnp.float32))
        n_elems = HW * C
        mean = total / n_elems

        # Second (centered) pass for the variance: robust, var >= 0.
        def var_body(s, running):
            off = s * SW
            if SW % 8 == 0:
                off = pl.multiple_of(off, 8)
            d = acc_ref[pl.ds(off, SW), :] - mean
            return running + jnp.sum(d * d)

        var = lax.fori_loop(0, n_strips, var_body, jnp.zeros((), jnp.float32)) / n_elems
        rstd = lax.rsqrt(jnp.maximum(var, 0.0) + 1e-5)
        scale = gamma_ref[...] * rstd                        # (1, C)
        gn_ref[0:1, :] = scale
        gn_ref[1:2, :] = beta_ref[...] - mean * scale        # shift

    # ------------------- per-chunk 1x1-conv chain ----------------------------
    scale = gn_ref[0:1, :]
    shift = gn_ref[1:2, :]
    w1 = w1_ref[...]                     # (C, dim)     bf16
    b1 = b1_ref[...]                     # (1, dim)     f32
    wproj = wproj_ref[...]               # (C_out, dim) bf16
    wsc = wsc_ref[...]                   # (C_out, C)   f32 (skip path stays f32)
    bcat = bcat_ref[...]                 # (C_out, 1)   f32

    r0 = j * R
    c0 = j * TF
    if TF % 128 == 0:
        c0 = pl.multiple_of(c0, 128)

    xn = (acc_ref[pl.ds(c0, TF), :] * scale + shift).astype(jnp.bfloat16)   # (TF, C)
    h = jnp.dot(xn, w1, preferred_element_type=jnp.float32) + b1            # (TF, dim)
    g = 0.5 * h * (1.0 + lax.erf(h * 0.7071067811865476))                   # exact GELU
    out = lax.dot_general(wproj, g.astype(jnp.bfloat16),
                          (((1,), (1,)), ((), ())),
                          preferred_element_type=jnp.float32)               # (C_out, TF)
    x0 = xp_ref[pl.ds(pad + r0, R), wpad:wpad + W, :].reshape(TF, C)        # shortcut (f32)
    out = out + lax.dot_general(wsc, x0, (((1,), (1,)), ((), ())),
                                preferred_element_type=jnp.float32)
    o_ref[0, :, :] = out + bcat


def _pick_strip_rows(H):
    """Largest divisor of H that is <= 8 (depthwise row-strip height)."""
    for s in range(min(8, H), 0, -1):
        if H % s == 0:
            return s
    return 1


def _pick_chunk_rows(H, W, dim):
    """Rows per matmul-chain chunk.  The flattened chunk must be a multiple of
    128 (lane-dense output blocks) unless it is the whole frame."""
    HW = H * W
    budget = 8 << 20                        # ~8 MiB of per-chunk f32 temporaries
    if 3 * HW * dim * 4 <= budget:
        return H                            # whole frame in one chunk
    best = H
    for r in range(H - 1, 0, -1):
        if H % r or (r * W) % 128:
            continue
        best = r                            # tightest layout-legal chunk so far
        if 3 * r * W * dim * 4 <= budget:
            return r                        # largest layout-legal chunk within budget
    return best                             # fallback: whole frame if no legal divisor


def _vmem_limit_bytes(est):
    """Per-generation scoped-VMEM limit: ~80% of physical capacity
    (v7x 64 MiB -> ~51 MiB; v5e/v6e 128 MiB -> ~102 MiB), at least 32 MiB."""
    try:
        cap = getattr(pltpu.get_tpu_info(), "vmem_capacity_bytes", None) or (64 << 20)
    except Exception:
        cap = 64 << 20
    budget = int(cap * 0.80)
    return int(max(min(est, budget), min(32 << 20, budget)))


def convnext_block(x_nchw, params, *, kernel_size=7):
    """x_nchw: (B, C, H, W) float32. Returns (B, C_out, H, W) float32."""
    B, C, H, W = x_nchw.shape
    K = kernel_size
    pad = K // 2
    dim = params["w1"].shape[1]
    C_out = params["w2"].shape[1]
    HW = H * W
    wpad = ((pad + 7) // 8) * 8 if pad > 0 else 0   # sublane-aligned interior offset
    Hp = H + 2 * pad
    PW = W + 2 * wpad
    S = _pick_strip_rows(H)
    R = _pick_chunk_rows(H, W, dim)
    n_chunks = H // R
    TF = R * W
    assert TF == HW or TF % 128 == 0

    # NCHW -> NHWC for the depthwise stage (channels on lanes).  A fully
    # channel-major kernel (ingesting NCHW directly) would drop this HBM round
    # trip; kept simple here.
    x_nhwc = jnp.transpose(x_nchw, (0, 2, 3, 1)).astype(jnp.float32)

    # One-time weight prep: expand/project in bf16 (f32 MXU accumulation),
    # shortcut kept f32; project bias and shortcut bias fused.
    w1_bf = params["w1"].astype(jnp.bfloat16)                        # (C, dim)
    wproj = jnp.transpose(params["w2"]).astype(jnp.bfloat16)         # (C_out, dim)
    wsc = jnp.transpose(params["ws"]).astype(jnp.float32)            # (C_out, C)
    b1 = params["b1"].reshape(1, dim).astype(jnp.float32)
    bcat = (params["b2"] + params["bs"]).reshape(C_out, 1).astype(jnp.float32)

    kernel = functools.partial(_convnext_kernel, H=H, W=W, K=K, C=C,
                               R=R, S=S, wpad=wpad)

    def full(shape):
        n = len(shape)
        return pl.BlockSpec(shape, lambda b, j: (0,) * n)

    # Scoped-VMEM estimate: double-buffered I/O blocks + scratch + chunk temporaries.
    est = 4 * (2 * H * W * C + 2 * C_out * TF + Hp * PW * C + HW * C
               + 3 * TF * dim + 2 * TF * C + 2 * TF * C_out)
    est += 4 * (K * K * C + 2 * C * dim + 2 * C_out * dim + C_out * C)
    est += 2 << 20

    out = pl.pallas_call(
        kernel,
        out_shape=jax.ShapeDtypeStruct((B, C_out, HW), jnp.float32),
        grid=(B, n_chunks),
        in_specs=[
            pl.BlockSpec((1, H, W, C), lambda b, j: (b, 0, 0, 0)),  # input image
            full((K * K, C)),       # depthwise weights, row = tap dy*K + dx
            full((1, C)),           # depthwise bias
            full((1, C)),           # groupnorm gamma
            full((1, C)),           # groupnorm beta
            full((C, dim)),         # expand 1x1 weight (bf16)
            full((1, dim)),         # expand bias
            full((C_out, dim)),     # project 1x1 weight, transposed (bf16)
            full((C_out, C)),       # shortcut 1x1 weight, transposed (f32)
            full((C_out, 1)),       # fused project + shortcut bias
        ],
        out_specs=pl.BlockSpec((1, C_out, TF), lambda b, j: (b, 0, j)),
        scratch_shapes=[
            pltpu.VMEM((Hp, PW, C), jnp.float32),   # zero-padded input (persists across chunks)
            pltpu.VMEM((HW, C), jnp.float32),       # depthwise + bias output (GN input)
            pltpu.VMEM((2, C), jnp.float32),        # GN scale / shift
        ],
        compiler_params=pltpu.CompilerParams(
            dimension_semantics=("parallel", "arbitrary"),
            vmem_limit_bytes=_vmem_limit_bytes(est),
        ),
    )(x_nhwc, params["wdw"], params["bdw"], params["gamma"], params["beta"],
      w1_bf, b1, wproj, wsc, bcat)

    # Kernel emits channel-major (C_out, H*W): NCHW output is a free reshape.
    return out.reshape(B, C_out, H, W)


def _reference(x_nchw, params, *, kernel_size=7):
    """Pure-JAX f32 reference with identical semantics (two-pass GN, unfused)."""
    B, C, H, W = x_nchw.shape
    K = kernel_size
    pad = K // 2
    x = jnp.transpose(x_nchw, (0, 2, 3, 1)).astype(jnp.float32)   # NHWC
    xp = jnp.pad(x, ((0, 0), (pad, pad), (pad, pad), (0, 0)))
    acc = jnp.zeros_like(x)
    for tap in range(K * K):
        dy, dx = tap // K, tap % K
        acc = acc + xp[:, dy:dy + H, dx:dx + W, :] * params["wdw"][tap, :]
    acc = acc + params["bdw"][0, :]
    mean = jnp.mean(acc, axis=(1, 2, 3), keepdims=True)
    var = jnp.mean((acc - mean) ** 2, axis=(1, 2, 3), keepdims=True)
    xn = (acc - mean) * jax.lax.rsqrt(var + 1e-5)
    xn = xn * params["gamma"][0, :] + params["beta"][0, :]
    h = jnp.einsum("bhwc,cd->bhwd", xn, params["w1"]) + params["b1"][0, :]
    h = 0.5 * h * (1.0 + jax.lax.erf(h * 0.7071067811865476))
    h = jnp.einsum("bhwd,do->bhwo", h, params["w2"]) + params["b2"][0, :]
    sc = jnp.einsum("bhwc,co->bhwo", x, params["ws"]) + params["bs"][0, :]
    return jnp.transpose(h + sc, (0, 3, 1, 2))


def make_params(key, C_in, C_out, kernel_size=7, expansion_factor=4):
    dim = C_in * expansion_factor
    K = kernel_size
    ks = jax.random.split(key, 8)
    scale = 0.1
    return {
        # PyTorch depthwise weight (C,1,K,K) stored as (K*K, C): row = tap (dy,dx)
        "wdw": scale * jax.random.normal(ks[0], (K * K, C_in), jnp.float32),
        "bdw": scale * jax.random.normal(ks[1], (1, C_in), jnp.float32),
        "gamma": jnp.ones((1, C_in), jnp.float32) + 0.05 * jax.random.normal(ks[2], (1, C_in)),
        "beta": 0.05 * jax.random.normal(ks[3], (1, C_in), jnp.float32),
        # PyTorch Conv2d 1x1 weight (out,in,1,1) stored transposed as (in,out)
        "w1": scale * jax.random.normal(ks[4], (C_in, dim), jnp.float32),
        "b1": scale * jax.random.normal(ks[5], (1, dim), jnp.float32),
        "w2": scale * jax.random.normal(ks[6], (dim, C_out), jnp.float32),
        "b2": scale * jax.random.normal(ks[7], (1, C_out), jnp.float32),
        "ws": scale * jax.random.normal(jax.random.fold_in(key, 100), (C_in, C_out), jnp.float32),
        "bs": scale * jax.random.normal(jax.random.fold_in(key, 101), (1, C_out), jnp.float32),
    }


if __name__ == "__main__":
    key = jax.random.PRNGKey(0)
    B, C_in, C_out, H, W = 2, 4, 8, 16, 16   # C_in != C_out -> conv shortcut path
    kx, kp = jax.random.split(key)
    x = jax.random.normal(kx, (B, C_in, H, W), jnp.float32)
    params = make_params(kp, C_in, C_out)

    out = convnext_block(x, params)
    out = jax.block_until_ready(out)

    ref = _reference(x, params)
    assert out.shape == (B, C_out, H, W)
    err = float(jnp.max(jnp.abs(out - ref)))
    # Tolerance covers the intentional bf16 MXU operands (f32 accumulation).
    assert jnp.allclose(out, ref, atol=3e-2, rtol=3e-2), err

    print("KERNEL_OK")
</pallas_src>

<mosaic_0001>
module attributes {stable_mosaic.version = 11 : i64} {
  func.func @_convnext_kernel(%arg0: i32, %arg1: i32, %arg2: memref<1x16x16x4xf32, #tpu.memory_space<vmem>>, %arg3: memref<49x4xf32, #tpu.memory_space<vmem>>, %arg4: memref<1x4xf32, #tpu.memory_space<vmem>>, %arg5: memref<1x4xf32, #tpu.memory_space<vmem>>, %arg6: memref<1x4xf32, #tpu.memory_space<vmem>>, %arg7: memref<4x16xbf16, #tpu.memory_space<vmem>>, %arg8: memref<1x16xf32, #tpu.memory_space<vmem>>, %arg9: memref<8x16xbf16, #tpu.memory_space<vmem>>, %arg10: memref<8x4xf32, #tpu.memory_space<vmem>>, %arg11: memref<8x1xf32, #tpu.memory_space<vmem>>, %arg12: memref<1x8x256xf32, #tpu.memory_space<vmem>>, %arg13: memref<22x32x4xf32, #tpu.memory_space<vmem>>, %arg14: memref<256x4xf32, #tpu.memory_space<vmem>>, %arg15: memref<2x4xf32, #tpu.memory_space<vmem>>) attributes {dimension_semantics = [#tpu.dimension_semantics<parallel>, #tpu.dimension_semantics<arbitrary>], iteration_bounds = array<i64: 2, 1>, scalar_prefetch = 0 : i64, scratch_operands = 3 : i64, tpu.core_type = #tpu.core_type<tc>, window_params = [{transform_indices = @transform_0, window_bounds = array<i64: 1, 16, 16, 4>}, {pipeline_mode = #tpu.pipeline_mode<synchronous>, transform_indices = @transform_1, window_bounds = array<i64: 49, 4>}, {pipeline_mode = #tpu.pipeline_mode<synchronous>, transform_indices = @transform_2, window_bounds = array<i64: 1, 4>}, {pipeline_mode = #tpu.pipeline_mode<synchronous>, transform_indices = @transform_3, window_bounds = array<i64: 1, 4>}, {pipeline_mode = #tpu.pipeline_mode<synchronous>, transform_indices = @transform_4, window_bounds = array<i64: 1, 4>}, {pipeline_mode = #tpu.pipeline_mode<synchronous>, transform_indices = @transform_5, window_bounds = array<i64: 4, 16>}, {pipeline_mode = #tpu.pipeline_mode<synchronous>, transform_indices = @transform_6, window_bounds = array<i64: 1, 16>}, {pipeline_mode = #tpu.pipeline_mode<synchronous>, transform_indices = @transform_7, window_bounds = array<i64: 8, 16>}, {pipeline_mode = #tpu.pipeline_mode<synchronous>, transform_indices = @transform_8, window_bounds = array<i64: 8, 4>}, {pipeline_mode = #tpu.pipeline_mode<synchronous>, transform_indices = @transform_9, window_bounds = array<i64: 8, 1>}, {transform_indices = @transform_10, window_bounds = array<i64: 1, 8, 256>}]} {
    %c0_i32 = arith.constant 0 : i32
    %0 = arith.cmpi eq, %arg1, %c0_i32 : i32
    %1 = arith.extui %0 : i1 to i32
    %c0_i32_0 = arith.constant 0 : i32
    %2 = arith.cmpi ne, %1, %c0_i32_0 : i32
    scf.if %2 {
      %cst_23 = arith.constant 0.000000e+00 : f32
      %44 = vector.broadcast %cst_23 : f32 to vector<3x32x4xf32>
      %c0_24 = arith.constant 0 : index
      %c0_25 = arith.constant 0 : index
      %c0_26 = arith.constant 0 : index
      %45 = vector.load %arg13[%c0_24, %c0_25, %c0_26] : memref<22x32x4xf32, #tpu.memory_space<vmem>>, vector<3x32x4xf32>
      tpu.vector_store %arg13[%c0_24, %c0_25, %c0_26], %44 {strides = array<i32>} : memref<22x32x4xf32, #tpu.memory_space<vmem>>, vector<3x32x4xf32>,
      %cst_27 = arith.constant 0.000000e+00 : f32
      %46 = vector.broadcast %cst_27 : f32 to vector<3x32x4xf32>
      %c19 = arith.constant 19 : index
      %c0_28 = arith.constant 0 : index
      %c0_29 = arith.constant 0 : index
      %47 = vector.load %arg13[%c19, %c0_28, %c0_29] : memref<22x32x4xf32, #tpu.memory_space<vmem>>, vector<3x32x4xf32>
      tpu.vector_store %arg13[%c19, %c0_28, %c0_29], %46 {strides = array<i32>} : memref<22x32x4xf32, #tpu.memory_space<vmem>>, vector<3x32x4xf32>,
      %cst_30 = arith.constant 0.000000e+00 : f32
      %48 = vector.broadcast %cst_30 : f32 to vector<16x8x4xf32>
      %c3 = arith.constant 3 : index
      %c0_31 = arith.constant 0 : index
      %c0_32 = arith.constant 0 : index
      %49 = vector.load %arg13[%c3, %c0_31, %c0_32] : memref<22x32x4xf32, #tpu.memory_space<vmem>>, vector<16x8x4xf32>
      tpu.vector_store %arg13[%c3, %c0_31, %c0_32], %48 {strides = array<i32>} : memref<22x32x4xf32, #tpu.memory_space<vmem>>, vector<16x8x4xf32>,
      %cst_33 = arith.constant 0.000000e+00 : f32
      %50 = vector.broadcast %cst_33 : f32 to vector<16x8x4xf32>
      %c3_34 = arith.constant 3 : index
      %c24 = arith.constant 24 : index
      %c0_35 = arith.constant 0 : index
      %51 = vector.load %arg13[%c3_34, %c24, %c0_35] : memref<22x32x4xf32, #tpu.memory_space<vmem>>, vector<16x8x4xf32>
      tpu.vector_store %arg13[%c3_34, %c24, %c0_35], %50 {strides = array<i32>} : memref<22x32x4xf32, #tpu.memory_space<vmem>>, vector<16x8x4xf32>,
      %c0_36 = arith.constant 0 : index
      %c0_37 = arith.constant 0 : index
      %c0_38 = arith.constant 0 : index
      %c0_39 = arith.constant 0 : index
      %52 = vector.load %arg2[%c0_36, %c0_37, %c0_38, %c0_39] : memref<1x16x16x4xf32, #tpu.memory_space<vmem>>, vector<1x16x16x4xf32>
      %53 = vector.shape_cast %52 : vector<1x16x16x4xf32> to vector<16x16x4xf32>
      %c3_40 = arith.constant 3 : index
      %c8_41 = arith.constant 8 : index
      %c0_42 = arith.constant 0 : index
      %54 = vector.load %arg13[%c3_40, %c8_41, %c0_42] : memref<22x32x4xf32, #tpu.memory_space<vmem>>, vector<16x16x4xf32>
      tpu.vector_store %arg13[%c3_40, %c8_41, %c0_42], %53 {strides = array<i32>} : memref<22x32x4xf32, #tpu.memory_space<vmem>>, vector<16x16x4xf32>,
      %c0_43 = arith.constant 0 : index
      %c0_44 = arith.constant 0 : index
      %55 = vector.load %arg3[%c0_43, %c0_44] : memref<49x4xf32, #tpu.memory_space<vmem>>, vector<49x4xf32>
      %56 = vector.extract_strided_slice %55 {offsets = [0, 0], sizes = [1, 4], strides = [1, 1]} : vector<49x4xf32> to vector<1x4xf32>
      %57 = vector.shape_cast %56 : vector<1x4xf32> to vector<4xf32>
      %58 = vector.extract_strided_slice %55 {offsets = [1, 0], sizes = [1, 4], strides = [1, 1]} : vector<49x4xf32> to vector<1x4xf32>
      %59 = vector.shape_cast %58 : vector<1x4xf32> to vector<4xf32>
      %60 = vector.extract_strided_slice %55 {offsets = [2, 0], sizes = [1, 4], strides = [1, 1]} : vector<49x4xf32> to vector<1x4xf32>
      %61 = vector.shape_cast %60 : vector<1x4xf32> to vector<4xf32>
      %62 = vector.extract_strided_slice %55 {offsets = [3, 0], sizes = [1, 4], strides = [1, 1]} : vector<49x4xf32> to vector<1x4xf32>
      %63 = vector.shape_cast %62 : vector<1x4xf32> to vector<4xf32>
      %64 = vector.extract_strided_slice %55 {offsets = [4, 0], sizes = [1, 4], strides = [1, 1]} : vector<49x4xf32> to vector<1x4xf32>
      %65 = vector.shape_cast %64 : vector<1x4xf32> to vector<4xf32>
      %66 = vector.extract_strided_slice %55 {offsets = [5, 0], sizes = [1, 4], strides = [1, 1]} : vector<49x4xf32> to vector<1x4xf32>
      %67 = vector.shape_cast %66 : vector<1x4xf32> to vector<4xf32>
      %68 = vector.extract_strided_slice %55 {offsets = [6, 0], sizes = [1, 4], strides = [1, 1]} : vector<49x4xf32> to vector<1x4xf32>
      %69 = vector.shape_cast %68 : vector<1x4xf32> to vector<4xf32>
      %70 = vector.extract_strided_slice %55 {offsets = [7, 0], sizes = [1, 4], strides = [1, 1]} : vector<49x4xf32> to vector<1x4xf32>
      %71 = vector.shape_cast %70 : vector<1x4xf32> to vector<4xf32>
      %72 = vector.extract_strided_slice %55 {offsets = [8, 0], sizes = [1, 4], strides = [1, 1]} : vector<49x4xf32> to vector<1x4xf32>
      %73 = vector.shape_cast %72 : vector<1x4xf32> to vector<4xf32>
      %74 = vector.extract_strided_slice %55 {offsets = [9, 0], sizes = [1, 4], strides = [1, 1]} : vector<49x4xf32> to vector<1x4xf32>
      %75 = vector.shape_cast %74 : vector<1x4xf32> to vector<4xf32>
      %76 = vector.extract_strided_slice %55 {offsets = [10, 0], sizes = [1, 4], strides = [1, 1]} : vector<49x4xf32> to vector<1x4xf32>
      %77 = vector.shape_cast %76 : vector<1x4xf32> to vector<4xf32>
      %78 = vector.extract_strided_slice %55 {offsets = [11, 0], sizes = [1, 4], strides = [1, 1]} : vector<49x4xf32> to vector<1x4xf32>
      %79 = vector.shape_cast %78 : vector<1x4xf32> to vector<4xf32>
      %80 = vector.extract_strided_slice %55 {offsets = [12, 0], sizes = [1, 4], strides = [1, 1]} : vector<49x4xf32> to vector<1x4xf32>
      %81 = vector.shape_cast %80 : vector<1x4xf32> to vector<4xf32>
      %82 = vector.extract_strided_slice %55 {offsets = [13, 0], sizes = [1, 4], strides = [1, 1]} : vector<49x4xf32> to vector<1x4xf32>
      %83 = vector.shape_cast %82 : vector<1x4xf32> to vector<4xf32>
      %84 = vector.extract_strided_slice %55 {offsets = [14, 0], sizes = [1, 4], strides = [1, 1]} : vector<49x4xf32> to vector<1x4xf32>
      %85 = vector.shape_cast %84 : vector<1x4xf32> to vector<4xf32>
      %86 = vector.extract_strided_slice %55 {offsets = [15, 0], sizes = [1, 4], strides = [1, 1]} : vector<49x4xf32> to vector<1x4xf32>
      %87 = vector.shape_cast %86 : vector<1x4xf32> to vector<4xf32>
      %88 = vector.extract_strided_slice %55 {offsets = [16, 0], sizes = [1, 4], strides = [1, 1]} : vector<49x4xf32> to vector<1x4xf32>
      %89 = vector.shape_cast %88 : vector<1x4xf32> to vector<4xf32>
      %90 = vector.extract_strided_slice %55 {offsets = [17, 0], sizes = [1, 4], strides = [1, 1]} : vector<49x4xf32> to vector<1x4xf32>
      %91 = vector.shape_cast %90 : vector<1x4xf32> to vector<4xf32>
      %92 = vector.extract_strided_slice %55 {offsets = [18, 0], sizes = [1, 4], strides = [1, 1]} : vector<49x4xf32> to vector<1x4xf32>
      %93 = vector.shape_cast %92 : vector<1x4xf32> to vector<4xf32>
      %94 = vector.extract_strided_slice %55 {offsets = [19, 0], sizes = [1, 4], strides = [1, 1]} : vector<49x4xf32> to vector<1x4xf32>
      %95 = vector.shape_cast %94 : vector<1x4xf32> to vector<4xf32>
      %96 = vector.extract_strided_slice %55 {offsets = [20, 0], sizes = [1, 4], strides = [1, 1]} : vector<49x4xf32> to vector<1x4xf32>
      %97 = vector.shape_cast %96 : vector<1x4xf32> to vector<4xf32>
      %98 = vector.extract_strided_slice %55 {offsets = [21, 0], sizes = [1, 4], strides = [1, 1]} : vector<49x4xf32> to vector<1x4xf32>
      %99 = vector.shape_cast %98 : vector<1x4xf32> to vector<4xf32>
      %100 = vector.extract_strided_slice %55 {offsets = [22, 0], sizes = [1, 4], strides = [1, 1]} : vector<49x4xf32> to vector<1x4xf32>
      %101 = vector.shape_cast %100 : vector<1x4xf32> to vector<4xf32>
      %102 = vector.extract_strided_slice %55 {offsets = [23, 0], sizes = [1, 4], strides = [1, 1]} : vector<49x4xf32> to vector<1x4xf32>
      %103 = vector.shape_cast %102 : vector<1x4xf32> to vector<4xf32>
      %104 = vector.extract_strided_slice %55 {offsets = [24, 0], sizes = [1, 4], strides = [1, 1]} : vector<49x4xf32> to vector<1x4xf32>
      %105 = vector.shape_cast %104 : vector<1x4xf32> to vector<4xf32>
      %106 = vector.extract_strided_slice %55 {offsets = [25, 0], sizes = [1, 4], strides = [1, 1]} : vector<49x4xf32> to vector<1x4xf32>
      %107 = vector.shape_cast %106 : vector<1x4xf32> to vector<4xf32>
      %108 = vector.extract_strided_slice %55 {offsets = [26, 0], sizes = [1, 4], strides = [1, 1]} : vector<49x4xf32> to vector<1x4xf32>
      %109 = vector.shape_cast %108 : vector<1x4xf32> to vector<4xf32>
      %110 = vector.extract_strided_slice %55 {offsets = [27, 0], sizes = [1, 4], strides = [1, 1]} : vector<49x4xf32> to vector<1x4xf32>
      %111 = vector.shape_cast %110 : vector<1x4xf32> to vector<4xf32>
      %112 = vector.extract_strided_slice %55 {offsets = [28, 0], sizes = [1, 4], strides = [1, 1]} : vector<49x4xf32> to vector<1x4xf32>
      %113 = vector.shape_cast %112 : vector<1x4xf32> to vector<4xf32>
      %114 = vector.extract_strided_slice %55 {offsets = [29, 0], sizes = [1, 4], strides = [1, 1]} : vector<49x4xf32> to vector<1x4xf32>
      %115 = vector.shape_cast %114 : vector<1x4xf32> to vector<4xf32>
      %116 = vector.extract_strided_slice %55 {offsets = [30, 0], sizes = [1, 4], strides = [1, 1]} : vector<49x4xf32> to vector<1x4xf32>
      %117 = vector.shape_cast %116 : vector<1x4xf32> to vector<4xf32>
      %118 = vector.extract_strided_slice %55 {offsets = [31, 0], sizes = [1, 4], strides = [1, 1]} : vector<49x4xf32> to vector<1x4xf32>
      %119 = vector.shape_cast %118 : vector<1x4xf32> to vector<4xf32>
      %120 = vector.extract_strided_slice %55 {offsets = [32, 0], sizes = [1, 4], strides = [1, 1]} : vector<49x4xf32> to vector<1x4xf32>
      %121 = vector.shape_cast %120 : vector<1x4xf32> to vector<4xf32>
      %122 = vector.extract_strided_slice %55 {offsets = [33, 0], sizes = [1, 4], strides = [1, 1]} : vector<49x4xf32> to vector<1x4xf32>
      %123 = vector.shape_cast %122 : vector<1x4xf32> to vector<4xf32>
      %124 = vector.extract_strided_slice %55 {offsets = [34, 0], sizes = [1, 4], strides = [1, 1]} : vector<49x4xf32> to vector<1x4xf32>
      %125 = vector.shape_cast %124 : vector<1x4xf32> to vector<4xf32>
      %126 = vector.extract_strided_slice %55 {offsets = [35, 0], sizes = [1, 4], strides = [1, 1]} : vector<49x4xf32> to vector<1x4xf32>
      %127 = vector.shape_cast %126 : vector<1x4xf32> to vector<4xf32>
      %128 = vector.extract_strided_slice %55 {offsets = [36, 0], sizes = [1, 4], strides = [1, 1]} : vector<49x4xf32> to vector<1x4xf32>
      %129 = vector.shape_cast %128 : vector<1x4xf32> to vector<4xf32>
      %130 = vector.extract_strided_slice %55 {offsets = [37, 0], sizes = [1, 4], strides = [1, 1]} : vector<49x4xf32> to vector<1x4xf32>
      %131 = vector.shape_cast %130 : vector<1x4xf32> to vector<4xf32>
      %132 = vector.extract_strided_slice %55 {offsets = [38, 0], sizes = [1, 4], strides = [1, 1]} : vector<49x4xf32> to vector<1x4xf32>
      %133 = vector.shape_cast %132 : vector<1x4xf32> to vector<4xf32>
      %134 = vector.extract_strided_slice %55 {offsets = [39, 0], sizes = [1, 4], strides = [1, 1]} : vector<49x4xf32> to vector<1x4xf32>
      %135 = vector.shape_cast %134 : vector<1x4xf32> to vector<4xf32>
      %136 = vector.extract_strided_slice %55 {offsets = [40, 0], sizes = [1, 4], strides = [1, 1]} : vector<49x4xf32> to vector<1x4xf32>
      %137 = vector.shape_cast %136 : vector<1x4xf32> to vector<4xf32>
      %138 = vector.extract_strided_slice %55 {offsets = [41, 0], sizes = [1, 4], strides = [1, 1]} : vector<49x4xf32> to vector<1x4xf32>
      %139 = vector.shape_cast %138 : vector<1x4xf32> to vector<4xf32>
      %140 = vector.extract_strided_slice %55 {offsets = [42, 0], sizes = [1, 4], strides = [1, 1]} : vector<49x4xf32> to vector<1x4xf32>
      %141 = vector.shape_cast %140 : vector<1x4xf32> to vector<4xf32>
      %142 = vector.extract_strided_slice %55 {offsets = [43, 0], sizes = [1, 4], strides = [1, 1]} : vector<49x4xf32> to vector<1x4xf32>
      %143 = vector.shape_cast %142 : vector<1x4xf32> to vector<4xf32>
      %144 = vector.extract_strided_slice %55 {offsets = [44, 0], sizes = [1, 4], strides = [1, 1]} : vector<49x4xf32> to vector<1x4xf32>
      %145 = vector.shape_cast %144 : vector<1x4xf32> to vector<4xf32>
      %146 = vector.extract_strided_slice %55 {offsets = [45, 0], sizes = [1, 4], strides = [1, 1]} : vector<49x4xf32> to vector<1x4xf32>
      %147 = vector.shape_cast %146 : vector<1x4xf32> to vector<4xf32>
      %148 = vector.extract_strided_slice %55 {offsets = [46, 0], sizes = [1, 4], strides = [1, 1]} : vector<49x4xf32> to vector<1x4xf32>
      %149 = vector.shape_cast %148 : vector<1x4xf32> to vector<4xf32>
      %150 = vector.extract_strided_slice %55 {offsets = [47, 0], sizes = [1, 4], strides = [1, 1]} : vector<49x4xf32> to vector<1x4xf32>
      %151 = vector.shape_cast %150 : vector<1x4xf32> to vector<4xf32>
      %152 = vector.extract_strided_slice %55 {offsets = [48, 0], sizes = [1, 4], strides = [1, 1]} : vector<49x4xf32> to vector<1x4xf32>
      %153 = vector.shape_cast %152 : vector<1x4xf32> to vector<4xf32>
      %c0_45 = arith.constant 0 : index
      %c0_46 = arith.constant 0 : index
      %154 = vector.load %arg4[%c0_45, %c0_46] : memref<1x4xf32, #tpu.memory_space<vmem>>, vector<1x4xf32>
      %cst_47 = arith.constant 0.000000e+00 : f32
      %c0_i32_48 = arith.constant 0 : i32
      %c2_i32 = arith.constant 2 : i32
      %155 = arith.addi %c0_i32_48, %c2_i32 : i32
      %c1_i32 = arith.constant 1 : i32
      %156 = scf.for %arg16 = %c0_i32_48 to %155 step %c1_i32 iter_args(%arg17 = %cst_47) -> (f32)  : i32 {
        %c8_i32 = arith.constant 8 : i32
        %173 = arith.muli %arg16, %c8_i32 : i32
        %cst_67 = arith.constant 0.000000e+00 : f32
        %174 = vector.broadcast %cst_67 : f32 to vector<8x16x4xf32>
        %175 = arith.index_cast %173 : i32 to index
        %c5 = arith.constant 5 : index
        %c0_68 = arith.constant 0 : index
        %176 = vector.load %arg13[%175, %c5, %c0_68] : memref<22x32x4xf32, #tpu.memory_space<vmem>>, vector<14x16x4xf32>
        %177 = vector.extract_strided_slice %176 {offsets = [0, 0, 0], sizes = [8, 16, 4], strides = [1, 1, 1]} : vector<14x16x4xf32> to vector<8x16x4xf32>
        %178 = vector.shape_cast %57 : vector<4xf32> to vector<1x1x4xf32>
        %179 = vector.broadcast %178 : vector<1x1x4xf32> to vector<8x16x4xf32>
        %180 = arith.mulf %177, %179 : vector<8x16x4xf32>
        %181 = arith.addf %174, %180 : vector<8x16x4xf32>
        %182 = vector.extract_strided_slice %176 {offsets = [1, 0, 0], sizes = [8, 16, 4], strides = [1, 1, 1]} : vector<14x16x4xf32> to vector<8x16x4xf32>
        %183 = vector.shape_cast %71 : vector<4xf32> to vector<1x1x4xf32>
        %184 = vector.broadcast %183 : vector<1x1x4xf32> to vector<8x16x4xf32>
        %185 = arith.mulf %182, %184 : vector<8x16x4xf32>
        %186 = arith.addf %181, %185 : vector<8x16x4xf32>
        %187 = vector.extract_strided_slice %176 {offsets = [2, 0, 0], sizes = [8, 16, 4], strides = [1, 1, 1]} : vector<14x16x4xf32> to vector<8x16x4xf32>
        %188 = vector.shape_cast %85 : vector<4xf32> to vector<1x1x4xf32>
        %189 = vector.broadcast %188 : vector<1x1x4xf32> to vector<8x16x4xf32>
        %190 = arith.mulf %187, %189 : vector<8x16x4xf32>
        %191 = arith.addf %186, %190 : vector<8x16x4xf32>
        %192 = vector.extract_strided_slice %176 {offsets = [3, 0, 0], sizes = [8, 16, 4], strides = [1, 1, 1]} : vector<14x16x4xf32> to vector<8x16x4xf32>
        %193 = vector.shape_cast %99 : vector<4xf32> to vector<1x1x4xf32>
        %194 = vector.broadcast %193 : vector<1x1x4xf32> to vector<8x16x4xf32>
        %195 = arith.mulf %192, %194 : vector<8x16x4xf32>
        %196 = arith.addf %191, %195 : vector<8x16x4xf32>
        %197 = vector.extract_strided_slice %176 {offsets = [4, 0, 0], sizes = [8, 16, 4], strides = [1, 1, 1]} : vector<14x16x4xf32> to vector<8x16x4xf32>
        %198 = vector.shape_cast %113 : vector<4xf32> to vector<1x1x4xf32>
        %199 = vector.broadcast %198 : vector<1x1x4xf32> to vector<8x16x4xf32>
        %200 = arith.mulf %197, %199 : vector<8x16x4xf32>
        %201 = arith.addf %196, %200 : vector<8x16x4xf32>
        %202 = vector.extract_strided_slice %176 {offsets = [5, 0, 0], sizes = [8, 16, 4], strides = [1, 1, 1]} : vector<14x16x4xf32> to vector<8x16x4xf32>
        %203 = vector.shape_cast %127 : vector<4xf32> to vector<1x1x4xf32>
        %204 = vector.broadcast %203 : vector<1x1x4xf32> to vector<8x16x4xf32>
        %205 = arith.mulf %202, %204 : vector<8x16x4xf32>
        %206 = arith.addf %201, %205 : vector<8x16x4xf32>
        %207 = vector.extract_strided_slice %176 {offsets = [6, 0, 0], sizes = [8, 16, 4], strides = [1, 1, 1]} : vector<14x16x4xf32> to vector<8x16x4xf32>
        %208 = vector.shape_cast %141 : vector<4xf32> to vector<1x1x4xf32>
        %209 = vector.broadcast %208 : vector<1x1x4xf32> to vector<8x16x4xf32>
        %210 = arith.mulf %207, %209 : vector<8x16x4xf32>
        %211 = arith.addf %206, %210 : vector<8x16x4xf32>
        %212 = arith.index_cast %173 : i32 to index
        %c6 = arith.constant 6 : index
        %c0_69 = arith.constant 0 : index
        %213 = vector.load %arg13[%212, %c6, %c0_69] : memref<22x32x4xf32, #tpu.memory_space<vmem>>, vector<14x16x4xf32>
        %214 = vector.extract_strided_slice %213 {offsets = [0, 0, 0], sizes = [8, 16, 4], strides = [1, 1, 1]} : vector<14x16x4xf32> to vector<8x16x4xf32>
        %215 = vector.shape_cast %59 : vector<4xf32> to vector<1x1x4xf32>
        %216 = vector.broadcast %215 : vector<1x1x4xf32> to vector<8x16x4xf32>
        %217 = arith.mulf %214, %216 : vector<8x16x4xf32>
        %218 = arith.addf %211, %217 : vector<8x16x4xf32>
        %219 = vector.extract_strided_slice %213 {offsets = [1, 0, 0], sizes = [8, 16, 4], strides = [1, 1, 1]} : vector<14x16x4xf32> to vector<8x16x4xf32>
        %220 = vector.shape_cast %73 : vector<4xf32> to vector<1x1x4xf32>
        %221 = vector.broadcast %220 : vector<1x1x4xf32> to vector<8x16x4xf32>
        %222 = arith.mulf %219, %221 : vector<8x16x4xf32>
        %223 = arith.addf %218, %222 : vector<8x16x4xf32>
        %224 = vector.extract_strided_slice %213 {offsets = [2, 0, 0], sizes = [8, 16, 4], strides = [1, 1, 1]} : vector<14x16x4xf32> to vector<8x16x4xf32>
        %225 = vector.shape_cast %87 : vector<4xf32> to vector<1x1x4xf32>
        %226 = vector.broadcast %225 : vector<1x1x4xf32> to vector<8x16x4xf32>
        %227 = arith.mulf %224, %226 : vector<8x16x4xf32>
        %228 = arith.addf %223, %227 : vector<8x16x4xf32>
        %229 = vector.extract_strided_slice %213 {offsets = [3, 0, 0], sizes = [8, 16, 4], strides = [1, 1, 1]} : vector<14x16x4xf32> to vector<8x16x4xf32>
        %230 = vector.shape_cast %101 : vector<4xf32> to vector<1x1x4xf32>
        %231 = vector.broadcast %230 : vector<1x1x4xf32> to vector<8x16x4xf32>
        %232 = arith.mulf %229, %231 : vector<8x16x4xf32>
        %233 = arith.addf %228, %232 : vector<8x16x4xf32>
        %234 = vector.extract_strided_slice %213 {offsets = [4, 0, 0], sizes = [8, 16, 4], strides = [1, 1, 1]} : vector<14x16x4xf32> to vector<8x16x4xf32>
        %235 = vector.shape_cast %115 : vector<4xf32> to vector<1x1x4xf32>
        %236 = vector.broadcast %235 : vector<1x1x4xf32> to vector<8x16x4xf32>
        %237 = arith.mulf %234, %236 : vector<8x16x4xf32>
        %238 = arith.addf %233, %237 : vector<8x16x4xf32>
        %239 = vector.extract_strided_slice %213 {offsets = [5, 0, 0], sizes = [8, 16, 4], strides = [1, 1, 1]} : vector<14x16x4xf32> to vector<8x16x4xf32>
        %240 = vector.shape_cast %129 : vector<4xf32> to vector<1x1x4xf32>
        %241 = vector.broadcast %240 : vector<1x1x4xf32> to vector<8x16x4xf32>
        %242 = arith.mulf %239, %241 : vector<8x16x4xf32>
        %243 = arith.addf %238, %242 : vector<8x16x4xf32>
        %244 = vector.extract_strided_slice %213 {offsets = [6, 0, 0], sizes = [8, 16, 4], strides = [1, 1, 1]} : vector<14x16x4xf32> to vector<8x16x4xf32>
        %245 = vector.shape_cast %143 : vector<4xf32> to vector<1x1x4xf32>
        %246 = vector.broadcast %245 : vector<1x1x4xf32> to vector<8x16x4xf32>
        %247 = arith.mulf %244, %246 : vector<8x16x4xf32>
        %248 = arith.addf %243, %247 : vector<8x16x4xf32>
        %249 = arith.index_cast %173 : i32 to index
        %c7 = arith.constant 7 : index
        %c0_70 = arith.constant 0 : index
        %250 = vector.load %arg13[%249, %c7, %c0_70] : memref<22x32x4xf32, #tpu.memory_space<vmem>>, vector<14x16x4xf32>
        %251 = vector.extract_strided_slice %250 {offsets = [0, 0, 0], sizes = [8, 16, 4], strides = [1, 1, 1]} : vector<14x16x4xf32> to vector<8x16x4xf32>
        %252 = vector.shape_cast %61 : vector<4xf32> to vector<1x1x4xf32>
        %253 = vector.broadcast %252 : vector<1x1x4xf32> to vector<8x16x4xf32>
        %254 = arith.mulf %251, %253 : vector<8x16x4xf32>
        %255 = arith.addf %248, %254 : vector<8x16x4xf32>
        %256 = vector.extract_strided_slice %250 {offsets = [1, 0, 0], sizes = [8, 16, 4], strides = [1, 1, 1]} : vector<14x16x4xf32> to vector<8x16x4xf32>
        %257 = vector.shape_cast %75 : vector<4xf32> to vector<1x1x4xf32>
        %258 = vector.broadcast %257 : vector<1x1x4xf32> to vector<8x16x4xf32>
        %259 = arith.mulf %256, %258 : vector<8x16x4xf32>
        %260 = arith.addf %255, %259 : vector<8x16x4xf32>
        %261 = vector.extract_strided_slice %250 {offsets = [2, 0, 0], sizes = [8, 16, 4], strides = [1, 1, 1]} : vector<14x16x4xf32> to vector<8x16x4xf32>
        %262 = vector.shape_cast %89 : vector<4xf32> to vector<1x1x4xf32>
        %263 = vector.broadcast %262 : vector<1x1x4xf32> to vector<8x16x4xf32>
        %264 = arith.mulf %261, %263 : vector<8x16x4xf32>
        %265 = arith.addf %260, %264 : vector<8x16x4xf32>
        %266 = vector.extract_strided_slice %250 {offsets = [3, 0, 0], sizes = [8, 16, 4], strides = [1, 1, 1]} : vector<14x16x4xf32> to vector<8x16x4xf32>
        %267 = vector.shape_cast %103 : vector<4xf32> to vector<1x1x4xf32>
        %268 = vector.broadcast %267 : vector<1x1x4xf32> to vector<8x16x4xf32>
        %269 = arith.mulf %266, %268 : vector<8x16x4xf32>
        %270 = arith.addf %265, %269 : vector<8x16x4xf32>
        %271 = vector.extract_strided_slice %250 {offsets = [4, 0, 0], sizes = [8, 16, 4], strides = [1, 1, 1]} : vector<14x16x4xf32> to vector<8x16x4xf32>
        %272 = vector.shape_cast %117 : vector<4xf32> to vector<1x1x4xf32>
        %273 = vector.broadcast %272 : vector<1x1x4xf32> to vector<8x16x4xf32>
        %274 = arith.mulf %271, %273 : vector<8x16x4xf32>
        %275 = arith.addf %270, %274 : vector<8x16x4xf32>
        %276 = vector.extract_strided_slice %250 {offsets = [5, 0, 0], sizes = [8, 16, 4], strides = [1, 1, 1]} : vector<14x16x4xf32> to vector<8x16x4xf32>
        %277 = vector.shape_cast %131 : vector<4xf32> to vector<1x1x4xf32>
        %278 = vector.broadcast %277 : vector<1x1x4xf32> to vector<8x16x4xf32>
        %279 = arith.mulf %276, %278 : vector<8x16x4xf32>
        %280 = arith.addf %275, %279 : vector<8x16x4xf32>
        %281 = vector.extract_strided_slice %250 {offsets = [6, 0, 0], sizes = [8, 16, 4], strides = [1, 1, 1]} : vector<14x16x4xf32> to vector<8x16x4xf32>
        %282 = vector.shape_cast %145 : vector<4xf32> to vector<1x1x4xf32>
        %283 = vector.broadcast %282 : vector<1x1x4xf32> to vector<8x16x4xf32>
        %284 = arith.mulf %281, %283 : vector<8x16x4xf32>
        %285 = arith.addf %280, %284 : vector<8x16x4xf32>
        %286 = arith.index_cast %173 : i32 to index
        %c8_71 = arith.constant 8 : index
        %c0_72 = arith.constant 0 : index
        %287 = vector.load %arg13[%286, %c8_71, %c0_72] : memref<22x32x4xf32, #tpu.memory_space<vmem>>, vector<14x16x4xf32>
        %288 = vector.extract_strided_slice %287 {offsets = [0, 0, 0], sizes = [8, 16, 4], strides = [1, 1, 1]} : vector<14x16x4xf32> to vector<8x16x4xf32>
        %289 = vector.shape_cast %63 : vector<4xf32> to vector<1x1x4xf32>
        %290 = vector.broadcast %289 : vector<1x1x4xf32> to vector<8x16x4xf32>
        %291 = arith.mulf %288, %290 : vector<8x16x4xf32>
        %292 = arith.addf %285, %291 : vector<8x16x4xf32>
        %293 = vector.extract_strided_slice %287 {offsets = [1, 0, 0], sizes = [8, 16, 4], strides = [1, 1, 1]} : vector<14x16x4xf32> to vector<8x16x4xf32>
        %294 = vector.shape_cast %77 : vector<4xf32> to vector<1x1x4xf32>
        %295 = vector.broadcast %294 : vector<1x1x4xf32> to vector<8x16x4xf32>
        %296 = arith.mulf %293, %295 : vector<8x16x4xf32>
        %297 = arith.addf %292, %296 : vector<8x16x4xf32>
        %298 = vector.extract_strided_slice %287 {offsets = [2, 0, 0], sizes = [8, 16, 4], strides = [1, 1, 1]} : vector<14x16x4xf32> to vector<8x16x4xf32>
        %299 = vector.shape_cast %91 : vector<4xf32> to vector<1x1x4xf32>
        %300 = vector.broadcast %299 : vector<1x1x4xf32> to vector<8x16x4xf32>
        %301 = arith.mulf %298, %300 : vector<8x16x4xf32>
        %302 = arith.addf %297, %301 : vector<8x16x4xf32>
        %303 = vector.extract_strided_slice %287 {offsets = [3, 0, 0], sizes = [8, 16, 4], strides = [1, 1, 1]} : vector<14x16x4xf32> to vector<8x16x4xf32>
        %304 = vector.shape_cast %105 : vector<4xf32> to vector<1x1x4xf32>
        %305 = vector.broadcast %304 : vector<1x1x4xf32> to vector<8x16x4xf32>
        %306 = arith.mulf %303, %305 : vector<8x16x4xf32>
        %307 = arith.addf %302, %306 : vector<8x16x4xf32>
        %308 = vector.extract_strided_slice %287 {offsets = [4, 0, 0], sizes = [8, 16, 4], strides = [1, 1, 1]} : vector<14x16x4xf32> to vector<8x16x4xf32>
        %309 = vector.shape_cast %119 : vector<4xf32> to vector<1x1x4xf32>
        %310 = vector.broadcast %309 : vector<1x1x4xf32> to vector<8x16x4xf32>
        %311 = arith.mulf %308, %310 : vector<8x16x4xf32>
        %312 = arith.addf %307, %311 : vector<8x16x4xf32>
        %313 = vector.extract_strided_slice %287 {offsets = [5, 0, 0], sizes = [8, 16, 4], strides = [1, 1, 1]} : vector<14x16x4xf32> to vector<8x16x4xf32>
        %314 = vector.shape_cast %133 : vector<4xf32> to vector<1x1x4xf32>
        %315 = vector.broadcast %314 : vector<1x1x4xf32> to vector<8x16x4xf32>
        %316 = arith.mulf %313, %315 : vector<8x16x4xf32>
        %317 = arith.addf %312, %316 : vector<8x16x4xf32>
        %318 = vector.extract_strided_slice %287 {offsets = [6, 0, 0], sizes = [8, 16, 4], strides = [1, 1, 1]} : vector<14x16x4xf32> to vector<8x16x4xf32>
        %319 = vector.shape_cast %147 : vector<4xf32> to vector<1x1x4xf32>
        %320 = vector.broadcast %319 : vector<1x1x4xf32> to vector<8x16x4xf32>
        %321 = arith.mulf %318, %320 : vector<8x16x4xf32>
        %322 = arith.addf %317, %321 : vector<8x16x4xf32>
        %323 = arith.index_cast %173 : i32 to index
        %c9 = arith.constant 9 : index
        %c0_73 = arith.constant 0 : index
        %324 = vector.load %arg13[%323, %c9, %c0_73] : memref<22x32x4xf32, #tpu.memory_space<vmem>>, vector<14x16x4xf32>
        %325 = vector.extract_strided_slice %324 {offsets = [0, 0, 0], sizes = [8, 16, 4], strides = [1, 1, 1]} : vector<14x16x4xf32> to vector<8x16x4xf32>
        %326 = vector.shape_cast %65 : vector<4xf32> to vector<1x1x4xf32>
        %327 = vector.broadcast %326 : vector<1x1x4xf32> to vector<8x16x4xf32>
        %328 = arith.mulf %325, %327 : vector<8x16x4xf32>
        %329 = arith.addf %322, %328 : vector<8x16x4xf32>
        %330 = vector.extract_strided_slice %324 {offsets = [1, 0, 0], sizes = [8, 16, 4], strides = [1, 1, 1]} : vector<14x16x4xf32> to vector<8x16x4xf32>
        %331 = vector.shape_cast %79 : vector<4xf32> to vector<1x1x4xf32>
        %332 = vector.broadcast %331 : vector<1x1x4xf32> to vector<8x16x4xf32>
        %333 = arith.mulf %330, %332 : vector<8x16x4xf32>
        %334 = arith.addf %329, %333 : vector<8x16x4xf32>
        %335 = vector.extract_strided_slice %324 {offsets = [2, 0, 0], sizes = [8, 16, 4], strides = [1, 1, 1]} : vector<14x16x4xf32> to vector<8x16x4xf32>
        %336 = vector.shape_cast %93 : vector<4xf32> to vector<1x1x4xf32>
        %337 = vector.broadcast %336 : vector<1x1x4xf32> to vector<8x16x4xf32>
        %338 = arith.mulf %335, %337 : vector<8x16x4xf32>
        %339 = arith.addf %334, %338 : vector<8x16x4xf32>
        %340 = vector.extract_strided_slice %324 {offsets = [3, 0, 0], sizes = [8, 16, 4], strides = [1, 1, 1]} : vector<14x16x4xf32> to vector<8x16x4xf32>
        %341 = vector.shape_cast %107 : vector<4xf32> to vector<1x1x4xf32>
        %342 = vector.broadcast %341 : vector<1x1x4xf32> to vector<8x16x4xf32>
        %343 = arith.mulf %340, %342 : vector<8x16x4xf32>
        %344 = arith.addf %339, %343 : vector<8x16x4xf32>
        %345 = vector.extract_strided_slice %324 {offsets = [4, 0, 0], sizes = [8, 16, 4], strides = [1, 1, 1]} : vector<14x16x4xf32> to vector<8x16x4xf32>
        %346 = vector.shape_cast %121 : vector<4xf32> to vector<1x1x4xf32>
        %347 = vector.broadcast %346 : vector<1x1x4xf32> to vector<8x16x4xf32>
        %348 = arith.mulf %345, %347 : vector<8x16x4xf32>
        %349 = arith.addf %344, %348 : vector<8x16x4xf32>
        %350 = vector.extract_strided_slice %324 {offsets = [5, 0, 0], sizes = [8, 16, 4], strides = [1, 1, 1]} : vector<14x16x4xf32> to vector<8x16x4xf32>
        %351 = vector.shape_cast %135 : vector<4xf32> to vector<1x1x4xf32>
        %352 = vector.broadcast %351 : vector<1x1x4xf32> to vector<8x16x4xf32>
        %353 = arith.mulf %350, %352 : vector<8x16x4xf32>
        %354 = arith.addf %349, %353 : vector<8x16x4xf32>
        %355 = vector.extract_strided_slice %324 {offsets = [6, 0, 0], sizes = [8, 16, 4], strides = [1, 1, 1]} : vector<14x16x4xf32> to vector<8x16x4xf32>
        %356 = vector.shape_cast %149 : vector<4xf32> to vector<1x1x4xf32>
        %357 = vector.broadcast %356 : vector<1x1x4xf32> to vector<8x16x4xf32>
        %358 = arith.mulf %355, %357 : vector<8x16x4xf32>
        %359 = arith.addf %354, %358 : vector<8x16x4xf32>
        %360 = arith.index_cast %173 : i32 to index
        %c10 = arith.constant 10 : index
        %c0_74 = arith.constant 0 : index
        %361 = vector.load %arg13[%360, %c10, %c0_74] : memref<22x32x4xf32, #tpu.memory_space<vmem>>, vector<14x16x4xf32>
        %362 = vector.extract_strided_slice %361 {offsets = [0, 0, 0], sizes = [8, 16, 4], strides = [1, 1, 1]} : vector<14x16x4xf32> to vector<8x16x4xf32>
        %363 = vector.shape_cast %67 : vector<4xf32> to vector<1x1x4xf32>
        %364 = vector.broadcast %363 : vector<1x1x4xf32> to vector<8x16x4xf32>
        %365 = arith.mulf %362, %364 : vector<8x16x4xf32>
        %366 = arith.addf %359, %365 : vector<8x16x4xf32>
        %367 = vector.extract_strided_slice %361 {offsets = [1, 0, 0], sizes = [8, 16, 4], strides = [1, 1, 1]} : vector<14x16x4xf32> to vector<8x16x4xf32>
        %368 = vector.shape_cast %81 : vector<4xf32> to vector<1x1x4xf32>
        %369 = vector.broadcast %368 : vector<1x1x4xf32> to vector<8x16x4xf32>
        %370 = arith.mulf %367, %369 : vector<8x16x4xf32>
        %371 = arith.addf %366, %370 : vector<8x16x4xf32>
        %372 = vector.extract_strided_slice %361 {offsets = [2, 0, 0], sizes = [8, 16, 4], strides = [1, 1, 1]} : vector<14x16x4xf32> to vector<8x16x4xf32>
        %373 = vector.shape_cast %95 : vector<4xf32> to vector<1x1x4xf32>
        %374 = vector.broadcast %373 : vector<1x1x4xf32> to vector<8x16x4xf32>
        %375 = arith.mulf %372, %374 : vector<8x16x4xf32>
        %376 = arith.addf %371, %375 : vector<8x16x4xf32>
        %377 = vector.extract_strided_slice %361 {offsets = [3, 0, 0], sizes = [8, 16, 4], strides = [1, 1, 1]} : vector<14x16x4xf32> to vector<8x16x4xf32>
        %378 = vector.shape_cast %109 : vector<4xf32> to vector<1x1x4xf32>
        %379 = vector.broadcast %378 : vector<1x1x4xf32> to vector<8x16x4xf32>
        %380 = arith.mulf %377, %379 : vector<8x16x4xf32>
        %381 = arith.addf %376, %380 : vector<8x16x4xf32>
        %382 = vector.extract_strided_slice %361 {offsets = [4, 0, 0], sizes = [8, 16, 4], strides = [1, 1, 1]} : vector<14x16x4xf32> to vector<8x16x4xf32>
        %383 = vector.shape_cast %123 : vector<4xf32> to vector<1x1x4xf32>
        %384 = vector.broadcast %383 : vector<1x1x4xf32> to vector<8x16x4xf32>
        %385 = arith.mulf %382, %384 : vector<8x16x4xf32>
        %386 = arith.addf %381, %385 : vector<8x16x4xf32>
        %387 = vector.extract_strided_slice %361 {offsets = [5, 0, 0], sizes = [8, 16, 4], strides = [1, 1, 1]} : vector<14x16x4xf32> to vector<8x16x4xf32>
        %388 = vector.shape_cast %137 : vector<4xf32> to vector<1x1x4xf32>
        %389 = vector.broadcast %388 : vector<1x1x4xf32> to vector<8x16x4xf32>
        %390 = arith.mulf %387, %389 : vector<8x16x4xf32>
        %391 = arith.addf %386, %390 : vector<8x16x4xf32>
        %392 = vector.extract_strided_slice %361 {offsets = [6, 0, 0], sizes = [8, 16, 4], strides = [1, 1, 1]} : vector<14x16x4xf32> to vector<8x16x4xf32>
        %393 = vector.shape_cast %151 : vector<4xf32> to vector<1x1x4xf32>
        %394 = vector.broadcast %393 : vector<1x1x4xf32> to vector<8x16x4xf32>
        %395 = arith.mulf %392, %394 : vector<8x16x4xf32>
        %396 = arith.addf %391, %395 : vector<8x16x4xf32>
        %397 = arith.index_cast %173 : i32 to index
        %c11 = arith.constant 11 : index
        %c0_75 = arith.constant 0 : index
        %398 = vector.load %arg13[%397, %c11, %c0_75] : memref<22x32x4xf32, #tpu.memory_space<vmem>>, vector<14x16x4xf32>
        %399 = vector.extract_strided_slice %398 {offsets = [0, 0, 0], sizes = [8, 16, 4], strides = [1, 1, 1]} : vector<14x16x4xf32> to vector<8x16x4xf32>
        %400 = vector.shape_cast %69 : vector<4xf32> to vector<1x1x4xf32>
        %401 = vector.broadcast %400 : vector<1x1x4xf32> to vector<8x16x4xf32>
        %402 = arith.mulf %399, %401 : vector<8x16x4xf32>
        %403 = arith.addf %396, %402 : vector<8x16x4xf32>
        %404 = vector.extract_strided_slice %398 {offsets = [1, 0, 0], sizes = [8, 16, 4], strides = [1, 1, 1]} : vector<14x16x4xf32> to vector<8x16x4xf32>
        %405 = vector.shape_cast %83 : vector<4xf32> to vector<1x1x4xf32>
        %406 = vector.broadcast %405 : vector<1x1x4xf32> to vector<8x16x4xf32>
        %407 = arith.mulf %404, %406 : vector<8x16x4xf32>
        %408 = arith.addf %403, %407 : vector<8x16x4xf32>
        %409 = vector.extract_strided_slice %398 {offsets = [2, 0, 0], sizes = [8, 16, 4], strides = [1, 1, 1]} : vector<14x16x4xf32> to vector<8x16x4xf32>
        %410 = vector.shape_cast %97 : vector<4xf32> to vector<1x1x4xf32>
        %411 = vector.broadcast %410 : vector<1x1x4xf32> to vector<8x16x4xf32>
        %412 = arith.mulf %409, %411 : vector<8x16x4xf32>
        %413 = arith.addf %408, %412 : vector<8x16x4xf32>
        %414 = vector.extract_strided_slice %398 {offsets = [3, 0, 0], sizes = [8, 16, 4], strides = [1, 1, 1]} : vector<14x16x4xf32> to vector<8x16x4xf32>
        %415 = vector.shape_cast %111 : vector<4xf32> to vector<1x1x4xf32>
        %416 = vector.broadcast %415 : vector<1x1x4xf32> to vector<8x16x4xf32>
        %417 = arith.mulf %414, %416 : vector<8x16x4xf32>
        %418 = arith.addf %413, %417 : vector<8x16x4xf32>
        %419 = vector.extract_strided_slice %398 {offsets = [4, 0, 0], sizes = [8, 16, 4], strides = [1, 1, 1]} : vector<14x16x4xf32> to vector<8x16x4xf32>
        %420 = vector.shape_cast %125 : vector<4xf32> to vector<1x1x4xf32>
        %421 = vector.broadcast %420 : vector<1x1x4xf32> to vector<8x16x4xf32>
        %422 = arith.mulf %419, %421 : vector<8x16x4xf32>
        %423 = arith.addf %418, %422 : vector<8x16x4xf32>
        %424 = vector.extract_strided_slice %398 {offsets = [5, 0, 0], sizes = [8, 16, 4], strides = [1, 1, 1]} : vector<14x16x4xf32> to vector<8x16x4xf32>
        %425 = vector.shape_cast %139 : vector<4xf32> to vector<1x1x4xf32>
        %426 = vector.broadcast %425 : vector<1x1x4xf32> to vector<8x16x4xf32>
        %427 = arith.mulf %424, %426 : vector<8x16x4xf32>
        %428 = arith.addf %423, %427 : vector<8x16x4xf32>
        %429 = vector.extract_strided_slice %398 {offsets = [6, 0, 0], sizes = [8, 16, 4], strides = [1, 1, 1]} : vector<14x16x4xf32> to vector<8x16x4xf32>
        %430 = vector.shape_cast %153 : vector<4xf32> to vector<1x1x4xf32>
        %431 = vector.broadcast %430 : vector<1x1x4xf32> to vector<8x16x4xf32>
        %432 = arith.mulf %429, %431 : vector<8x16x4xf32>
        %433 = arith.addf %428, %432 : vector<8x16x4xf32>
        %434 = vector.shape_cast %433 : vector<8x16x4xf32> to vector<128x4xf32>
        %435 = vector.broadcast %154 : vector<1x4xf32> to vector<128x4xf32>
        %436 = arith.addf %434, %435 : vector<128x4xf32>
        %c128_i32 = arith.constant 128 : i32
        %437 = arith.muli %arg16, %c128_i32 : i32
        %438 = tpu.assume_multiple %437, 8 : i32
        %439 = arith.index_cast %438 : i32 to index
        %c0_76 = arith.constant 0 : index
        %440 = vector.load %arg14[%439, %c0_76] : memref<256x4xf32, #tpu.memory_space<vmem>>, vector<128x4xf32>
        tpu.vector_store %arg14[%439, %c0_76], %436 {strides = array<i32>} : memref<256x4xf32, #tpu.memory_space<vmem>>, vector<128x4xf32>,
        %441 = vector.shape_cast %436 : vector<128x4xf32> to vector<1x128x4xf32>
        %cst_77 = arith.constant dense<0.000000e+00> : vector<1xf32>
        %442 = vector.multi_reduction <add>, %441, %cst_77 [1, 2] : vector<1x128x4xf32> to vector<1xf32>
        %443 = vector.shape_cast %442 : vector<1xf32> to vector<1x1x1xf32>
        %444 = vector.extract %443[0, 0, 0] : f32 from vector<1x1x1xf32>
        %445 = arith.addf %arg17, %444 : f32
        scf.yield %445 : f32
      }
      %c2_i32_49 = arith.constant 2 : i32
      %cst_50 = arith.constant 1.024000e+03 : f32
      %157 = arith.divf %156, %cst_50 : f32
      %cst_51 = arith.constant 0.000000e+00 : f32
      %c0_i32_52 = arith.constant 0 : i32
      %c2_i32_53 = arith.constant 2 : i32
      %158 = arith.addi %c0_i32_52, %c2_i32_53 : i32
      %c1_i32_54 = arith.constant 1 : i32
      %159 = scf.for %arg16 = %c0_i32_52 to %158 step %c1_i32_54 iter_args(%arg17 = %cst_51) -> (f32)  : i32 {
        %c128_i32 = arith.constant 128 : i32
        %173 = arith.muli %arg16, %c128_i32 : i32
        %174 = tpu.assume_multiple %173, 8 : i32
        %175 = arith.index_cast %174 : i32 to index
        %c0_67 = arith.constant 0 : index
        %176 = vector.load %arg14[%175, %c0_67] : memref<256x4xf32, #tpu.memory_space<vmem>>, vector<128x4xf32>
        %177 = vector.broadcast %157 : f32 to vector<128x4xf32>
        %178 = arith.subf %176, %177 : vector<128x4xf32>
        %179 = arith.mulf %178, %178 : vector<128x4xf32>
        %180 = vector.shape_cast %179 : vector<128x4xf32> to vector<1x128x4xf32>
        %cst_68 = arith.constant dense<0.000000e+00> : vector<1xf32>
        %181 = vector.multi_reduction <add>, %180, %cst_68 [1, 2] : vector<1x128x4xf32> to vector<1xf32>
        %182 = vector.shape_cast %181 : vector<1xf32> to vector<1x1x1xf32>
        %183 = vector.extract %182[0, 0, 0] : f32 from vector<1x1x1xf32>
        %184 = arith.addf %arg17, %183 : f32
        scf.yield %184 : f32
      }
      %c2_i32_55 = arith.constant 2 : i32
      %cst_56 = arith.constant 1.024000e+03 : f32
      %160 = arith.divf %159, %cst_56 : f32
      %cst_57 = arith.constant 0.000000e+00 : f32
      %161 = arith.maximumf %160, %cst_57 : f32
      %cst_58 = arith.constant 9.99999974E-6 : f32
      %162 = arith.addf %161, %cst_58 : f32
      %163 = math.rsqrt %162 : f32
      %c0_59 = arith.constant 0 : index
      %c0_60 = arith.constant 0 : index
      %164 = vector.load %arg5[%c0_59, %c0_60] : memref<1x4xf32, #tpu.memory_space<vmem>>, vector<1x4xf32>
      %165 = vector.broadcast %163 : f32 to vector<1x4xf32>
      %166 = arith.mulf %164, %165 : vector<1x4xf32>
      %c0_61 = arith.constant 0 : index
      %c0_62 = arith.constant 0 : index
      %167 = vector.load %arg15[%c0_61, %c0_62] : memref<2x4xf32, #tpu.memory_space<vmem>>, vector<1x4xf32>
      tpu.vector_store %arg15[%c0_61, %c0_62], %166 {strides = array<i32>} : memref<2x4xf32, #tpu.memory_space<vmem>>, vector<1x4xf32>,
      %c0_63 = arith.constant 0 : index
      %c0_64 = arith.constant 0 : index
      %168 = vector.load %arg6[%c0_63, %c0_64] : memref<1x4xf32, #tpu.memory_space<vmem>>, vector<1x4xf32>
      %169 = vector.broadcast %157 : f32 to vector<1x4xf32>
      %170 = arith.mulf %169, %166 : vector<1x4xf32>
      %171 = arith.subf %168, %170 : vector<1x4xf32>
      %c1_65 = arith.constant 1 : index
      %c0_66 = arith.constant 0 : index
      %172 = vector.load %arg15[%c1_65, %c0_66] : memref<2x4xf32, #tpu.memory_space<vmem>>, vector<1x4xf32>
      tpu.vector_store %arg15[%c1_65, %c0_66], %171 {strides = array<i32>} : memref<2x4xf32, #tpu.memory_space<vmem>>, vector<1x4xf32>,
    } else {
    }
    %c0 = arith.constant 0 : index
    %c0_1 = arith.constant 0 : index
    %3 = vector.load %arg15[%c0, %c0_1] : memref<2x4xf32, #tpu.memory_space<vmem>>, vector<1x4xf32>
    %c1 = arith.constant 1 : index
    %c0_2 = arith.constant 0 : index
    %4 = vector.load %arg15[%c1, %c0_2] : memref<2x4xf32, #tpu.memory_space<vmem>>, vector<1x4xf32>
    %c0_3 = arith.constant 0 : index
    %c0_4 = arith.constant 0 : index
    %5 = vector.load %arg7[%c0_3, %c0_4] : memref<4x16xbf16, #tpu.memory_space<vmem>>, vector<4x16xbf16>
    %c0_5 = arith.constant 0 : index
    %c0_6 = arith.constant 0 : index
    %6 = vector.load %arg8[%c0_5, %c0_6] : memref<1x16xf32, #tpu.memory_space<vmem>>, vector<1x16xf32>
    %c0_7 = arith.constant 0 : index
    %c0_8 = arith.constant 0 : index
    %7 = vector.load %arg9[%c0_7, %c0_8] : memref<8x16xbf16, #tpu.memory_space<vmem>>, vector<8x16xbf16>
    %c0_9 = arith.constant 0 : index
    %c0_10 = arith.constant 0 : index
    %8 = vector.load %arg10[%c0_9, %c0_10] : memref<8x4xf32, #tpu.memory_space<vmem>>, vector<8x4xf32>
    %c0_11 = arith.constant 0 : index
    %c0_12 = arith.constant 0 : index
    %9 = vector.load %arg11[%c0_11, %c0_12] : memref<8x1xf32, #tpu.memory_space<vmem>>, vector<8x1xf32>
    %c16_i32 = arith.constant 16 : i32
    %10 = arith.muli %arg1, %c16_i32 : i32
    %c256_i32 = arith.constant 256 : i32
    %11 = arith.muli %arg1, %c256_i32 : i32
    %12 = tpu.assume_multiple %11, 128 : i32
    %13 = arith.index_cast %12 : i32 to index
    %c0_13 = arith.constant 0 : index
    %14 = vector.load %arg14[%13, %c0_13] : memref<256x4xf32, #tpu.memory_space<vmem>>, vector<256x4xf32>
    %15 = vector.broadcast %3 : vector<1x4xf32> to vector<256x4xf32>
    %16 = arith.mulf %14, %15 : vector<256x4xf32>
    %17 = vector.broadcast %4 : vector<1x4xf32> to vector<256x4xf32>
    %18 = arith.addf %16, %17 : vector<256x4xf32>
    %19 = arith.truncf %18 : vector<256x4xf32> to vector<256x4xbf16>
    %cst = arith.constant dense<0.000000e+00> : vector<256x16xf32>
    %20 = tpu.matmul %19, %5, %cst {dimension_numbers = #tpu.dot_dimension_numbers<[1], [0], [0], [1], [0, 0, 1, 1], [], []>} : vector<256x4xbf16>, vector<4x16xbf16>, vector<256x16xf32> -> vector<256x16xf32>
    %21 = vector.broadcast %6 : vector<1x16xf32> to vector<256x16xf32>
    %22 = arith.addf %20, %21 : vector<256x16xf32>
    %cst_14 = arith.constant 5.000000e-01 : f32
    %23 = vector.broadcast %cst_14 : f32 to vector<256x16xf32>
    %24 = arith.mulf %23, %22 : vector<256x16xf32>
    %cst_15 = arith.constant 0.707106769 : f32
    %25 = vector.broadcast %cst_15 : f32 to vector<256x16xf32>
    %26 = arith.mulf %22, %25 : vector<256x16xf32>
    %27 = math.erf %26 : vector<256x16xf32>
    %cst_16 = arith.constant 1.000000e+00 : f32
    %28 = vector.broadcast %cst_16 : f32 to vector<256x16xf32>
    %29 = arith.addf %28, %27 : vector<256x16xf32>
    %30 = arith.mulf %24, %29 : vector<256x16xf32>
    %31 = arith.truncf %30 : vector<256x16xf32> to vector<256x16xbf16>
    %cst_17 = arith.constant dense<0.000000e+00> : vector<8x256xf32>
    %32 = tpu.matmul %7, %31, %cst_17 {dimension_numbers = #tpu.dot_dimension_numbers<[1], [1], [0], [0], [0, 0, 1, 0], [], []>} : vector<8x16xbf16>, vector<256x16xbf16>, vector<8x256xf32> -> vector<8x256xf32>
    %c3_i32 = arith.constant 3 : i32
    %33 = arith.addi %c3_i32, %10 : i32
    %34 = arith.index_cast %33 : i32 to index
    %c8 = arith.constant 8 : index
    %c0_18 = arith.constant 0 : index
    %35 = vector.load %arg13[%34, %c8, %c0_18] : memref<22x32x4xf32, #tpu.memory_space<vmem>>, vector<16x16x4xf32>
    %36 = vector.shape_cast %35 : vector<16x16x4xf32> to vector<256x4xf32>
    %cst_19 = arith.constant dense<0.000000e+00> : vector<8x256xf32>
    %37 = tpu.matmul %8, %36, %cst_19 {dimension_numbers = #tpu.dot_dimension_numbers<[1], [1], [0], [0], [0, 0, 1, 0], [], []>} : vector<8x4xf32>, vector<256x4xf32>, vector<8x256xf32> -> vector<8x256xf32>
    %38 = arith.addf %32, %37 : vector<8x256xf32>
    %39 = vector.broadcast %9 : vector<8x1xf32> to vector<8x256xf32>
    %40 = arith.addf %38, %39 : vector<8x256xf32>
    %c0_20 = arith.constant 0 : index
    %c0_21 = arith.constant 0 : index
    %c0_22 = arith.constant 0 : index
    %41 = vector.load %arg12[%c0_20, %c0_21, %c0_22] : memref<1x8x256xf32, #tpu.memory_space<vmem>>, vector<1x8x256xf32>
    %42 = vector.shape_cast %41 : vector<1x8x256xf32> to vector<8x256xf32>
    %43 = vector.shape_cast %40 : vector<8x256xf32> to vector<1x8x256xf32>
    tpu.vector_store %arg12[%c0_20, %c0_21, %c0_22], %43 {strides = array<i32>} : memref<1x8x256xf32, #tpu.memory_space<vmem>>, vector<1x8x256xf32>,
    return
  }
  func.func @transform_0(%arg0: i32, %arg1: i32) -> (i32, i32, i32, i32) {
    %c0_i32 = arith.constant 0 : i32
    %c0_i32_0 = arith.constant 0 : i32
    %c0_i32_1 = arith.constant 0 : i32
    %c0_i32_2 = arith.constant 0 : i32
    return %arg0, %c0_i32, %c0_i32_0, %c0_i32_1 : i32, i32, i32, i32
  }
  func.func @transform_1(%arg0: i32, %arg1: i32) -> (i32, i32) {
    %c0_i32 = arith.constant 0 : i32
    %c0_i32_0 = arith.constant 0 : i32
    %c0_i32_1 = arith.constant 0 : i32
    return %c0_i32, %c0_i32_0 : i32, i32
  }
  func.func @transform_2(%arg0: i32, %arg1: i32) -> (i32, i32) {
    %c0_i32 = arith.constant 0 : i32
    %c0_i32_0 = arith.constant 0 : i32
    %c0_i32_1 = arith.constant 0 : i32
    return %c0_i32, %c0_i32_0 : i32, i32
  }
  func.func @transform_3(%arg0: i32, %arg1: i32) -> (i32, i32) {
    %c0_i32 = arith.constant 0 : i32
    %c0_i32_0 = arith.constant 0 : i32
    %c0_i32_1 = arith.constant 0 : i32
    return %c0_i32, %c0_i32_0 : i32, i32
  }
  func.func @transform_4(%arg0: i32, %arg1: i32) -> (i32, i32) {
    %c0_i32 = arith.constant 0 : i32
    %c0_i32_0 = arith.constant 0 : i32
    %c0_i32_1 = arith.constant 0 : i32
    return %c0_i32, %c0_i32_0 : i32, i32
  }
  func.func @transform_5(%arg0: i32, %arg1: i32) -> (i32, i32) {
    %c0_i32 = arith.constant 0 : i32
    %c0_i32_0 = arith.constant 0 : i32
    %c0_i32_1 = arith.constant 0 : i32
    return %c0_i32, %c0_i32_0 : i32, i32
  }
  func.func @transform_6(%arg0: i32, %arg1: i32) -> (i32, i32) {
    %c0_i32 = arith.constant 0 : i32
    %c0_i32_0 = arith.constant 0 : i32
    %c0_i32_1 = arith.constant 0 : i32
    return %c0_i32, %c0_i32_0 : i32, i32
  }
  func.func @transform_7(%arg0: i32, %arg1: i32) -> (i32, i32) {
    %c0_i32 = arith.constant 0 : i32
    %c0_i32_0 = arith.constant 0 : i32
    %c0_i32_1 = arith.constant 0 : i32
    return %c0_i32, %c0_i32_0 : i32, i32
  }
  func.func @transform_8(%arg0: i32, %arg1: i32) -> (i32, i32) {
    %c0_i32 = arith.constant 0 : i32
    %c0_i32_0 = arith.constant 0 : i32
    %c0_i32_1 = arith.constant 0 : i32
    return %c0_i32, %c0_i32_0 : i32, i32
  }
  func.func @transform_9(%arg0: i32, %arg1: i32) -> (i32, i32) {
    %c0_i32 = arith.constant 0 : i32
    %c0_i32_0 = arith.constant 0 : i32
    %c0_i32_1 = arith.constant 0 : i32
    return %c0_i32, %c0_i32_0 : i32, i32
  }
  func.func @transform_10(%arg0: i32, %arg1: i32) -> (i32, i32, i32) {
    %c0_i32 = arith.constant 0 : i32
    %c0_i32_0 = arith.constant 0 : i32
    return %arg0, %c0_i32, %arg1 : i32, i32, i32
  }
}

</mosaic_0001>

<bundles_post_ra>
// kernel: tpu_custom_call.1
= control target key start
LH: loop header
LB: loop body
LE: loop exit
PB: predicated region body
PF: predicated region fallthrough
CT: control target
= control target key end

     0   :  { %s6946_s0 = inlined_call_operand.vmem [shape: f32[2,16,16,4], index: 0, kind: input, shape index: {}]   ;;  %s6947_s1 = inlined_call_operand.vmem [shape: f32[49,4], index: 1, kind: input, shape index: {}]   ;;  %s6948_s2 = inlined_call_operand.vmem [shape: f32[1,4], index: 2, kind: input, shape index: {}]   ;;  %s6949_s3 = inlined_call_operand.vmem [shape: f32[1,4], index: 3, kind: input, shape index: {}]   ;;  %s6950_s4 = inlined_call_operand.vmem [shape: f32[1,4], index: 4, kind: input, shape index: {}]   ;;  %s6951_s5 = inlined_call_operand.vmem [shape: bf16[4,16], index: 5, kind: input, shape index: {}]   ;;  %s6952_s6 = inlined_call_operand.vmem [shape: f32[1,16], index: 6, kind: input, shape index: {}]   ;;  %s6953_s7 = inlined_call_operand.vmem [shape: bf16[8,16], index: 7, kind: input, shape index: {}]   ;;  %s6954_s8 = inlined_call_operand.vmem [shape: f32[8,4], index: 8, kind: input, shape index: {}]   ;;  %s6955_s9 = inlined_call_operand.vmem [shape: f32[8,1], index: 9, kind: input, shape index: {}]   ;;  %s6956_s10 = inlined_call_operand.hbm [shape: f32[2,8,256], index: 10, kind: output, shape index: {}]  }
   0x1   :  { %7041 = sst [smem:[#allocation34_spill]] %s6946_s0 }
   0x2   :  { %7042 = sst [smem:[#allocation35_spill]] %s6947_s1 }
   0x3   :  { %15 = vsyncpa [#allocation6], 0 }
   0x4   :  { %17 = vsyncpa [#allocation6 + $0x1], 0  ;;  %s4229_s13 = smov 0   ;;  %s4231_s14 = smov 0  }
   0x5   :  { %s4233_s15 = smov 0   ;;  %s4235_s16 = smov 0  }
   0x6   :  { %s4237_s17 = smov 0   ;;  %s4239_s18 = smov 0  }
   0x7 LB: > { %7043 = sst [smem:[#allocation8_spill]] %s4148_s17  ;;  %s3628_s19 = sadd.s32 4294967295, %s4152_s18   ;;  %s4152_s18 = sphi %s4239_s18, %s23_s18   ;;  %s4148_s17 = sphi %s4237_s17, %s7246_s17   ;;  %s4144_s16 = sphi %s4235_s16, %s7245_s16   ;;  %s4140_s15 = sphi %s4233_s15, %s7249_s15   ;;  %s4136_s14 = sphi %s4231_s14, %s7248_s14   ;;  %s4132_s13 = sphi %s4229_s13, %s7247_s13  }
   0x8   : > { %s3629_s20 = sadd.s32 4294967294, %s4152_s18   ;;  %s35_s21 = sadd.s32 1, %s4148_s17 }
   0x9   : > { %s259_s22 = sadd.s32 1, %s4140_s15  ;;  %p37_p0 = scmp.ge.s32.totalorder %s35_s21, 2 }
   0xa   : > { %p269_p1 = scmp.ne.s32.totalorder %s4140_s15, %s4136_s14  ;;  %p270_p2 = scmp.eq.s32.totalorder %s3628_s19, 1 }
   0xb   : > { %p275_p3 = scmp.ne.s32.totalorder %s4136_s14, %s4132_s13  ;;  %s7251_s21 = smov (%p37_p0, %s35_s21), 0 }
   0xc   : > { %7044 = sst [smem:[#allocation9_spill]] %s7251_s21  ;;  %p4269_p4 = por %p270_p2, %p269_p1 }
   0xd   : > { %p276_p5 = scmp.eq.s32.totalorder %s3629_s20, 1  ;;  %s254_s24 = ssub.s32 %s4148_s17, %s7251_s21 }
   0xe   : > { %p3632_p6 = scmp.ge.s32.totalorder %s4152_s18, 1  ;;  %p257_p7 = scmp.eq.s32.totalorder %s254_s24, 0 }
   0xf   : > { %p4276_p8 = por %p276_p5, %p275_p3  ;;  %p329_p9 = scmp.lt.s32.totalorder %s4152_s18, 3 }
  0x10   : > { %s4282_s26 = scalar_select %p257_p7, %s4140_s15, %s259_s22  }
  0x11   : > { %p330_p10 = pnand %p3632_p6, %p329_p9 }
  0x13   : > { %333 = sbr.rel (%p330_p10) target bundleno = 1623 (0x657), region = 60 }
  0x1a   : > { %s6957_s27 = sand.u32 1, %s4136_s14   ;;  %vm378_vm0 = vcmask 31744   ;;  %s7047_s1 = sld [smem:[#allocation35_spill]]  ;;  %v4170_v3 = vmov 0.0   ;;  %v4384_v8 = vld [vmem:[%s6948_s2] ss:$0 sm:$0xff] }
  0x1b   : > { %s4302_s20 = sshll.u32 %s6957_s27, 4  ;;  %379 = vst.msk [vmem:[#allocation2] sm:$0xff] %vm378_vm0, %v4170_v3  ;;  %380 = vst.msk [vmem:[#allocation2 + $0x8] sm:$0xff] %vm378_vm0, %v4170_v3  ;;  %p367_p11 = scmp.lt.s32.totalorder %s4144_s16, 1 }
  0x1c   : > { %381 = vst.msk [vmem:[#allocation2 + $0x10] sm:$0xff] %vm378_vm0, %v4170_v3  ;;  %382 = vst.msk [vmem:[#allocation2 + $0x18] sm:$0xff] %vm378_vm0, %v4170_v3  ;;  %s7056_s0 = sld [smem:[#allocation34_spill]]  ;;  %s4457_s21 = scalar_lea.vmem [#allocation5], %s4302_s20 }
  0x1d   : > { %383 = vst.msk [vmem:[#allocation2 + $0x20] sm:$0xff] %vm378_vm0, %v4170_v3  ;;  %384 = vst.msk [vmem:[#allocation2 + $0x28] sm:$0xff] %vm378_vm0, %v4170_v3  ;;  %s368_s24 = scalar_select %p367_p11, %s4144_s16, 1 }
  0x1e   : > { %385 = vst.msk [vmem:[#allocation2 + $0x30] sm:$0xff] %vm378_vm0, %v4170_v3  ;;  %386 = vst.msk [vmem:[#allocation2 + $0x38] sm:$0xff] %vm378_vm0, %v4170_v3  ;;  %s4459_s27 = smov 0.0   ;;  %s4461_s30 = smov 0  }
  0x1f   : > { %387 = vst.msk [vmem:[#allocation2 + $0x40] sm:$0xff] %vm378_vm0, %v4170_v3  ;;  %388 = vst.msk [vmem:[#allocation2 + $0x48] sm:$0xff] %vm378_vm0, %v4170_v3  ;;  %s3732_s28 = sshll.u32 %s368_s24, 8 }
  0x20   : > { %v4288_v0 = vld [vmem:[%s7047_s1] sm:$0xff]  ;;  %v4293_v1 = vld [vmem:[%s7047_s1 + $0x8] sm:$0xff]  ;;  %v4298_v2 = vld [vmem:[%s7047_s1 + $0x10] sm:$0xff]  ;;  %389 = vst.msk [vmem:[#allocation2 + $0x50] sm:$0xff] %vm378_vm0, %v4170_v3 }
  0x21   : > { %7048 = vst [vmem:[#allocation10_spill] sm:$0xff] %v4288_v0  ;;  %7049 = vst [vmem:[#allocation11_spill] sm:$0xff] %v4293_v1  ;;  %v4363_v4 = vld [vmem:[%s7047_s1 + $0x18] sm:$0xff]  ;;  %v4368_v5 = vld [vmem:[%s7047_s1 + $0x20] sm:$0xff] }
  0x22   : > { %7050 = vst [vmem:[#allocation12_spill] sm:$0xff] %v4298_v2  ;;  %390 = vst.msk [vmem:[#allocation2 + $0x58] sm:$0xff] %vm378_vm0, %v4170_v3  ;;  %v4373_v6 = vld [vmem:[%s7047_s1 + $0x28] sm:$0xff]  ;;  %v4379_v7 = vld [vmem:[%s7047_s1 + $0x30] ss:$0 sm:$0xff]  ;;  %s4390_s17 = scalar_lea.vmem %s7056_s0, %s3732_s28 }
  0x23   : > { %392 = vst.msk [vmem:[#allocation2 + $0x260] sm:$0xff] %vm378_vm0, %v4170_v3  ;;  %393 = vst.msk [vmem:[#allocation2 + $0x268] sm:$0xff] %vm378_vm0, %v4170_v3  ;;  %v437_v9 = vld [vmem:[%s4390_s17] sm:$0xff]  ;;  %v438_v10 = vld [vmem:[%s4390_s17 + $0x8] sm:$0xff] }
  0x24   : > { %394 = vst.msk [vmem:[#allocation2 + $0x270] sm:$0xff] %vm378_vm0, %v4170_v3  ;;  %395 = vst.msk [vmem:[#allocation2 + $0x278] sm:$0xff] %vm378_vm0, %v4170_v3  ;;  %v439_v11 = vld [vmem:[%s4390_s17 + $0x10] sm:$0xff]  ;;  %v440_v12 = vld [vmem:[%s4390_s17 + $0x18] sm:$0xff] }
  0x25   : > { %396 = vst.msk [vmem:[#allocation2 + $0x280] sm:$0xff] %vm378_vm0, %v4170_v3  ;;  %397 = vst.msk [vmem:[#allocation2 + $0x288] sm:$0xff] %vm378_vm0, %v4170_v3  ;;  %v441_v13 = vld [vmem:[%s4390_s17 + $0x20] sm:$0xff]  ;;  %v442_v14 = vld [vmem:[%s4390_s17 + $0x28] sm:$0xff] }
  0x26   : > { %398 = vst.msk [vmem:[#allocation2 + $0x290] sm:$0xff] %vm378_vm0, %v4170_v3  ;;  %399 = vst.msk [vmem:[#allocation2 + $0x298] sm:$0xff] %vm378_vm0, %v4170_v3  ;;  %v443_v15 = vld [vmem:[%s4390_s17 + $0x30] sm:$0xff]  ;;  %v444_v16 = vld [vmem:[%s4390_s17 + $0x38] sm:$0xff] }
  0x27   : > { %400 = vst.msk [vmem:[#allocation2 + $0x2a0] sm:$0xff] %vm378_vm0, %v4170_v3  ;;  %401 = vst.msk [vmem:[#allocation2 + $0x2a8] sm:$0xff] %vm378_vm0, %v4170_v3  ;;  %v445_v17 = vld [vmem:[%s4390_s17 + $0x40] sm:$0xff]  ;;  %v446_v18 = vld [vmem:[%s4390_s17 + $0x48] sm:$0xff] }
  0x28   : > { %402 = vst.msk [vmem:[#allocation2 + $0x2b0] sm:$0xff] %vm378_vm0, %v4170_v3  ;;  %403 = vst.msk [vmem:[#allocation2 + $0x2b8] sm:$0xff] %vm378_vm0, %v4170_v3  ;;  %v447_v19 = vld [vmem:[%s4390_s17 + $0x50] sm:$0xff]  ;;  %v448_v20 = vld [vmem:[%s4390_s17 + $0x58] sm:$0xff] }
  0x29   : > { %405 = vst.msk [vmem:[#allocation2 + $0x60] sm:$0xff] %vm378_vm0, %v4170_v3  ;;  %406 = vst.msk [vmem:[#allocation2 + $0x80] sm:$0xff] %vm378_vm0, %v4170_v3  ;;  %v449_v21 = vld [vmem:[%s4390_s17 + $0x60] sm:$0xff]  ;;  %v450_v22 = vld [vmem:[%s4390_s17 + $0x68] sm:$0xff] }
  0x2a   : > { %407 = vst.msk [vmem:[#allocation2 + $0xa0] sm:$0xff] %vm378_vm0, %v4170_v3  ;;  %408 = vst.msk [vmem:[#allocation2 + $0xc0] sm:$0xff] %vm378_vm0, %v4170_v3  ;;  %v451_v23 = vld [vmem:[%s4390_s17 + $0x70] sm:$0xff]  ;;  %v452_v24 = vld [vmem:[%s4390_s17 + $0x78] sm:$0xff] }
  0x2b   : > { %409 = vst.msk [vmem:[#allocation2 + $0xe0] sm:$0xff] %vm378_vm0, %v4170_v3  ;;  %410 = vst.msk [vmem:[#allocation2 + $0x100] sm:$0xff] %vm378_vm0, %v4170_v3  ;;  %v453_v25 = vld [vmem:[%s4390_s17 + $0x80] sm:$0xff]  ;;  %v454_v26 = vld [vmem:[%s4390_s17 + $0x88] sm:$0xff] }
  0x2c   : > { %411 = vst.msk [vmem:[#allocation2 + $0x120] sm:$0xff] %vm378_vm0, %v4170_v3  ;;  %412 = vst.msk [vmem:[#allocation2 + $0x140] sm:$0xff] %vm378_vm0, %v4170_v3  ;;  %v455_v27 = vld [vmem:[%s4390_s17 + $0x90] sm:$0xff]  ;;  %v456_v28 = vld [vmem:[%s4390_s17 + $0x98] sm:$0xff] }
  0x2d   : > { %413 = vst.msk [vmem:[#allocation2 + $0x160] sm:$0xff] %vm378_vm0, %v4170_v3  ;;  %414 = vst.msk [vmem:[#allocation2 + $0x180] sm:$0xff] %vm378_vm0, %v4170_v3  ;;  %v457_v29 = vld [vmem:[%s4390_s17 + $0xa0] sm:$0xff]  ;;  %v458_v30 = vld [vmem:[%s4390_s17 + $0xa8] sm:$0xff] }
  0x2e   : > { %415 = vst.msk [vmem:[#allocation2 + $0x1a0] sm:$0xff] %vm378_vm0, %v4170_v3  ;;  %416 = vst.msk [vmem:[#allocation2 + $0x1c0] sm:$0xff] %vm378_vm0, %v4170_v3  ;;  %v459_v31 = vld [vmem:[%s4390_s17 + $0xb0] sm:$0xff]  ;;  %v460_v32 = vld [vmem:[%s4390_s17 + $0xb8] sm:$0xff] }
  0x2f   : > { %417 = vst.msk [vmem:[#allocation2 + $0x1e0] sm:$0xff] %vm378_vm0, %v4170_v3  ;;  %418 = vst.msk [vmem:[#allocation2 + $0x200] sm:$0xff] %vm378_vm0, %v4170_v3  ;;  %v461_v33 = vld [vmem:[%s4390_s17 + $0xc0] sm:$0xff]  ;;  %v462_v34 = vld [vmem:[%s4390_s17 + $0xc8] sm:$0xff] }
  0x30   : > { %419 = vst.msk [vmem:[#allocation2 + $0x220] sm:$0xff] %vm378_vm0, %v4170_v3  ;;  %420 = vst.msk [vmem:[#allocation2 + $0x240] sm:$0xff] %vm378_vm0, %v4170_v3  ;;  %v463_v35 = vld [vmem:[%s4390_s17 + $0xd0] sm:$0xff]  ;;  %v464_v36 = vld [vmem:[%s4390_s17 + $0xd8] sm:$0xff] }
  0x31   : > { %421 = vst.msk [vmem:[#allocation2 + $0x78] sm:$0xff] %vm378_vm0, %v4170_v3  ;;  %422 = vst.msk [vmem:[#allocation2 + $0x98] sm:$0xff] %vm378_vm0, %v4170_v3  ;;  %v465_v37 = vld [vmem:[%s4390_s17 + $0xe0] sm:$0xff]  ;;  %v466_v38 = vld [vmem:[%s4390_s17 + $0xe8] sm:$0xff] }
  0x32   : > { %423 = vst.msk [vmem:[#allocation2 + $0xb8] sm:$0xff] %vm378_vm0, %v4170_v3  ;;  %424 = vst.msk [vmem:[#allocation2 + $0xd8] sm:$0xff] %vm378_vm0, %v4170_v3  ;;  %v467_v39 = vld [vmem:[%s4390_s17 + $0xf0] sm:$0xff]  ;;  %v468_v40 = vld [vmem:[%s4390_s17 + $0xf8] sm:$0xff] }
  0x33   : > { %425 = vst.msk [vmem:[#allocation2 + $0xf8] sm:$0xff] %vm378_vm0, %v4170_v3  ;;  %426 = vst.msk [vmem:[#allocation2 + $0x118] sm:$0xff] %vm378_vm0, %v4170_v3 }
  0x34   : > { %427 = vst.msk [vmem:[#allocation2 + $0x138] sm:$0xff] %vm378_vm0, %v4170_v3  ;;  %428 = vst.msk [vmem:[#allocation2 + $0x158] sm:$0xff] %vm378_vm0, %v4170_v3 }
  0x35   : > { %429 = vst.msk [vmem:[#allocation2 + $0x178] sm:$0xff] %vm378_vm0, %v4170_v3  ;;  %430 = vst.msk [vmem:[#allocation2 + $0x198] sm:$0xff] %vm378_vm0, %v4170_v3 }
  0x36   : > { %431 = vst.msk [vmem:[#allocation2 + $0x1b8] sm:$0xff] %vm378_vm0, %v4170_v3  ;;  %432 = vst.msk [vmem:[#allocation2 + $0x1d8] sm:$0xff] %vm378_vm0, %v4170_v3 }
  0x37   : > { %433 = vst.msk [vmem:[#allocation2 + $0x1f8] sm:$0xff] %vm378_vm0, %v4170_v3  ;;  %434 = vst.msk [vmem:[#allocation2 + $0x218] sm:$0xff] %vm378_vm0, %v4170_v3 }
  0x38   : > { %435 = vst.msk [vmem:[#allocation2 + $0x238] sm:$0xff] %vm378_vm0, %v4170_v3  ;;  %436 = vst.msk [vmem:[#allocation2 + $0x258] sm:$0xff] %vm378_vm0, %v4170_v3 }
  0x39   : > { %7051 = vst [vmem:[#allocation13_spill] sm:$0xff] %v4363_v4  ;;  %7052 = vst [vmem:[#allocation14_spill] sm:$0xff] %v4368_v5 }
  0x3a   : > { %7053 = vst [vmem:[#allocation15_spill] sm:$0xff] %v4373_v6  ;;  %7054 = vst [vmem:[#allocation16_spill] sm:$0xff] %v4379_v7 }
  0x3b   : > { %7055 = vst [vmem:[#allocation17_spill] sm:$0xff] %v4384_v8  ;;  %469 = vst.msk [vmem:[#allocation2 + $0x68] sm:$0xff] %vm378_vm0, %v437_v9 }
  0x3c   : > { %470 = vst.msk [vmem:[#allocation2 + $0x70] sm:$0xff] %vm378_vm0, %v438_v10  ;;  %471 = vst.msk [vmem:[#allocation2 + $0x88] sm:$0xff] %vm378_vm0, %v439_v11 }
  0x3d   : > { %472 = vst.msk [vmem:[#allocation2 + $0x90] sm:$0xff] %vm378_vm0, %v440_v12  ;;  %473 = vst.msk [vmem:[#allocation2 + $0xa8] sm:$0xff] %vm378_vm0, %v441_v13 }
  0x3e   : > { %474 = vst.msk [vmem:[#allocation2 + $0xb0] sm:$0xff] %vm378_vm0, %v442_v14  ;;  %475 = vst.msk [vmem:[#allocation2 + $0xc8] sm:$0xff] %vm378_vm0, %v443_v15 }
  0x3f   : > { %476 = vst.msk [vmem:[#allocation2 + $0xd0] sm:$0xff] %vm378_vm0, %v444_v16  ;;  %477 = vst.msk [vmem:[#allocation2 + $0xe8] sm:$0xff] %vm378_vm0, %v445_v17 }
  0x40   : > { %478 = vst.msk [vmem:[#allocation2 + $0xf0] sm:$0xff] %vm378_vm0, %v446_v18  ;;  %479 = vst.msk [vmem:[#allocation2 + $0x108] sm:$0xff] %vm378_vm0, %v447_v19 }
  0x41   : > { %480 = vst.msk [vmem:[#allocation2 + $0x110] sm:$0xff] %vm378_vm0, %v448_v20  ;;  %481 = vst.msk [vmem:[#allocation2 + $0x128] sm:$0xff] %vm378_vm0, %v449_v21 }
  0x42   : > { %482 = vst.msk [vmem:[#allocation2 + $0x130] sm:$0xff] %vm378_vm0, %v450_v22  ;;  %483 = vst.msk [vmem:[#allocation2 + $0x148] sm:$0xff] %vm378_vm0, %v451_v23 }
  0x43   : > { %484 = vst.msk [vmem:[#allocation2 + $0x150] sm:$0xff] %vm378_vm0, %v452_v24  ;;  %485 = vst.msk [vmem:[#allocation2 + $0x168] sm:$0xff] %vm378_vm0, %v453_v25 }
  0x44   : > { %486 = vst.msk [vmem:[#allocation2 + $0x170] sm:$0xff] %vm378_vm0, %v454_v26  ;;  %487 = vst.msk [vmem:[#allocation2 + $0x188] sm:$0xff] %vm378_vm0, %v455_v27 }
  0x45   : > { %488 = vst.msk [vmem:[#allocation2 + $0x190] sm:$0xff] %vm378_vm0, %v456_v28  ;;  %489 = vst.msk [vmem:[#allocation2 + $0x1a8] sm:$0xff] %vm378_vm0, %v457_v29 }
  0x46   : > { %490 = vst.msk [vmem:[#allocation2 + $0x1b0] sm:$0xff] %vm378_vm0, %v458_v30  ;;  %491 = vst.msk [vmem:[#allocation2 + $0x1c8] sm:$0xff] %vm378_vm0, %v459_v31 }
  0x47   : > { %492 = vst.msk [vmem:[#allocation2 + $0x1d0] sm:$0xff] %vm378_vm0, %v460_v32  ;;  %493 = vst.msk [vmem:[#allocation2 + $0x1e8] sm:$0xff] %vm378_vm0, %v461_v33 }
  0x48   : > { %494 = vst.msk [vmem:[#allocation2 + $0x1f0] sm:$0xff] %vm378_vm0, %v462_v34  ;;  %495 = vst.msk [vmem:[#allocation2 + $0x208] sm:$0xff] %vm378_vm0, %v463_v35 }
  0x49   : > { %496 = vst.msk [vmem:[#allocation2 + $0x210] sm:$0xff] %vm378_vm0, %v464_v36  ;;  %497 = vst.msk [vmem:[#allocation2 + $0x228] sm:$0xff] %vm378_vm0, %v465_v37 }
  0x4a   : > { %498 = vst.msk [vmem:[#allocation2 + $0x230] sm:$0xff] %vm378_vm0, %v466_v38  ;;  %499 = vst.msk [vmem:[#allocation2 + $0x248] sm:$0xff] %vm378_vm0, %v467_v39 }
  0x4b   : > { %500 = vst.msk [vmem:[#allocation2 + $0x250] sm:$0xff] %vm378_vm0, %v468_v40 }
  0x4c LB: >> { %v7057_v0 = vld [vmem:[#allocation10_spill] sm:$0xff]  ;;  %v547_v41 = vlaneseq  ;;  %s3733_s17 = sshll.u32 %s4160_s30, 8  ;;  %v7064_v1 = vld [vmem:[#allocation11_spill] sm:$0xff]  ;;  %v7066_v2 = vld [vmem:[#allocation12_spill] sm:$0xff]  ;;  %s3640_s11 = sshll.u32 %s4160_s30, 7  ;;  %s4156_s27 = sphi %s4459_s27, %s7240_s27   ;;  %s4160_s30 = sphi %s4461_s30, %s514_s30  }
  0x4d   : >> { %s4476_s20 = scalar_lea.vmem [#allocation2], %s3733_s17  ;;  %v7068_v4 = vld [vmem:[#allocation13_spill] sm:$0xff]  ;;  %v7070_v5 = vld [vmem:[#allocation14_spill] sm:$0xff]  ;;  %s2502_s12 = scalar_lea.vmem [#allocation3], %s3640_s11 }
  0x4e   : >> { %v548_v42 = vshrl.u32 %v547_v41, 7  ;;  %s514_s30 = sadd.s32 1, %s4160_s30  }
  0x4f   : >> { %p511_p12 = scmp.ge.s32.totalorder %s514_s30, 2  }
  0x50   : >> { %v4470_v43 = vsub.s32 0, %v548_v42  ;;  %v4472_v44 = vsub.s32 7, %v548_v42  ;;  %v4474_v45 = vsub.s32 6, %v548_v42  ;;  %v4480_v48 = vsub.s32 5, %v548_v42  ;;  %s6501_s28 = smov (%p511_p12), 0.0   ;;  %s6503_s29 = smov (%p511_p12), 0  }
  0x51   : >> { %v4482_v49 = vsub.s32 4, %v548_v42  ;;  %v4484_v50 = vsub.s32 3, %v548_v42  ;;  %v4496_v56 = vsub.s32 2, %v548_v42  ;;  %v4519_v63 = vsub.s32 1, %v548_v42 }
  0x52   : >> { %7058 = vst [vmem:[#allocation18_spill] sm:$0xff] %v4470_v43  ;;  %7059 = vst [vmem:[#allocation19_spill] sm:$0xff] %v4472_v44  ;;  %v519_v46 = vld [vmem:[%s4476_s20 + $0x5] sm:$0xff]  ;;  %v520_v47 = vld [vmem:[%s4476_s20 + $0xd] sm:$0xff]  ;;  %v550_v53 = vrot.slane %v7057_v0, %v4470_v43  ;;  %v586_v54 = vrot.slane %v7057_v0, %v4472_v44  ;;  %v4494_v55 = vrot.slane %v7064_v1, %v4474_v45 }
  0x53   : >> { %7060 = vst [vmem:[#allocation20_spill] sm:$0xff] %v4474_v45  ;;  %7061 = vst [vmem:[#allocation21_spill] sm:$0xff] %v4480_v48  ;;  %v521_v51 = vld [vmem:[%s4476_s20 + $0x25] sm:$0xff]  ;;  %v522_v52 = vld [vmem:[%s4476_s20 + $0x2d] sm:$0xff]  ;;  %v4509_v60 = vrot.slane %v7066_v2, %v4480_v48  ;;  %v4513_v61 = vrot.slane %v7068_v4, %v4482_v49  ;;  %v4517_v62 = vrot.slane %v7070_v5, %v4484_v50 }
  0x54   : >> { %7062 = vst [vmem:[#allocation22_spill] sm:$0xff] %v4482_v49  ;;  %7063 = vst [vmem:[#allocation23_spill] sm:$0xff] %v4484_v50  ;;  %v4499_v57 = vld [vmem:[%s4476_s20 + $0x45] sm:$0xff]  ;;  %v4502_v58 = vld [vmem:[%s4476_s20 + $0x4d] sm:$0xff]  ;;  %v551_v11 = vmul.f32 %v550_v53, %v519_v46  ;;  %v552_v12 = vmul.f32 %v550_v53, %v520_v47  ;;  %v553_v13 = vmul.f32 %v550_v53, %v521_v51 }
  0x55   : >> { %7065 = vst [vmem:[#allocation24_spill] sm:$0xff] %v4496_v56  ;;  %v4505_v59 = vld [vmem:[%s4476_s20 + $0x65] sm:$0xff]  ;;  %7067 = vst [vmem:[#allocation25_spill] sm:$0xff] %v4509_v60  ;;  %v4522_v3 = vld [vmem:[%s4476_s20 + $0x6d] sm:$0xff]  ;;  %v554_v14 = vmul.f32 %v550_v53, %v522_v52  ;;  %v555_v18 = vmul.f32 %v550_v53, %v4499_v57  ;;  %v556_v19 = vmul.f32 %v550_v53, %v4502_v58 }
  0x56   : >> { %7069 = vst [vmem:[#allocation26_spill] sm:$0xff] %v4513_v61  ;;  %7071 = vst [vmem:[#allocation27_spill] sm:$0xff] %v4517_v62  ;;  %v4525_v9 = vld [vmem:[%s4476_s20 + $0x85] sm:$0xff]  ;;  %v4528_v10 = vld [vmem:[%s4476_s20 + $0x8d] sm:$0xff]  ;;  %v557_v20 = vmul.f32 %v550_v53, %v4505_v59  ;;  %v558_v21 = vmul.f32 %v550_v53, %v4522_v3  ;;  %v587_v33 = vmul.f32 %v586_v54, %v521_v51 }
  0x57   : >> { %7072 = vst [vmem:[#allocation28_spill] sm:$0xff] %v4519_v63  ;;  %v4531_v15 = vld [vmem:[%s4476_s20 + $0xa5] sm:$0xff]  ;;  %v4534_v16 = vld [vmem:[%s4476_s20 + $0xad] sm:$0xff]  ;;  %v559_v25 = vmul.f32 %v550_v53, %v4525_v9  ;;  %v560_v26 = vmul.f32 %v550_v53, %v4528_v10  ;;  %v588_v34 = vmul.f32 %v586_v54, %v522_v52  ;;  %v589_v35 = vmul.f32 %v586_v54, %v4499_v57 }
  0x58   : >> { %v4537_v17 = vld [vmem:[%s4476_s20 + $0xc5] sm:$0xff]  ;;  %v4544_v22 = vld [vmem:[%s4476_s20 + $0xcd] sm:$0xff]  ;;  %v561_v27 = vmul.f32 %v550_v53, %v4531_v15  ;;  %v562_v28 = vmul.f32 %v550_v53, %v4534_v16  ;;  %v590_v36 = vmul.f32 %v586_v54, %v4502_v58  ;;  %v591_v37 = vmul.f32 %v586_v54, %v4505_v59 }
  0x59   : >> { %v4547_v23 = vld [vmem:[%s4476_s20 + $0xe5] sm:$0xff]  ;;  %v4550_v24 = vld [vmem:[%s4476_s20 + $0xed] sm:$0xff]  ;;  %v563_v29 = vmul.f32 %v550_v53, %v4537_v17  ;;  %v564_v30 = vmul.f32 %v550_v53, %v4544_v22  ;;  %v592_v38 = vmul.f32 %v586_v54, %v4522_v3  ;;  %v593_v39 = vmul.f32 %v586_v54, %v4525_v9 }
  0x5a   : >> { %v565_v31 = vmul.f32 %v550_v53, %v4547_v23  ;;  %v566_v32 = vmul.f32 %v550_v53, %v4550_v24  ;;  %v594_v40 = vmul.f32 %v586_v54, %v4528_v10  ;;  %v4567_v41 = vld [vmem:[%s4476_s20 + $0x105] sm:$0xff]  ;;  %v4570_v42 = vld [vmem:[%s4476_s20 + $0x10d] sm:$0xff]  ;;  %v595_v46 = vmul.f32 %v586_v54, %v4531_v15 }
  0x5b   : >> { %v596_v47 = vmul.f32 %v586_v54, %v4534_v16  ;;  %v597_v51 = vmul.f32 %v586_v54, %v4537_v17  ;;  %v598_v52 = vmul.f32 %v586_v54, %v4544_v22  ;;  %v599_v53 = vmul.f32 %v586_v54, %v4547_v23 }
  0x5c   : >> { %v600_v8 = vmul.f32 %v586_v54, %v4550_v24  ;;  %v601_v7 = vmul.f32 %v586_v54, %v4567_v41  ;;  %v602_v50 = vmul.f32 %v586_v54, %v4570_v42  ;;  %v603_v5 = vadd.f32 %v587_v33, %v551_v11 }
  0x5d   : >> { %v604_v49 = vadd.f32 %v588_v34, %v552_v12  ;;  %v605_v4 = vadd.f32 %v589_v35, %v553_v13  ;;  %v606_v48 = vadd.f32 %v590_v36, %v554_v14  ;;  %v607_v2 = vadd.f32 %v591_v37, %v555_v18 }
  0x5e   : >> { %v608_v45 = vadd.f32 %v592_v38, %v556_v19  ;;  %v609_v44 = vadd.f32 %v593_v39, %v557_v20  ;;  %v610_v1 = vadd.f32 %v594_v40, %v558_v21  ;;  %v611_v43 = vadd.f32 %v595_v46, %v559_v25 }
  0x5f   : >> { %v612_v0 = vadd.f32 %v596_v47, %v560_v26  ;;  %v613_v63 = vadd.f32 %v597_v51, %v561_v27  ;;  %v614_v6 = vadd.f32 %v598_v52, %v562_v28  ;;  %v615_v56 = vadd.f32 %v599_v53, %v563_v29 }
  0x60   : >> { %v616_v62 = vadd.f32 %v600_v8, %v564_v30  ;;  %v617_v61 = vadd.f32 %v601_v7, %v565_v31  ;;  %v618_v60 = vadd.f32 %v602_v50, %v566_v32  ;;  %v623_v54 = vmul.f32 %v4494_v55, %v4499_v57  ;;  %v4597_v57 = vld [vmem:[%s4476_s20 + $0x125] sm:$0xff] }
  0x61   : >> { %v624_v11 = vmul.f32 %v4494_v55, %v4502_v58  ;;  %v625_v12 = vmul.f32 %v4494_v55, %v4505_v59  ;;  %v626_v13 = vmul.f32 %v4494_v55, %v4522_v3  ;;  %v627_v14 = vmul.f32 %v4494_v55, %v4525_v9  ;;  %v4600_v58 = vld [vmem:[%s4476_s20 + $0x12d] sm:$0xff] }
  0x62   : >> { %v628_v8 = vmul.f32 %v4494_v55, %v4528_v10  ;;  %v629_v7 = vmul.f32 %v4494_v55, %v4531_v15  ;;  %v630_v50 = vmul.f32 %v4494_v55, %v4534_v16  ;;  %v631_v18 = vmul.f32 %v4494_v55, %v4537_v17 }
  0x63   : >> { %v632_v19 = vmul.f32 %v4494_v55, %v4544_v22  ;;  %v633_v20 = vmul.f32 %v4494_v55, %v4547_v23  ;;  %v634_v21 = vmul.f32 %v4494_v55, %v4550_v24  ;;  %v635_v25 = vmul.f32 %v4494_v55, %v4567_v41 }
  0x64   : >> { %v636_v26 = vmul.f32 %v4494_v55, %v4570_v42  ;;  %v637_v27 = vmul.f32 %v4494_v55, %v4597_v57  ;;  %v638_v28 = vmul.f32 %v4494_v55, %v4600_v58  ;;  %v639_v29 = vadd.f32 %v623_v54, %v603_v5  ;;  %v7073_v55 = vld [vmem:[#allocation25_spill] sm:$0xff] }
  0x65   : >> { %v640_v30 = vadd.f32 %v624_v11, %v604_v49  ;;  %v641_v31 = vadd.f32 %v625_v12, %v605_v4  ;;  %v642_v32 = vadd.f32 %v626_v13, %v606_v48  ;;  %v643_v33 = vadd.f32 %v627_v14, %v607_v2  ;;  %v4638_v48 = vld [vmem:[%s4476_s20 + $0x14d] sm:$0xff] }
  0x66   : >> { %v644_v34 = vadd.f32 %v628_v8, %v608_v45  ;;  %v645_v35 = vadd.f32 %v629_v7, %v609_v44  ;;  %v646_v36 = vadd.f32 %v630_v50, %v610_v1  ;;  %v647_v37 = vadd.f32 %v631_v18, %v611_v43  ;;  %v4635_v45 = vld [vmem:[%s4476_s20 + $0x145] sm:$0xff] }
  0x67   : >> { %v648_v38 = vadd.f32 %v632_v19, %v612_v0  ;;  %v649_v39 = vadd.f32 %v633_v20, %v613_v63  ;;  %v650_v40 = vadd.f32 %v634_v21, %v614_v6  ;;  %v651_v46 = vadd.f32 %v635_v25, %v615_v56 }
  0x68   : >> { %v652_v47 = vadd.f32 %v636_v26, %v616_v62  ;;  %v653_v51 = vadd.f32 %v637_v27, %v617_v61  ;;  %v654_v52 = vadd.f32 %v638_v28, %v618_v60  ;;  %v659_v5 = vmul.f32 %v7073_v55, %v4505_v59  ;;  %v7074_v28 = vld [vmem:[#allocation26_spill] sm:$0xff] }
  0x69   : >> { %v660_v4 = vmul.f32 %v7073_v55, %v4522_v3  ;;  %v661_v2 = vmul.f32 %v7073_v55, %v4525_v9  ;;  %v662_v1 = vmul.f32 %v7073_v55, %v4528_v10  ;;  %v663_v0 = vmul.f32 %v7073_v55, %v4531_v15 }
  0x6a   : >> { %v664_v6 = vmul.f32 %v7073_v55, %v4534_v16  ;;  %v665_v43 = vmul.f32 %v7073_v55, %v4537_v17  ;;  %v666_v44 = vmul.f32 %v7073_v55, %v4544_v22  ;;  %v667_v49 = vmul.f32 %v7073_v55, %v4547_v23 }
  0x6b   : >> { %v668_v56 = vmul.f32 %v7073_v55, %v4550_v24  ;;  %v669_v59 = vmul.f32 %v7073_v55, %v4567_v41  ;;  %v670_v60 = vmul.f32 %v7073_v55, %v4570_v42  ;;  %v671_v61 = vmul.f32 %v7073_v55, %v4597_v57 }
  0x6c   : >> { %v672_v62 = vmul.f32 %v7073_v55, %v4600_v58  ;;  %v673_v63 = vmul.f32 %v7073_v55, %v4635_v45  ;;  %v674_v3 = vmul.f32 %v7073_v55, %v4638_v48  ;;  %v675_v53 = vadd.f32 %v659_v5, %v639_v29 }
  0x6d   : >> { %v676_v54 = vadd.f32 %v660_v4, %v640_v30  ;;  %v677_v11 = vadd.f32 %v661_v2, %v641_v31  ;;  %v678_v12 = vadd.f32 %v662_v1, %v642_v32  ;;  %v679_v13 = vadd.f32 %v663_v0, %v643_v33 }
  0x6e   : >> { %v680_v14 = vadd.f32 %v664_v6, %v644_v34  ;;  %v681_v8 = vadd.f32 %v665_v43, %v645_v35  ;;  %v682_v7 = vadd.f32 %v666_v44, %v646_v36  ;;  %v683_v50 = vadd.f32 %v667_v49, %v647_v37  ;;  %v4673_v36 = vld [vmem:[%s4476_s20 + $0x165] sm:$0xff] }
  0x6f   : >> { %v684_v18 = vadd.f32 %v668_v56, %v648_v38  ;;  %v685_v19 = vadd.f32 %v669_v59, %v649_v39  ;;  %v686_v20 = vadd.f32 %v670_v60, %v650_v40  ;;  %v687_v21 = vadd.f32 %v671_v61, %v651_v46 }
  0x70   : >> { %v688_v25 = vadd.f32 %v672_v62, %v652_v47  ;;  %v689_v26 = vadd.f32 %v673_v63, %v653_v51  ;;  %v690_v27 = vadd.f32 %v674_v3, %v654_v52  ;;  %v695_v29 = vmul.f32 %v7074_v28, %v4525_v9  ;;  %v7075_v3 = vld [vmem:[#allocation27_spill] sm:$0xff] }
  0x71   : >> { %v696_v30 = vmul.f32 %v7074_v28, %v4528_v10  ;;  %v697_v31 = vmul.f32 %v7074_v28, %v4531_v15  ;;  %v698_v32 = vmul.f32 %v7074_v28, %v4534_v16  ;;  %v699_v33 = vmul.f32 %v7074_v28, %v4537_v17  ;;  %v4676_v10 = vld [vmem:[%s4476_s20 + $0x16d] sm:$0xff] }
  0x72   : >> { %v700_v34 = vmul.f32 %v7074_v28, %v4544_v22  ;;  %v701_v35 = vmul.f32 %v7074_v28, %v4547_v23  ;;  %v702_v9 = vmul.f32 %v7074_v28, %v4550_v24  ;;  %v703_v37 = vmul.f32 %v7074_v28, %v4567_v41 }
  0x73   : >> { %v704_v38 = vmul.f32 %v7074_v28, %v4570_v42  ;;  %v705_v39 = vmul.f32 %v7074_v28, %v4597_v57  ;;  %v706_v40 = vmul.f32 %v7074_v28, %v4600_v58  ;;  %v707_v46 = vmul.f32 %v7074_v28, %v4635_v45 }
  0x74   : >> { %v708_v47 = vmul.f32 %v7074_v28, %v4638_v48  ;;  %v709_v51 = vmul.f32 %v7074_v28, %v4673_v36  ;;  %v710_v52 = vmul.f32 %v7074_v28, %v4676_v10  ;;  %v711_v55 = vadd.f32 %v695_v29, %v675_v53 }
  0x75   : >> { %v712_v5 = vadd.f32 %v696_v30, %v676_v54  ;;  %v713_v4 = vadd.f32 %v697_v31, %v677_v11  ;;  %v714_v2 = vadd.f32 %v698_v32, %v678_v12  ;;  %v715_v1 = vadd.f32 %v699_v33, %v679_v13 }
  0x76   : >> { %v716_v0 = vadd.f32 %v700_v34, %v680_v14  ;;  %v717_v6 = vadd.f32 %v701_v35, %v681_v8  ;;  %v718_v43 = vadd.f32 %v702_v9, %v682_v7  ;;  %v719_v44 = vadd.f32 %v703_v37, %v683_v50  ;;  %v543_v7 = vld [vmem:[%s4476_s20 + $0x185] sm:$0xff] }
  0x77   : >> { %v720_v49 = vadd.f32 %v704_v38, %v684_v18  ;;  %v721_v56 = vadd.f32 %v705_v39, %v685_v19  ;;  %v722_v59 = vadd.f32 %v706_v40, %v686_v20  ;;  %v723_v60 = vadd.f32 %v707_v46, %v687_v21 }
  0x78   : >> { %v724_v61 = vadd.f32 %v708_v47, %v688_v25  ;;  %v725_v62 = vadd.f32 %v709_v51, %v689_v26  ;;  %v726_v63 = vadd.f32 %v710_v52, %v690_v27  ;;  %v731_v53 = vmul.f32 %v7075_v3, %v4531_v15  ;;  %v7076_v52 = vld [vmem:[#allocation24_spill] sm:$0xff] }
  0x79   : >> { %v732_v54 = vmul.f32 %v7075_v3, %v4534_v16  ;;  %v733_v11 = vmul.f32 %v7075_v3, %v4537_v17  ;;  %v734_v12 = vmul.f32 %v7075_v3, %v4544_v22  ;;  %v735_v13 = vmul.f32 %v7075_v3, %v4547_v23  ;;  %v544_v16 = vld [vmem:[%s4476_s20 + $0x18d] sm:$0xff] }
  0x7a   : >> { %v736_v14 = vmul.f32 %v7075_v3, %v4550_v24  ;;  %v737_v8 = vmul.f32 %v7075_v3, %v4567_v41  ;;  %v738_v15 = vmul.f32 %v7075_v3, %v4570_v42  ;;  %v739_v50 = vmul.f32 %v7075_v3, %v4597_v57 }
  0x7b   : >> { %v740_v18 = vmul.f32 %v7075_v3, %v4600_v58  ;;  %v741_v19 = vmul.f32 %v7075_v3, %v4635_v45  ;;  %v742_v20 = vmul.f32 %v7075_v3, %v4638_v48  ;;  %v743_v21 = vmul.f32 %v7075_v3, %v4673_v36 }
  0x7c   : >> { %v744_v25 = vmul.f32 %v7075_v3, %v4676_v10  ;;  %v745_v26 = vmul.f32 %v7075_v3, %v543_v7  ;;  %v746_v27 = vmul.f32 %v7075_v3, %v544_v16  ;;  %v747_v28 = vadd.f32 %v731_v53, %v711_v55  ;;  %v7077_v3 = vld [vmem:[#allocation15_spill] sm:$0xff]  ;;  %v7091_v53 = vld [vmem:[#allocation14_spill] sm:$0xff] }
  0x7d   : >> { %v748_v29 = vadd.f32 %v732_v54, %v712_v5  ;;  %v749_v30 = vadd.f32 %v733_v11, %v713_v4  ;;  %v750_v31 = vadd.f32 %v734_v12, %v714_v2  ;;  %v751_v32 = vadd.f32 %v735_v13, %v715_v1  ;;  %v7078_v5 = vld [vmem:[#allocation28_spill] sm:$0xff]  ;;  %v7079_v4 = vld [vmem:[#allocation10_spill] sm:$0xff]  ;;  %v7093_v11 = vld [vmem:[#allocation23_spill] sm:$0xff] }
  0x7e   : >> { %v752_v33 = vadd.f32 %v736_v14, %v716_v0  ;;  %v753_v34 = vadd.f32 %v737_v8, %v717_v6  ;;  %v754_v35 = vadd.f32 %v738_v15, %v718_v43  ;;  %v755_v9 = vadd.f32 %v739_v50, %v719_v44  ;;  %v7080_v1 = vld [vmem:[#allocation18_spill] sm:$0xff]  ;;  %v7081_v0 = vld [vmem:[#allocation11_spill] sm:$0xff] }
  0x7f   : >> { %v756_v37 = vadd.f32 %v740_v18, %v720_v49  ;;  %v757_v38 = vadd.f32 %v741_v19, %v721_v56  ;;  %v758_v39 = vadd.f32 %v742_v20, %v722_v59  ;;  %v759_v40 = vadd.f32 %v743_v21, %v723_v60  ;;  %v7082_v43 = vld [vmem:[#allocation19_spill] sm:$0xff]  ;;  %v7084_v49 = vld [vmem:[#allocation20_spill] sm:$0xff]  ;;  %v7087_v60 = vld [vmem:[#allocation21_spill] sm:$0xff] }
  0x80   : >> { %v760_v46 = vadd.f32 %v744_v25, %v724_v61  ;;  %v761_v47 = vadd.f32 %v745_v26, %v725_v62  ;;  %v762_v51 = vadd.f32 %v746_v27, %v726_v63  ;;  %v766_v55 = vrot.slane %v7077_v3, %v7076_v52  ;;  %v7085_v56 = vld [vmem:[#allocation12_spill] sm:$0xff]  ;;  %v7088_v61 = vld [vmem:[#allocation13_spill] sm:$0xff]  ;;  %v7090_v63 = vld [vmem:[#allocation22_spill] sm:$0xff] }
  0x81   : >> { %v4730_v2 = vrot.slane %v7079_v4, %v7078_v5  ;;  %v4734_v6 = vrot.slane %v7081_v0, %v7080_v1  ;;  %v4738_v44 = vrot.slane %v7081_v0, %v7082_v43  ;;  %v4742_v59 = vrot.slane %v7085_v56, %v7084_v49  ;;  %v545_v13 = vld [vmem:[%s4476_s20 + $0x1a5] sm:$0xff]  ;;  %v546_v14 = vld [vmem:[%s4476_s20 + $0x1ad] sm:$0xff] }
  0x82   : >> { %v4746_v62 = vrot.slane %v7088_v61, %v7087_v60  ;;  %v4750_v54 = vrot.slane %v7091_v53, %v7090_v63  ;;  %v4754_v12 = vrot.slane %v7077_v3, %v7093_v11  ;;  %v767_v8 = vmul.f32 %v766_v55, %v4537_v17 }
  0x83   : >> { %7083 = vst [vmem:[#allocation25_spill] sm:$0xff] %v4738_v44  ;;  %7086 = vst [vmem:[#allocation26_spill] sm:$0xff] %v4742_v59  ;;  %v768_v15 = vmul.f32 %v766_v55, %v4544_v22  ;;  %v769_v50 = vmul.f32 %v766_v55, %v4547_v23  ;;  %v770_v18 = vmul.f32 %v766_v55, %v4550_v24 }
  0x84   : >> { %7089 = vst [vmem:[#allocation27_spill] sm:$0xff] %v4746_v62  ;;  %7092 = vst [vmem:[#allocation29_spill] sm:$0xff] %v4750_v54  ;;  %v771_v19 = vmul.f32 %v766_v55, %v4567_v41  ;;  %v772_v20 = vmul.f32 %v766_v55, %v4570_v42  ;;  %v773_v21 = vmul.f32 %v766_v55, %v4597_v57 }
  0x85   : >> { %7094 = vst [vmem:[#allocation30_spill] sm:$0xff] %v4754_v12  ;;  %v774_v25 = vmul.f32 %v766_v55, %v4600_v58  ;;  %v775_v26 = vmul.f32 %v766_v55, %v4635_v45  ;;  %v776_v27 = vmul.f32 %v766_v55, %v4638_v48  ;;  %v777_v17 = vmul.f32 %v766_v55, %v4673_v36  ;;  %v799_v36 = vld [vmem:[%s4476_s20 + $0x6] sm:$0xff] }
  0x86   : >> { %v778_v22 = vmul.f32 %v766_v55, %v4676_v10  ;;  %v779_v23 = vmul.f32 %v766_v55, %v543_v7  ;;  %v780_v24 = vmul.f32 %v766_v55, %v544_v16  ;;  %v781_v41 = vmul.f32 %v766_v55, %v545_v13  ;;  %v800_v10 = vld [vmem:[%s4476_s20 + $0xe] sm:$0xff]  ;;  %v801_v7 = vld [vmem:[%s4476_s20 + $0x26] sm:$0xff] }
  0x87   : >> { %v782_v11 = vmul.f32 %v766_v55, %v546_v14  ;;  %v783_v42 = vadd.f32 %v767_v8, %v747_v28  ;;  %v784_v57 = vadd.f32 %v768_v15, %v748_v29  ;;  %v785_v3 = vadd.f32 %v769_v50, %v749_v30  ;;  %v802_v29 = vld [vmem:[%s4476_s20 + $0x2e] sm:$0xff]  ;;  %v4781_v14 = vld [vmem:[%s4476_s20 + $0x66] sm:$0xff] }
  0x88   : >> { %v786_v58 = vadd.f32 %v770_v18, %v750_v31  ;;  %v787_v63 = vadd.f32 %v771_v19, %v751_v32  ;;  %v788_v45 = vadd.f32 %v772_v20, %v752_v33  ;;  %v789_v48 = vadd.f32 %v773_v21, %v753_v34  ;;  %v4775_v34 = vld [vmem:[%s4476_s20 + $0x46] sm:$0xff]  ;;  %v4814_v20 = vld [vmem:[%s4476_s20 + $0xce] sm:$0xff] }
  0x89   : >> { %v790_v53 = vadd.f32 %v774_v25, %v754_v35  ;;  %v791_v16 = vadd.f32 %v775_v26, %v755_v9  ;;  %v792_v55 = vadd.f32 %v776_v27, %v756_v37  ;;  %v793_v13 = vadd.f32 %v777_v17, %v757_v38  ;;  %v4778_v35 = vld [vmem:[%s4476_s20 + $0x4e] sm:$0xff]  ;;  %v4787_v37 = vld [vmem:[%s4476_s20 + $0x86] sm:$0xff] }
  0x8a   : >> { %v794_v28 = vadd.f32 %v778_v22, %v758_v39  ;;  %v795_v30 = vadd.f32 %v779_v23, %v759_v40  ;;  %v796_v31 = vadd.f32 %v780_v24, %v760_v46  ;;  %v797_v32 = vadd.f32 %v781_v41, %v761_v47  ;;  %v4784_v9 = vld [vmem:[%s4476_s20 + $0x6e] sm:$0xff]  ;;  %v4803_v8 = vld [vmem:[%s4476_s20 + $0xc6] sm:$0xff] }
  0x8b   : >> { %v798_v33 = vadd.f32 %v782_v11, %v762_v51  ;;  %v4790_v38 = vld [vmem:[%s4476_s20 + $0x8e] sm:$0xff]  ;;  %v831_v39 = vmul.f32 %v4730_v2, %v799_v36  ;;  %v832_v40 = vmul.f32 %v4730_v2, %v800_v10  ;;  %v833_v46 = vmul.f32 %v4730_v2, %v801_v7  ;;  %v4797_v51 = vld [vmem:[%s4476_s20 + $0xa6] sm:$0xff] }
  0x8c   : >> { %v834_v47 = vmul.f32 %v4730_v2, %v802_v29  ;;  %v4800_v11 = vld [vmem:[%s4476_s20 + $0xae] sm:$0xff]  ;;  %v835_v15 = vmul.f32 %v4730_v2, %v4775_v34  ;;  %v836_v50 = vmul.f32 %v4730_v2, %v4778_v35  ;;  %v837_v18 = vmul.f32 %v4730_v2, %v4781_v14  ;;  %v4817_v21 = vld [vmem:[%s4476_s20 + $0xe6] sm:$0xff] }
  0x8d   : >> { %v838_v19 = vmul.f32 %v4730_v2, %v4784_v9  ;;  %v4820_v25 = vld [vmem:[%s4476_s20 + $0xee] sm:$0xff]  ;;  %v839_v26 = vmul.f32 %v4730_v2, %v4787_v37  ;;  %v840_v27 = vmul.f32 %v4730_v2, %v4790_v38  ;;  %v841_v17 = vmul.f32 %v4730_v2, %v4797_v51 }
  0x8e   : >> { %v842_v22 = vmul.f32 %v4730_v2, %v4800_v11  ;;  %v843_v23 = vmul.f32 %v4730_v2, %v4803_v8  ;;  %v844_v24 = vmul.f32 %v4730_v2, %v4814_v20  ;;  %v845_v41 = vmul.f32 %v4730_v2, %v4817_v21 }
  0x8f   : >> { %v846_v36 = vmul.f32 %v4730_v2, %v4820_v25  ;;  %v847_v10 = vadd.f32 %v831_v39, %v783_v42  ;;  %v848_v60 = vadd.f32 %v832_v40, %v784_v57  ;;  %v849_v61 = vadd.f32 %v833_v46, %v785_v3 }
  0x90   : >> { %v850_v49 = vadd.f32 %v834_v47, %v786_v58  ;;  %v851_v43 = vadd.f32 %v835_v15, %v787_v63  ;;  %v852_v56 = vadd.f32 %v836_v50, %v788_v45  ;;  %v853_v1 = vadd.f32 %v837_v18, %v789_v48  ;;  %v4853_v48 = vld [vmem:[%s4476_s20 + $0x106] sm:$0xff] }
  0x91   : >> { %v854_v0 = vadd.f32 %v838_v19, %v790_v53  ;;  %v855_v5 = vadd.f32 %v839_v26, %v791_v16  ;;  %v856_v4 = vadd.f32 %v840_v27, %v792_v55  ;;  %v857_v52 = vadd.f32 %v841_v17, %v793_v13 }
  0x92   : >> { %v858_v12 = vadd.f32 %v842_v22, %v794_v28  ;;  %v859_v54 = vadd.f32 %v843_v23, %v795_v30  ;;  %v860_v62 = vadd.f32 %v844_v24, %v796_v31  ;;  %v861_v59 = vadd.f32 %v845_v41, %v797_v32 }
  0x93   : >> { %v862_v44 = vadd.f32 %v846_v36, %v798_v33  ;;  %v867_v2 = vmul.f32 %v4734_v6, %v801_v7  ;;  %v868_v42 = vmul.f32 %v4734_v6, %v802_v29  ;;  %v869_v3 = vmul.f32 %v4734_v6, %v4775_v34  ;;  %v4856_v7 = vld [vmem:[%s4476_s20 + $0x10e] sm:$0xff] }
  0x94   : >> { %v870_v63 = vmul.f32 %v4734_v6, %v4778_v35  ;;  %v871_v53 = vmul.f32 %v4734_v6, %v4781_v14  ;;  %v872_v57 = vmul.f32 %v4734_v6, %v4784_v9  ;;  %v873_v58 = vmul.f32 %v4734_v6, %v4787_v37 }
  0x95   : >> { %v874_v45 = vmul.f32 %v4734_v6, %v4790_v38  ;;  %v875_v16 = vmul.f32 %v4734_v6, %v4797_v51  ;;  %v876_v55 = vmul.f32 %v4734_v6, %v4800_v11  ;;  %v877_v13 = vmul.f32 %v4734_v6, %v4803_v8 }
  0x96   : >> { %v878_v28 = vmul.f32 %v4734_v6, %v4814_v20  ;;  %v879_v29 = vmul.f32 %v4734_v6, %v4817_v21  ;;  %v880_v30 = vmul.f32 %v4734_v6, %v4820_v25  ;;  %v881_v31 = vmul.f32 %v4734_v6, %v4853_v48 }
  0x97   : >> { %v882_v32 = vmul.f32 %v4734_v6, %v4856_v7  ;;  %v883_v33 = vadd.f32 %v867_v2, %v847_v10  ;;  %v884_v39 = vadd.f32 %v868_v42, %v848_v60  ;;  %v885_v40 = vadd.f32 %v869_v3, %v849_v61  ;;  %v7095_v6 = vld [vmem:[#allocation25_spill] sm:$0xff] }
  0x98   : >> { %v886_v46 = vadd.f32 %v870_v63, %v850_v49  ;;  %v887_v47 = vadd.f32 %v871_v53, %v851_v43  ;;  %v888_v15 = vadd.f32 %v872_v57, %v852_v56  ;;  %v889_v50 = vadd.f32 %v873_v58, %v853_v1  ;;  %v4894_v56 = vld [vmem:[%s4476_s20 + $0x12e] sm:$0xff] }
  0x99   : >> { %v890_v18 = vadd.f32 %v874_v45, %v854_v0  ;;  %v891_v19 = vadd.f32 %v875_v16, %v855_v5  ;;  %v892_v26 = vadd.f32 %v876_v55, %v856_v4  ;;  %v893_v27 = vadd.f32 %v877_v13, %v857_v52 }
  0x9a   : >> { %v894_v17 = vadd.f32 %v878_v28, %v858_v12  ;;  %v895_v22 = vadd.f32 %v879_v29, %v859_v54  ;;  %v896_v23 = vadd.f32 %v880_v30, %v860_v62  ;;  %v897_v24 = vadd.f32 %v881_v31, %v861_v59 }
  0x9b   : >> { %v898_v41 = vadd.f32 %v882_v32, %v862_v44  ;;  %v903_v36 = vmul.f32 %v7095_v6, %v4775_v34  ;;  %v904_v49 = vmul.f32 %v7095_v6, %v4778_v35  ;;  %v905_v1 = vmul.f32 %v7095_v6, %v4781_v14  ;;  %v4891_v44 = vld [vmem:[%s4476_s20 + $0x126] sm:$0xff] }
  0x9c   : >> { %v906_v5 = vmul.f32 %v7095_v6, %v4784_v9  ;;  %v907_v52 = vmul.f32 %v7095_v6, %v4787_v37  ;;  %v908_v4 = vmul.f32 %v7095_v6, %v4790_v38  ;;  %v909_v0 = vmul.f32 %v7095_v6, %v4797_v51  ;;  %v7096_v32 = vld [vmem:[#allocation26_spill] sm:$0xff] }
  0x9d   : >> { %v910_v43 = vmul.f32 %v7095_v6, %v4800_v11  ;;  %v911_v59 = vmul.f32 %v7095_v6, %v4803_v8  ;;  %v912_v60 = vmul.f32 %v7095_v6, %v4814_v20  ;;  %v913_v61 = vmul.f32 %v7095_v6, %v4817_v21 }
  0x9e   : >> { %v914_v62 = vmul.f32 %v7095_v6, %v4820_v25  ;;  %v915_v54 = vmul.f32 %v7095_v6, %v4853_v48  ;;  %v916_v12 = vmul.f32 %v7095_v6, %v4856_v7  ;;  %v917_v34 = vmul.f32 %v7095_v6, %v4891_v44 }
  0x9f   : >> { %v918_v35 = vmul.f32 %v7095_v6, %v4894_v56  ;;  %v919_v10 = vadd.f32 %v903_v36, %v883_v33  ;;  %v920_v2 = vadd.f32 %v904_v49, %v884_v39  ;;  %v921_v42 = vadd.f32 %v905_v1, %v885_v40 }
  0xa0   : >> { %v922_v3 = vadd.f32 %v906_v5, %v886_v46  ;;  %v923_v63 = vadd.f32 %v907_v52, %v887_v47  ;;  %v924_v53 = vadd.f32 %v908_v4, %v888_v15  ;;  %v925_v57 = vadd.f32 %v909_v0, %v889_v50 }
  0xa1   : >> { %v926_v58 = vadd.f32 %v910_v43, %v890_v18  ;;  %v927_v45 = vadd.f32 %v911_v59, %v891_v19  ;;  %v928_v16 = vadd.f32 %v912_v60, %v892_v26  ;;  %v929_v55 = vadd.f32 %v913_v61, %v893_v27  ;;  %v4929_v18 = vld [vmem:[%s4476_s20 + $0x146] sm:$0xff] }
  0xa2   : >> { %v930_v13 = vadd.f32 %v914_v62, %v894_v17  ;;  %v931_v28 = vadd.f32 %v915_v54, %v895_v22  ;;  %v932_v29 = vadd.f32 %v916_v12, %v896_v23  ;;  %v933_v30 = vadd.f32 %v917_v34, %v897_v24 }
  0xa3   : >> { %v934_v31 = vadd.f32 %v918_v35, %v898_v41  ;;  %v939_v33 = vmul.f32 %v7096_v32, %v4781_v14  ;;  %v940_v39 = vmul.f32 %v7096_v32, %v4784_v9  ;;  %v941_v40 = vmul.f32 %v7096_v32, %v4787_v37  ;;  %v4932_v9 = vld [vmem:[%s4476_s20 + $0x14e] sm:$0xff] }
  0xa4   : >> { %v942_v46 = vmul.f32 %v7096_v32, %v4790_v38  ;;  %v943_v47 = vmul.f32 %v7096_v32, %v4797_v51  ;;  %v944_v15 = vmul.f32 %v7096_v32, %v4800_v11  ;;  %v945_v50 = vmul.f32 %v7096_v32, %v4803_v8  ;;  %v7097_v35 = vld [vmem:[#allocation27_spill] sm:$0xff] }
  0xa5   : >> { %v946_v14 = vmul.f32 %v7096_v32, %v4814_v20  ;;  %v947_v19 = vmul.f32 %v7096_v32, %v4817_v21  ;;  %v948_v26 = vmul.f32 %v7096_v32, %v4820_v25  ;;  %v949_v27 = vmul.f32 %v7096_v32, %v4853_v48 }
  0xa6   : >> { %v950_v17 = vmul.f32 %v7096_v32, %v4856_v7  ;;  %v951_v22 = vmul.f32 %v7096_v32, %v4891_v44  ;;  %v952_v23 = vmul.f32 %v7096_v32, %v4894_v56  ;;  %v953_v24 = vmul.f32 %v7096_v32, %v4929_v18 }
  0xa7   : >> { %v954_v41 = vmul.f32 %v7096_v32, %v4932_v9  ;;  %v955_v6 = vadd.f32 %v939_v33, %v919_v10  ;;  %v956_v36 = vadd.f32 %v940_v39, %v920_v2  ;;  %v957_v49 = vadd.f32 %v941_v40, %v921_v42 }
  0xa8   : >> { %v958_v1 = vadd.f32 %v942_v46, %v922_v3  ;;  %v959_v5 = vadd.f32 %v943_v47, %v923_v63  ;;  %v960_v52 = vadd.f32 %v944_v15, %v924_v53  ;;  %v961_v4 = vadd.f32 %v945_v50, %v925_v57 }
  0xa9   : >> { %v962_v0 = vadd.f32 %v946_v14, %v926_v58  ;;  %v963_v43 = vadd.f32 %v947_v19, %v927_v45  ;;  %v964_v59 = vadd.f32 %v948_v26, %v928_v16  ;;  %v965_v60 = vadd.f32 %v949_v27, %v929_v55  ;;  %v4967_v58 = vld [vmem:[%s4476_s20 + $0x166] sm:$0xff] }
  0xaa   : >> { %v966_v61 = vadd.f32 %v950_v17, %v930_v13  ;;  %v967_v62 = vadd.f32 %v951_v22, %v931_v28  ;;  %v968_v54 = vadd.f32 %v952_v23, %v932_v29  ;;  %v969_v12 = vadd.f32 %v953_v24, %v933_v30 }
  0xab   : >> { %v970_v34 = vadd.f32 %v954_v41, %v934_v31  ;;  %v975_v10 = vmul.f32 %v7097_v35, %v4787_v37  ;;  %v976_v2 = vmul.f32 %v7097_v35, %v4790_v38  ;;  %v977_v42 = vmul.f32 %v7097_v35, %v4797_v51  ;;  %v4970_v38 = vld [vmem:[%s4476_s20 + $0x16e] sm:$0xff]  ;;  %v7098_v41 = vld [vmem:[#allocation29_spill] sm:$0xff] }
  0xac   : >> { %v978_v3 = vmul.f32 %v7097_v35, %v4800_v11  ;;  %v979_v63 = vmul.f32 %v7097_v35, %v4803_v8  ;;  %v980_v53 = vmul.f32 %v7097_v35, %v4814_v20  ;;  %v981_v57 = vmul.f32 %v7097_v35, %v4817_v21 }
  0xad   : >> { %v982_v37 = vmul.f32 %v7097_v35, %v4820_v25  ;;  %v983_v45 = vmul.f32 %v7097_v35, %v4853_v48  ;;  %v984_v16 = vmul.f32 %v7097_v35, %v4856_v7  ;;  %v985_v55 = vmul.f32 %v7097_v35, %v4891_v44 }
  0xae   : >> { %v986_v13 = vmul.f32 %v7097_v35, %v4894_v56  ;;  %v987_v28 = vmul.f32 %v7097_v35, %v4929_v18  ;;  %v988_v29 = vmul.f32 %v7097_v35, %v4932_v9  ;;  %v989_v30 = vmul.f32 %v7097_v35, %v4967_v58 }
  0xaf   : >> { %v990_v31 = vmul.f32 %v7097_v35, %v4970_v38  ;;  %v991_v32 = vadd.f32 %v975_v10, %v955_v6  ;;  %v992_v33 = vadd.f32 %v976_v2, %v956_v36  ;;  %v993_v39 = vadd.f32 %v977_v42, %v957_v49 }
  0xb0   : >> { %v994_v40 = vadd.f32 %v978_v3, %v958_v1  ;;  %v995_v46 = vadd.f32 %v979_v63, %v959_v5  ;;  %v996_v47 = vadd.f32 %v980_v53, %v960_v52  ;;  %v997_v15 = vadd.f32 %v981_v57, %v961_v4 }
  0xb1   : >> { %v998_v50 = vadd.f32 %v982_v37, %v962_v0  ;;  %v999_v14 = vadd.f32 %v983_v45, %v963_v43  ;;  %v1000_v19 = vadd.f32 %v984_v16, %v964_v59  ;;  %v1001_v26 = vadd.f32 %v985_v55, %v965_v60  ;;  %v823_v0 = vld [vmem:[%s4476_s20 + $0x186] sm:$0xff] }
  0xb2   : >> { %v1002_v27 = vadd.f32 %v986_v13, %v966_v61  ;;  %v1003_v17 = vadd.f32 %v987_v28, %v967_v62  ;;  %v1004_v22 = vadd.f32 %v988_v29, %v968_v54  ;;  %v1005_v23 = vadd.f32 %v989_v30, %v969_v12 }
  0xb3   : >> { %v1006_v24 = vadd.f32 %v990_v31, %v970_v34  ;;  %v1011_v6 = vmul.f32 %v7098_v41, %v4797_v51  ;;  %v1012_v36 = vmul.f32 %v7098_v41, %v4800_v11  ;;  %v1013_v49 = vmul.f32 %v7098_v41, %v4803_v8  ;;  %v824_v11 = vld [vmem:[%s4476_s20 + $0x18e] sm:$0xff]  ;;  %v825_v31 = vld [vmem:[%s4476_s20 + $0x1a6] sm:$0xff] }
  0xb4   : >> { %v1014_v1 = vmul.f32 %v7098_v41, %v4814_v20  ;;  %v1015_v5 = vmul.f32 %v7098_v41, %v4817_v21  ;;  %v1016_v52 = vmul.f32 %v7098_v41, %v4820_v25  ;;  %v1017_v4 = vmul.f32 %v7098_v41, %v4853_v48 }
  0xb5   : >> { %v1018_v51 = vmul.f32 %v7098_v41, %v4856_v7  ;;  %v1019_v43 = vmul.f32 %v7098_v41, %v4891_v44  ;;  %v1020_v59 = vmul.f32 %v7098_v41, %v4894_v56  ;;  %v1021_v60 = vmul.f32 %v7098_v41, %v4929_v18 }
  0xb6   : >> { %v1022_v61 = vmul.f32 %v7098_v41, %v4932_v9  ;;  %v1023_v62 = vmul.f32 %v7098_v41, %v4967_v58  ;;  %v1024_v54 = vmul.f32 %v7098_v41, %v4970_v38  ;;  %v1025_v12 = vmul.f32 %v7098_v41, %v823_v0 }
  0xb7   : >> { %v1026_v34 = vmul.f32 %v7098_v41, %v824_v11  ;;  %v1027_v35 = vadd.f32 %v1011_v6, %v991_v32  ;;  %v1028_v10 = vadd.f32 %v1012_v36, %v992_v33  ;;  %v1029_v2 = vadd.f32 %v1013_v49, %v993_v39  ;;  %v826_v41 = vld [vmem:[%s4476_s20 + $0x1ae] sm:$0xff]  ;;  %v7099_v32 = vld [vmem:[#allocation30_spill] sm:$0xff] }
  0xb8   : >> { %v1030_v42 = vadd.f32 %v1014_v1, %v994_v40  ;;  %v1031_v3 = vadd.f32 %v1015_v5, %v995_v46  ;;  %v1032_v63 = vadd.f32 %v1016_v52, %v996_v47  ;;  %v1033_v53 = vadd.f32 %v1017_v4, %v997_v15  ;;  %v1079_v52 = vld [vmem:[%s4476_s20 + $0x7] sm:$0xff]  ;;  %v1080_v4 = vld [vmem:[%s4476_s20 + $0xf] sm:$0xff] }
  0xb9   : >> { %v1034_v57 = vadd.f32 %v1018_v51, %v998_v50  ;;  %v1035_v37 = vadd.f32 %v1019_v43, %v999_v14  ;;  %v1036_v45 = vadd.f32 %v1020_v59, %v1000_v19  ;;  %v1037_v16 = vadd.f32 %v1021_v60, %v1001_v26  ;;  %v1081_v51 = vld [vmem:[%s4476_s20 + $0x27] sm:$0xff]  ;;  %v7102_v60 = vld [vmem:[#allocation28_spill] sm:$0xff] }
  0xba   : >> { %v1038_v55 = vadd.f32 %v1022_v61, %v1002_v27  ;;  %v1039_v13 = vadd.f32 %v1023_v62, %v1003_v17  ;;  %v1040_v28 = vadd.f32 %v1024_v54, %v1004_v22  ;;  %v1041_v29 = vadd.f32 %v1025_v12, %v1005_v23  ;;  %v7101_v43 = vld [vmem:[#allocation10_spill] sm:$0xff]  ;;  %v7103_v61 = vld [vmem:[#allocation11_spill] sm:$0xff]  ;;  %v7105_v12 = vld [vmem:[#allocation12_spill] sm:$0xff] }
  0xbb   : >> { %v1042_v30 = vadd.f32 %v1026_v34, %v1006_v24  ;;  %v1047_v33 = vmul.f32 %v7099_v32, %v4803_v8  ;;  %v1048_v39 = vmul.f32 %v7099_v32, %v4814_v20  ;;  %v1049_v40 = vmul.f32 %v7099_v32, %v4817_v21  ;;  %v7104_v54 = vld [vmem:[#allocation18_spill] sm:$0xff] }
  0xbc   : >> { %v1050_v46 = vmul.f32 %v7099_v32, %v4820_v25  ;;  %v1051_v47 = vmul.f32 %v7099_v32, %v4853_v48  ;;  %v1052_v15 = vmul.f32 %v7099_v32, %v4856_v7  ;;  %v1053_v50 = vmul.f32 %v7099_v32, %v4891_v44 }
  0xbd   : >> { %v1054_v8 = vmul.f32 %v7099_v32, %v4894_v56  ;;  %v1055_v20 = vmul.f32 %v7099_v32, %v4929_v18  ;;  %v1056_v21 = vmul.f32 %v7099_v32, %v4932_v9  ;;  %v1057_v25 = vmul.f32 %v7099_v32, %v4967_v58 }
  0xbe   : >> { %v1058_v48 = vmul.f32 %v7099_v32, %v4970_v38  ;;  %v1059_v7 = vmul.f32 %v7099_v32, %v823_v0  ;;  %v1060_v14 = vmul.f32 %v7099_v32, %v824_v11  ;;  %v1061_v44 = vmul.f32 %v7099_v32, %v825_v31  ;;  %v1082_v0 = vld [vmem:[%s4476_s20 + $0x2f] sm:$0xff] }
  0xbf   : >> { %v1062_v56 = vmul.f32 %v7099_v32, %v826_v41  ;;  %v1063_v19 = vadd.f32 %v1047_v33, %v1027_v35  ;;  %v1064_v18 = vadd.f32 %v1048_v39, %v1028_v10  ;;  %v1065_v26 = vadd.f32 %v1049_v40, %v1029_v2  ;;  %v7100_v11 = vld [vmem:[#allocation24_spill] sm:$0xff]  ;;  %v7107_v35 = vld [vmem:[#allocation19_spill] sm:$0xff] }
  0xc0   : >> { %v1066_v9 = vadd.f32 %v1050_v46, %v1030_v42  ;;  %v1067_v58 = vadd.f32 %v1051_v47, %v1031_v3  ;;  %v1068_v27 = vadd.f32 %v1052_v15, %v1032_v63  ;;  %v1069_v17 = vadd.f32 %v1053_v50, %v1033_v53  ;;  %v5069_v2 = vld [vmem:[%s4476_s20 + $0x47] sm:$0xff]  ;;  %v5072_v42 = vld [vmem:[%s4476_s20 + $0x4f] sm:$0xff]  ;;  %v7110_v53 = vld [vmem:[#allocation13_spill] sm:$0xff] }
  0xc1   : >> { %v1070_v38 = vadd.f32 %v1054_v8, %v1034_v57  ;;  %v1071_v22 = vadd.f32 %v1055_v20, %v1035_v37  ;;  %v1072_v23 = vadd.f32 %v1056_v21, %v1036_v45  ;;  %v1073_v24 = vadd.f32 %v1057_v25, %v1037_v16  ;;  %v5075_v3 = vld [vmem:[%s4476_s20 + $0x67] sm:$0xff]  ;;  %v7109_v63 = vld [vmem:[#allocation20_spill] sm:$0xff]  ;;  %v7112_v37 = vld [vmem:[#allocation21_spill] sm:$0xff] }
  0xc2   : >> { %v1074_v6 = vadd.f32 %v1058_v48, %v1038_v55  ;;  %v1075_v36 = vadd.f32 %v1059_v7, %v1039_v13  ;;  %v1076_v49 = vadd.f32 %v1060_v14, %v1040_v28  ;;  %v1077_v1 = vadd.f32 %v1061_v44, %v1041_v29  ;;  %v7113_v45 = vld [vmem:[#allocation14_spill] sm:$0xff]  ;;  %v7116_v13 = vld [vmem:[#allocation15_spill] sm:$0xff] }
  0xc3   : >> { %v1078_v5 = vadd.f32 %v1062_v56, %v1042_v30  ;;  %v1110_v59 = vrot.slane %v7101_v43, %v7100_v11  ;;  %v5058_v62 = vrot.slane %v7103_v61, %v7102_v60  ;;  %v5062_v34 = vrot.slane %v7105_v12, %v7104_v54  ;;  %v7115_v55 = vld [vmem:[#allocation22_spill] sm:$0xff]  ;;  %v7118_v29 = vld [vmem:[#allocation23_spill] sm:$0xff] }
  0xc4   : >> { %v5066_v10 = vrot.slane %v7105_v12, %v7107_v35  ;;  %v5079_v57 = vrot.slane %v7110_v53, %v7109_v63  ;;  %v5083_v16 = vrot.slane %v7113_v45, %v7112_v37  ;;  %v5087_v28 = vrot.slane %v7116_v13, %v7115_v55  ;;  %v5094_v31 = vld [vmem:[%s4476_s20 + $0x6f] sm:$0xff]  ;;  %v5097_v41 = vld [vmem:[%s4476_s20 + $0x87] sm:$0xff] }
  0xc5   : >> { %7106 = vst [vmem:[#allocation25_spill] sm:$0xff] %v5062_v34  ;;  %v5091_v30 = vrot.slane %v7101_v43, %v7118_v29  ;;  %v5100_v32 = vld [vmem:[%s4476_s20 + $0x8f] sm:$0xff]  ;;  %v1111_v33 = vmul.f32 %v1110_v59, %v1079_v52  ;;  %v1112_v39 = vmul.f32 %v1110_v59, %v1080_v4  ;;  %v1113_v40 = vmul.f32 %v1110_v59, %v1081_v51  ;;  %v5103_v47 = vld [vmem:[%s4476_s20 + $0xa7] sm:$0xff] }
  0xc6   : >> { %7108 = vst [vmem:[#allocation26_spill] sm:$0xff] %v5066_v10  ;;  %7111 = vst [vmem:[#allocation27_spill] sm:$0xff] %v5079_v57  ;;  %v1114_v46 = vmul.f32 %v1110_v59, %v1082_v0  ;;  %v5106_v15 = vld [vmem:[%s4476_s20 + $0xaf] sm:$0xff]  ;;  %v5109_v50 = vld [vmem:[%s4476_s20 + $0xc7] sm:$0xff]  ;;  %v1115_v8 = vmul.f32 %v1110_v59, %v5069_v2  ;;  %v1116_v20 = vmul.f32 %v1110_v59, %v5072_v42 }
  0xc7   : >> { %7114 = vst [vmem:[#allocation29_spill] sm:$0xff] %v5083_v16  ;;  %7117 = vst [vmem:[#allocation30_spill] sm:$0xff] %v5087_v28  ;;  %v1117_v21 = vmul.f32 %v1110_v59, %v5075_v3  ;;  %v1118_v25 = vmul.f32 %v1110_v59, %v5094_v31  ;;  %v5116_v48 = vld [vmem:[%s4476_s20 + $0xcf] sm:$0xff]  ;;  %v5119_v7 = vld [vmem:[%s4476_s20 + $0xe7] sm:$0xff]  ;;  %v1119_v44 = vmul.f32 %v1110_v59, %v5097_v41 }
  0xc8   : >> { %7119 = vst [vmem:[#allocation31_spill] sm:$0xff] %v5091_v30  ;;  %v5122_v14 = vld [vmem:[%s4476_s20 + $0xef] sm:$0xff]  ;;  %v1120_v56 = vmul.f32 %v1110_v59, %v5100_v32  ;;  %v1121_v52 = vmul.f32 %v1110_v59, %v5103_v47  ;;  %v1122_v4 = vmul.f32 %v1110_v59, %v5106_v15  ;;  %v1123_v29 = vmul.f32 %v1110_v59, %v5109_v50 }
  0xc9   : >> { %v1124_v43 = vmul.f32 %v1110_v59, %v5116_v48  ;;  %v1125_v55 = vmul.f32 %v1110_v59, %v5119_v7  ;;  %v1126_v13 = vmul.f32 %v1110_v59, %v5122_v14  ;;  %v1127_v37 = vadd.f32 %v1111_v33, %v1063_v19 }
  0xca   : >> { %v1128_v45 = vadd.f32 %v1112_v39, %v1064_v18  ;;  %v1129_v63 = vadd.f32 %v1113_v40, %v1065_v26  ;;  %v1130_v35 = vadd.f32 %v1114_v46, %v1066_v9  ;;  %v1131_v53 = vadd.f32 %v1115_v8, %v1067_v58 }
  0xcb   : >> { %v1132_v54 = vadd.f32 %v1116_v20, %v1068_v27  ;;  %v1133_v12 = vadd.f32 %v1117_v21, %v1069_v17  ;;  %v1134_v60 = vadd.f32 %v1118_v25, %v1070_v38  ;;  %v1135_v61 = vadd.f32 %v1119_v44, %v1071_v22  ;;  %v5147_v38 = vld [vmem:[%s4476_s20 + $0x107] sm:$0xff]  ;;  %v5150_v22 = vld [vmem:[%s4476_s20 + $0x10f] sm:$0xff] }
  0xcc   : >> { %v1136_v11 = vadd.f32 %v1120_v56, %v1072_v23  ;;  %v1137_v30 = vadd.f32 %v1121_v52, %v1073_v24  ;;  %v1138_v28 = vadd.f32 %v1122_v4, %v1074_v6  ;;  %v1139_v16 = vadd.f32 %v1123_v29, %v1075_v36 }
  0xcd   : >> { %v1140_v57 = vadd.f32 %v1124_v43, %v1076_v49  ;;  %v1141_v10 = vadd.f32 %v1125_v55, %v1077_v1  ;;  %v1142_v34 = vadd.f32 %v1126_v13, %v1078_v5  ;;  %v1147_v59 = vmul.f32 %v5058_v62, %v1081_v51 }
  0xce   : >> { %v1148_v19 = vmul.f32 %v5058_v62, %v1082_v0  ;;  %v1149_v18 = vmul.f32 %v5058_v62, %v5069_v2  ;;  %v1150_v26 = vmul.f32 %v5058_v62, %v5072_v42  ;;  %v1151_v9 = vmul.f32 %v5058_v62, %v5075_v3 }
  0xcf   : >> { %v1152_v58 = vmul.f32 %v5058_v62, %v5094_v31  ;;  %v1153_v27 = vmul.f32 %v5058_v62, %v5097_v41  ;;  %v1154_v17 = vmul.f32 %v5058_v62, %v5100_v32  ;;  %v1155_v23 = vmul.f32 %v5058_v62, %v5103_v47 }
  0xd0   : >> { %v1156_v24 = vmul.f32 %v5058_v62, %v5106_v15  ;;  %v1157_v6 = vmul.f32 %v5058_v62, %v5109_v50  ;;  %v1158_v36 = vmul.f32 %v5058_v62, %v5116_v48  ;;  %v1159_v49 = vmul.f32 %v5058_v62, %v5119_v7 }
  0xd1   : >> { %v1160_v1 = vmul.f32 %v5058_v62, %v5122_v14  ;;  %v1161_v5 = vmul.f32 %v5058_v62, %v5147_v38  ;;  %v1162_v51 = vmul.f32 %v5058_v62, %v5150_v22  ;;  %v1163_v0 = vadd.f32 %v1147_v59, %v1127_v37  ;;  %v7120_v62 = vld [vmem:[#allocation25_spill] sm:$0xff] }
  0xd2   : >> { %v1164_v43 = vadd.f32 %v1148_v19, %v1128_v45  ;;  %v1165_v55 = vadd.f32 %v1149_v18, %v1129_v63  ;;  %v1166_v13 = vadd.f32 %v1150_v26, %v1130_v35  ;;  %v1167_v29 = vadd.f32 %v1151_v9, %v1131_v53 }
  0xd3   : >> { %v1168_v33 = vadd.f32 %v1152_v58, %v1132_v54  ;;  %v1169_v39 = vadd.f32 %v1153_v27, %v1133_v12  ;;  %v1170_v40 = vadd.f32 %v1154_v17, %v1134_v60  ;;  %v1171_v46 = vadd.f32 %v1155_v23, %v1135_v61 }
  0xd4   : >> { %v1172_v8 = vadd.f32 %v1156_v24, %v1136_v11  ;;  %v1173_v20 = vadd.f32 %v1157_v6, %v1137_v30  ;;  %v1174_v21 = vadd.f32 %v1158_v36, %v1138_v28  ;;  %v1175_v25 = vadd.f32 %v1159_v49, %v1139_v16 }
  0xd5   : >> { %v1176_v44 = vadd.f32 %v1160_v1, %v1140_v57  ;;  %v1177_v56 = vadd.f32 %v1161_v5, %v1141_v10  ;;  %v1178_v52 = vadd.f32 %v1162_v51, %v1142_v34  ;;  %v1183_v37 = vmul.f32 %v7120_v62, %v5069_v2  ;;  %v5185_v10 = vld [vmem:[%s4476_s20 + $0x127] sm:$0xff]  ;;  %v5188_v2 = vld [vmem:[%s4476_s20 + $0x12f] sm:$0xff] }
  0xd6   : >> { %v1184_v35 = vmul.f32 %v7120_v62, %v5072_v42  ;;  %v1185_v54 = vmul.f32 %v7120_v62, %v5075_v3  ;;  %v1186_v60 = vmul.f32 %v7120_v62, %v5094_v31  ;;  %v1187_v11 = vmul.f32 %v7120_v62, %v5097_v41  ;;  %v7121_v51 = vld [vmem:[#allocation26_spill] sm:$0xff] }
  0xd7   : >> { %v1188_v61 = vmul.f32 %v7120_v62, %v5100_v32  ;;  %v1189_v12 = vmul.f32 %v7120_v62, %v5103_v47  ;;  %v1190_v34 = vmul.f32 %v7120_v62, %v5106_v15  ;;  %v1191_v42 = vmul.f32 %v7120_v62, %v5109_v50 }
  0xd8   : >> { %v1192_v63 = vmul.f32 %v7120_v62, %v5116_v48  ;;  %v1193_v53 = vmul.f32 %v7120_v62, %v5119_v7  ;;  %v1194_v57 = vmul.f32 %v7120_v62, %v5122_v14  ;;  %v1195_v45 = vmul.f32 %v7120_v62, %v5147_v38 }
  0xd9   : >> { %v1196_v16 = vmul.f32 %v7120_v62, %v5150_v22  ;;  %v1197_v28 = vmul.f32 %v7120_v62, %v5185_v10  ;;  %v1198_v30 = vmul.f32 %v7120_v62, %v5188_v2  ;;  %v1199_v4 = vadd.f32 %v1183_v37, %v1163_v0 }
  0xda   : >> { %v1200_v59 = vadd.f32 %v1184_v35, %v1164_v43  ;;  %v1201_v19 = vadd.f32 %v1185_v54, %v1165_v55  ;;  %v1202_v18 = vadd.f32 %v1186_v60, %v1166_v13  ;;  %v1203_v26 = vadd.f32 %v1187_v11, %v1167_v29 }
  0xdb   : >> { %v1204_v9 = vadd.f32 %v1188_v61, %v1168_v33  ;;  %v1205_v58 = vadd.f32 %v1189_v12, %v1169_v39  ;;  %v1206_v27 = vadd.f32 %v1190_v34, %v1170_v40  ;;  %v1207_v17 = vadd.f32 %v1191_v42, %v1171_v46  ;;  %v5223_v40 = vld [vmem:[%s4476_s20 + $0x147] sm:$0xff] }
  0xdc   : >> { %v1208_v23 = vadd.f32 %v1192_v63, %v1172_v8  ;;  %v1209_v24 = vadd.f32 %v1193_v53, %v1173_v20  ;;  %v1210_v6 = vadd.f32 %v1194_v57, %v1174_v21  ;;  %v1211_v36 = vadd.f32 %v1195_v45, %v1175_v25 }
  0xdd   : >> { %v1212_v49 = vadd.f32 %v1196_v16, %v1176_v44  ;;  %v1213_v1 = vadd.f32 %v1197_v28, %v1177_v56  ;;  %v1214_v5 = vadd.f32 %v1198_v30, %v1178_v52  ;;  %v1219_v0 = vmul.f32 %v7121_v51, %v5075_v3  ;;  %v7122_v30 = vld [vmem:[#allocation27_spill] sm:$0xff] }
  0xde   : >> { %v1220_v43 = vmul.f32 %v7121_v51, %v5094_v31  ;;  %v1221_v55 = vmul.f32 %v7121_v51, %v5097_v41  ;;  %v1222_v13 = vmul.f32 %v7121_v51, %v5100_v32  ;;  %v1223_v29 = vmul.f32 %v7121_v51, %v5103_v47  ;;  %v5226_v31 = vld [vmem:[%s4476_s20 + $0x14f] sm:$0xff] }
  0xdf   : >> { %v1224_v33 = vmul.f32 %v7121_v51, %v5106_v15  ;;  %v1225_v39 = vmul.f32 %v7121_v51, %v5109_v50  ;;  %v1226_v3 = vmul.f32 %v7121_v51, %v5116_v48  ;;  %v1227_v46 = vmul.f32 %v7121_v51, %v5119_v7 }
  0xe0   : >> { %v1228_v8 = vmul.f32 %v7121_v51, %v5122_v14  ;;  %v1229_v20 = vmul.f32 %v7121_v51, %v5147_v38  ;;  %v1230_v21 = vmul.f32 %v7121_v51, %v5150_v22  ;;  %v1231_v25 = vmul.f32 %v7121_v51, %v5185_v10 }
  0xe1   : >> { %v1232_v44 = vmul.f32 %v7121_v51, %v5188_v2  ;;  %v1233_v56 = vmul.f32 %v7121_v51, %v5223_v40  ;;  %v1234_v52 = vmul.f32 %v7121_v51, %v5226_v31  ;;  %v1235_v62 = vadd.f32 %v1219_v0, %v1199_v4 }
  0xe2   : >> { %v1236_v37 = vadd.f32 %v1220_v43, %v1200_v59  ;;  %v1237_v35 = vadd.f32 %v1221_v55, %v1201_v19  ;;  %v1238_v54 = vadd.f32 %v1222_v13, %v1202_v18  ;;  %v1239_v60 = vadd.f32 %v1223_v29, %v1203_v26 }
  0xe3   : >> { %v1240_v11 = vadd.f32 %v1224_v33, %v1204_v9  ;;  %v1241_v61 = vadd.f32 %v1225_v39, %v1205_v58  ;;  %v1242_v12 = vadd.f32 %v1226_v3, %v1206_v27  ;;  %v1243_v34 = vadd.f32 %v1227_v46, %v1207_v17  ;;  %v5261_v27 = vld [vmem:[%s4476_s20 + $0x167] sm:$0xff] }
  0xe4   : >> { %v1244_v42 = vadd.f32 %v1228_v8, %v1208_v23  ;;  %v1245_v63 = vadd.f32 %v1229_v20, %v1209_v24  ;;  %v1246_v53 = vadd.f32 %v1230_v21, %v1210_v6  ;;  %v1247_v57 = vadd.f32 %v1231_v25, %v1211_v36 }
  0xe5   : >> { %v1248_v45 = vadd.f32 %v1232_v44, %v1212_v49  ;;  %v1249_v16 = vadd.f32 %v1233_v56, %v1213_v1  ;;  %v1250_v28 = vadd.f32 %v1234_v52, %v1214_v5  ;;  %v1255_v4 = vmul.f32 %v7122_v30, %v5097_v41  ;;  %v7123_v52 = vld [vmem:[#allocation29_spill] sm:$0xff] }
  0xe6   : >> { %v1256_v59 = vmul.f32 %v7122_v30, %v5100_v32  ;;  %v1257_v19 = vmul.f32 %v7122_v30, %v5103_v47  ;;  %v1258_v18 = vmul.f32 %v7122_v30, %v5106_v15  ;;  %v1259_v26 = vmul.f32 %v7122_v30, %v5109_v50  ;;  %v5264_v32 = vld [vmem:[%s4476_s20 + $0x16f] sm:$0xff] }
  0xe7   : >> { %v1260_v9 = vmul.f32 %v7122_v30, %v5116_v48  ;;  %v1261_v58 = vmul.f32 %v7122_v30, %v5119_v7  ;;  %v1262_v41 = vmul.f32 %v7122_v30, %v5122_v14  ;;  %v1263_v17 = vmul.f32 %v7122_v30, %v5147_v38 }
  0xe8   : >> { %v1264_v23 = vmul.f32 %v7122_v30, %v5150_v22  ;;  %v1265_v24 = vmul.f32 %v7122_v30, %v5185_v10  ;;  %v1266_v6 = vmul.f32 %v7122_v30, %v5188_v2  ;;  %v1267_v36 = vmul.f32 %v7122_v30, %v5223_v40 }
  0xe9   : >> { %v1268_v49 = vmul.f32 %v7122_v30, %v5226_v31  ;;  %v1269_v1 = vmul.f32 %v7122_v30, %v5261_v27  ;;  %v1270_v5 = vmul.f32 %v7122_v30, %v5264_v32  ;;  %v1271_v51 = vadd.f32 %v1255_v4, %v1235_v62 }
  0xea   : >> { %v1272_v0 = vadd.f32 %v1256_v59, %v1236_v37  ;;  %v1273_v43 = vadd.f32 %v1257_v19, %v1237_v35  ;;  %v1274_v55 = vadd.f32 %v1258_v18, %v1238_v54  ;;  %v1275_v13 = vadd.f32 %v1259_v26, %v1239_v60 }
  0xeb   : >> { %v1276_v29 = vadd.f32 %v1260_v9, %v1240_v11  ;;  %v1277_v33 = vadd.f32 %v1261_v58, %v1241_v61  ;;  %v1278_v39 = vadd.f32 %v1262_v41, %v1242_v12  ;;  %v1279_v3 = vadd.f32 %v1263_v17, %v1243_v34  ;;  %v1103_v12 = vld [vmem:[%s4476_s20 + $0x187] sm:$0xff] }
  0xec   : >> { %v1280_v46 = vadd.f32 %v1264_v23, %v1244_v42  ;;  %v1281_v8 = vadd.f32 %v1265_v24, %v1245_v63  ;;  %v1282_v20 = vadd.f32 %v1266_v6, %v1246_v53  ;;  %v1283_v21 = vadd.f32 %v1267_v36, %v1247_v57 }
  0xed   : >> { %v1284_v25 = vadd.f32 %v1268_v49, %v1248_v45  ;;  %v1285_v44 = vadd.f32 %v1269_v1, %v1249_v16  ;;  %v1286_v56 = vadd.f32 %v1270_v5, %v1250_v28  ;;  %v1291_v62 = vmul.f32 %v7123_v52, %v5103_v47  ;;  %v1105_v5 = vld [vmem:[%s4476_s20 + $0x1a7] sm:$0xff] }
  0xee   : >> { %v1292_v37 = vmul.f32 %v7123_v52, %v5106_v15  ;;  %v1293_v35 = vmul.f32 %v7123_v52, %v5109_v50  ;;  %v1294_v54 = vmul.f32 %v7123_v52, %v5116_v48  ;;  %v1295_v60 = vmul.f32 %v7123_v52, %v5119_v7  ;;  %v1104_v15 = vld [vmem:[%s4476_s20 + $0x18f] sm:$0xff] }
  0xef   : >> { %v1296_v11 = vmul.f32 %v7123_v52, %v5122_v14  ;;  %v1297_v61 = vmul.f32 %v7123_v52, %v5147_v38  ;;  %v1298_v47 = vmul.f32 %v7123_v52, %v5150_v22  ;;  %v1299_v34 = vmul.f32 %v7123_v52, %v5185_v10 }
  0xf0   : >> { %v1300_v42 = vmul.f32 %v7123_v52, %v5188_v2  ;;  %v1301_v63 = vmul.f32 %v7123_v52, %v5223_v40  ;;  %v1302_v53 = vmul.f32 %v7123_v52, %v5226_v31  ;;  %v1303_v57 = vmul.f32 %v7123_v52, %v5261_v27 }
  0xf1   : >> { %v1304_v45 = vmul.f32 %v7123_v52, %v5264_v32  ;;  %v1305_v16 = vmul.f32 %v7123_v52, %v1103_v12  ;;  %v1306_v28 = vmul.f32 %v7123_v52, %v1104_v15  ;;  %v1307_v30 = vadd.f32 %v1291_v62, %v1271_v51  ;;  %v1106_v52 = vld [vmem:[%s4476_s20 + $0x1af] sm:$0xff]  ;;  %v7124_v51 = vld [vmem:[#allocation30_spill] sm:$0xff] }
  0xf2   : >> { %v1308_v4 = vadd.f32 %v1292_v37, %v1272_v0  ;;  %v1309_v59 = vadd.f32 %v1293_v35, %v1273_v43  ;;  %v1310_v19 = vadd.f32 %v1294_v54, %v1274_v55  ;;  %v1311_v18 = vadd.f32 %v1295_v60, %v1275_v13  ;;  %v1362_v60 = vld [vmem:[%s4476_s20 + $0x30] sm:$0xff] }
  0xf3   : >> { %v1312_v26 = vadd.f32 %v1296_v11, %v1276_v29  ;;  %v1313_v9 = vadd.f32 %v1297_v61, %v1277_v33  ;;  %v1314_v58 = vadd.f32 %v1298_v47, %v1278_v39  ;;  %v1315_v41 = vadd.f32 %v1299_v34, %v1279_v3  ;;  %v5352_v34 = vld [vmem:[%s4476_s20 + $0x50] sm:$0xff] }
  0xf4   : >> { %v1316_v17 = vadd.f32 %v1300_v42, %v1280_v46  ;;  %v1317_v23 = vadd.f32 %v1301_v63, %v1281_v8  ;;  %v1318_v24 = vadd.f32 %v1302_v53, %v1282_v20  ;;  %v1319_v6 = vadd.f32 %v1303_v57, %v1283_v21  ;;  %v5355_v42 = vld [vmem:[%s4476_s20 + $0x68] sm:$0xff]  ;;  %v5358_v63 = vld [vmem:[%s4476_s20 + $0x70] sm:$0xff] }
  0xf5   : >> { %v1320_v36 = vadd.f32 %v1304_v45, %v1284_v25  ;;  %v1321_v49 = vadd.f32 %v1305_v16, %v1285_v44  ;;  %v1322_v1 = vadd.f32 %v1306_v28, %v1286_v56  ;;  %v1327_v0 = vmul.f32 %v7124_v51, %v5109_v50  ;;  %v1359_v25 = vld [vmem:[%s4476_s20 + $0x8] sm:$0xff]  ;;  %v1360_v44 = vld [vmem:[%s4476_s20 + $0x10] sm:$0xff] }
  0xf6   : >> { %v1328_v43 = vmul.f32 %v7124_v51, %v5116_v48  ;;  %v1329_v55 = vmul.f32 %v7124_v51, %v5119_v7  ;;  %v1330_v13 = vmul.f32 %v7124_v51, %v5122_v14  ;;  %v1331_v29 = vmul.f32 %v7124_v51, %v5147_v38  ;;  %v1361_v56 = vld [vmem:[%s4476_s20 + $0x28] sm:$0xff]  ;;  %v5364_v57 = vld [vmem:[%s4476_s20 + $0x90] sm:$0xff] }
  0xf7   : >> { %v1332_v33 = vmul.f32 %v7124_v51, %v5150_v22  ;;  %v1333_v39 = vmul.f32 %v7124_v51, %v5185_v10  ;;  %v1334_v50 = vmul.f32 %v7124_v51, %v5188_v2  ;;  %v1335_v48 = vmul.f32 %v7124_v51, %v5223_v40  ;;  %v5361_v53 = vld [vmem:[%s4476_s20 + $0x88] sm:$0xff] }
  0xf8   : >> { %v1336_v7 = vmul.f32 %v7124_v51, %v5226_v31  ;;  %v1337_v14 = vmul.f32 %v7124_v51, %v5261_v27  ;;  %v1338_v38 = vmul.f32 %v7124_v51, %v5264_v32  ;;  %v1339_v22 = vmul.f32 %v7124_v51, %v1103_v12  ;;  %v7125_v45 = vld [vmem:[#allocation31_spill] sm:$0xff] }
  0xf9   : >> { %v1340_v10 = vmul.f32 %v7124_v51, %v1104_v15  ;;  %v1341_v2 = vmul.f32 %v7124_v51, %v1105_v5  ;;  %v1342_v40 = vmul.f32 %v7124_v51, %v1106_v52  ;;  %v1343_v3 = vadd.f32 %v1327_v0, %v1307_v30  ;;  %v5349_v15 = vld [vmem:[%s4476_s20 + $0x48] sm:$0xff] }
  0xfa   : >> { %v1344_v46 = vadd.f32 %v1328_v43, %v1308_v4  ;;  %v1345_v31 = vadd.f32 %v1329_v55, %v1309_v59  ;;  %v1346_v8 = vadd.f32 %v1330_v13, %v1310_v19  ;;  %v1347_v20 = vadd.f32 %v1331_v29, %v1311_v18  ;;  %v5371_v59 = vld [vmem:[%s4476_s20 + $0xa8] sm:$0xff]  ;;  %v5374_v19 = vld [vmem:[%s4476_s20 + $0xb0] sm:$0xff] }
  0xfb   : >> { %v1348_v27 = vadd.f32 %v1332_v33, %v1312_v26  ;;  %v1349_v21 = vadd.f32 %v1333_v39, %v1313_v9  ;;  %v1350_v32 = vadd.f32 %v1334_v50, %v1314_v58  ;;  %v1351_v62 = vadd.f32 %v1335_v48, %v1315_v41  ;;  %v5377_v18 = vld [vmem:[%s4476_s20 + $0xc8] sm:$0xff] }
  0xfc   : >> { %v1352_v37 = vadd.f32 %v1336_v7, %v1316_v17  ;;  %v1353_v35 = vadd.f32 %v1337_v14, %v1317_v23  ;;  %v1354_v54 = vadd.f32 %v1338_v38, %v1318_v24  ;;  %v1355_v11 = vadd.f32 %v1339_v22, %v1319_v6  ;;  %v5388_v17 = vld [vmem:[%s4476_s20 + $0xd0] sm:$0xff]  ;;  %v5391_v23 = vld [vmem:[%s4476_s20 + $0xe8] sm:$0xff] }
  0xfd   : >> { %v1356_v61 = vadd.f32 %v1340_v10, %v1320_v36  ;;  %v1357_v47 = vadd.f32 %v1341_v2, %v1321_v49  ;;  %v1358_v12 = vadd.f32 %v1342_v40, %v1322_v1  ;;  %v1391_v16 = vmul.f32 %v7125_v45, %v1359_v25  ;;  %7126 = vst [vmem:[#allocation25_spill] sm:$0xff] %v5388_v17  ;;  %v5394_v24 = vld [vmem:[%s4476_s20 + $0xf0] sm:$0xff] }
  0xfe   : >> { %v1392_v28 = vmul.f32 %v7125_v45, %v1360_v44  ;;  %v1393_v30 = vmul.f32 %v7125_v45, %v1361_v56  ;;  %v1394_v4 = vmul.f32 %v7125_v45, %v1362_v60  ;;  %v1395_v26 = vmul.f32 %v7125_v45, %v5349_v15  ;;  %7127 = vst [vmem:[#allocation26_spill] sm:$0xff] %v5391_v23  ;;  %v7128_v44 = vld [vmem:[#allocation24_spill] sm:$0xff] }
  0xff   : >> { %v1396_v9 = vmul.f32 %v7125_v45, %v5352_v34  ;;  %v1397_v58 = vmul.f32 %v7125_v45, %v5355_v42  ;;  %v1398_v41 = vmul.f32 %v7125_v45, %v5358_v63  ;;  %v1399_v6 = vmul.f32 %v7125_v45, %v5361_v53 }
 0x100   : >> { %v1400_v36 = vmul.f32 %v7125_v45, %v5364_v57  ;;  %v1401_v49 = vmul.f32 %v7125_v45, %v5371_v59  ;;  %v1402_v1 = vmul.f32 %v7125_v45, %v5374_v19  ;;  %v1403_v5 = vmul.f32 %v7125_v45, %v5377_v18 }
 0x101   : >> { %v1404_v52 = vmul.f32 %v7125_v45, %v5388_v17  ;;  %v1405_v51 = vmul.f32 %v7125_v45, %v5391_v23  ;;  %v1406_v0 = vmul.f32 %v7125_v45, %v5394_v24  ;;  %v1407_v43 = vadd.f32 %v1391_v16, %v1343_v3  ;;  %v7129_v23 = vld [vmem:[#allocation11_spill] sm:$0xff]  ;;  %v7130_v45 = vld [vmem:[#allocation28_spill] sm:$0xff] }
 0x102   : >> { %v1408_v55 = vadd.f32 %v1392_v28, %v1344_v46  ;;  %v1409_v13 = vadd.f32 %v1393_v30, %v1345_v31  ;;  %v1410_v29 = vadd.f32 %v1394_v4, %v1346_v8  ;;  %v1411_v33 = vadd.f32 %v1395_v26, %v1347_v20  ;;  %v7131_v3 = vld [vmem:[#allocation12_spill] sm:$0xff]  ;;  %v7132_v31 = vld [vmem:[#allocation18_spill] sm:$0xff]  ;;  %v7133_v8 = vld [vmem:[#allocation13_spill] sm:$0xff] }
 0x103   : >> { %v1412_v39 = vadd.f32 %v1396_v9, %v1348_v27  ;;  %v1413_v50 = vadd.f32 %v1397_v58, %v1349_v21  ;;  %v1414_v48 = vadd.f32 %v1398_v41, %v1350_v32  ;;  %v1415_v7 = vadd.f32 %v1399_v6, %v1351_v62  ;;  %v7135_v27 = vld [vmem:[#allocation19_spill] sm:$0xff]  ;;  %v7137_v32 = vld [vmem:[#allocation20_spill] sm:$0xff]  ;;  %v7138_v62 = vld [vmem:[#allocation14_spill] sm:$0xff] }
 0x104   : >> { %v1416_v14 = vadd.f32 %v1400_v36, %v1352_v37  ;;  %v1417_v38 = vadd.f32 %v1401_v49, %v1353_v35  ;;  %v1418_v22 = vadd.f32 %v1402_v1, %v1354_v54  ;;  %v1419_v10 = vadd.f32 %v1403_v5, %v1355_v11  ;;  %v7140_v35 = vld [vmem:[#allocation21_spill] sm:$0xff]  ;;  %v7141_v54 = vld [vmem:[#allocation15_spill] sm:$0xff] }
 0x105   : >> { %v1420_v2 = vadd.f32 %v1404_v52, %v1356_v61  ;;  %v1421_v40 = vadd.f32 %v1405_v51, %v1357_v47  ;;  %v1422_v25 = vadd.f32 %v1406_v0, %v1358_v12  ;;  %v1426_v17 = vrot.slane %v7129_v23, %v7128_v44  ;;  %v7143_v61 = vld [vmem:[#allocation22_spill] sm:$0xff]  ;;  %v7146_v16 = vld [vmem:[#allocation23_spill] sm:$0xff]  ;;  %v7148_v52 = vld [vmem:[#allocation25_spill] sm:$0xff] }
 0x106   : >> { %v1462_v46 = vrot.slane %v7131_v3, %v7130_v45  ;;  %v5418_v20 = vrot.slane %v7133_v8, %v7132_v31  ;;  %v5422_v21 = vrot.slane %v7133_v8, %v7135_v27  ;;  %v5426_v37 = vrot.slane %v7138_v62, %v7137_v32  ;;  %v7144_v47 = vld [vmem:[#allocation10_spill] sm:$0xff]  ;;  %v5450_v1 = vld [vmem:[%s4476_s20 + $0x110] sm:$0xff] }
 0x107   : >> { %v5430_v11 = vrot.slane %v7141_v54, %v7140_v35  ;;  %v5434_v12 = vrot.slane %v7144_v47, %v7143_v61  ;;  %v5438_v28 = vrot.slane %v7129_v23, %v7146_v16  ;;  %v1427_v30 = vmul.f32 %v1426_v17, %v1361_v56  ;;  %v5447_v49 = vld [vmem:[%s4476_s20 + $0x108] sm:$0xff] }
 0x108   : >> { %7134 = vst [vmem:[#allocation27_spill] sm:$0xff] %v5418_v20  ;;  %7136 = vst [vmem:[#allocation29_spill] sm:$0xff] %v5422_v21  ;;  %v1428_v4 = vmul.f32 %v1426_v17, %v1362_v60  ;;  %v1429_v26 = vmul.f32 %v1426_v17, %v5349_v15  ;;  %v1430_v9 = vmul.f32 %v1426_v17, %v5352_v34  ;;  %v7149_v0 = vld [vmem:[#allocation26_spill] sm:$0xff] }
 0x109   : >> { %7139 = vst [vmem:[#allocation30_spill] sm:$0xff] %v5426_v37  ;;  %7142 = vst [vmem:[#allocation31_spill] sm:$0xff] %v5430_v11  ;;  %v1431_v58 = vmul.f32 %v1426_v17, %v5355_v42  ;;  %v1432_v41 = vmul.f32 %v1426_v17, %v5358_v63  ;;  %v1433_v6 = vmul.f32 %v1426_v17, %v5361_v53 }
 0x10a   : >> { %7145 = vst [vmem:[#allocation32_spill] sm:$0xff] %v5434_v12  ;;  %7147 = vst [vmem:[#allocation33_spill] sm:$0xff] %v5438_v28  ;;  %v1434_v36 = vmul.f32 %v1426_v17, %v5364_v57  ;;  %v1435_v5 = vmul.f32 %v1426_v17, %v5371_v59  ;;  %v1436_v56 = vmul.f32 %v1426_v17, %v5374_v19 }
 0x10b   : >> { %v1437_v60 = vmul.f32 %v1426_v17, %v5377_v18  ;;  %v1438_v51 = vmul.f32 %v1426_v17, %v7148_v52  ;;  %v1439_v16 = vmul.f32 %v1426_v17, %v7149_v0  ;;  %v1440_v23 = vmul.f32 %v1426_v17, %v5394_v24 }
 0x10c   : >> { %v1441_v61 = vmul.f32 %v1426_v17, %v5447_v49  ;;  %v1442_v47 = vmul.f32 %v1426_v17, %v5450_v1  ;;  %v1443_v35 = vadd.f32 %v1427_v30, %v1407_v43  ;;  %v1444_v54 = vadd.f32 %v1428_v4, %v1408_v55 }
 0x10d   : >> { %v1445_v32 = vadd.f32 %v1429_v26, %v1409_v13  ;;  %v1446_v27 = vadd.f32 %v1430_v9, %v1410_v29  ;;  %v1447_v62 = vadd.f32 %v1431_v58, %v1411_v33  ;;  %v1448_v31 = vadd.f32 %v1432_v41, %v1412_v39 }
 0x10e   : >> { %v1449_v8 = vadd.f32 %v1433_v6, %v1413_v50  ;;  %v1450_v45 = vadd.f32 %v1434_v36, %v1414_v48  ;;  %v1451_v3 = vadd.f32 %v1435_v5, %v1415_v7  ;;  %v1452_v44 = vadd.f32 %v1436_v56, %v1416_v14  ;;  %v5469_v48 = vld [vmem:[%s4476_s20 + $0x128] sm:$0xff] }
 0x10f   : >> { %v1453_v28 = vadd.f32 %v1437_v60, %v1417_v38  ;;  %v1454_v12 = vadd.f32 %v1438_v51, %v1418_v22  ;;  %v1455_v11 = vadd.f32 %v1439_v16, %v1419_v10  ;;  %v1456_v37 = vadd.f32 %v1440_v23, %v1420_v2  ;;  %v5472_v23 = vld [vmem:[%s4476_s20 + $0x130] sm:$0xff] }
 0x110   : >> { %v1457_v21 = vadd.f32 %v1441_v61, %v1421_v40  ;;  %v1458_v20 = vadd.f32 %v1442_v47, %v1422_v25  ;;  %v1463_v17 = vmul.f32 %v1462_v46, %v5349_v15  ;;  %v1464_v43 = vmul.f32 %v1462_v46, %v5352_v34 }
 0x111   : >> { %v1465_v55 = vmul.f32 %v1462_v46, %v5355_v42  ;;  %v1466_v13 = vmul.f32 %v1462_v46, %v5358_v63  ;;  %v1467_v29 = vmul.f32 %v1462_v46, %v5361_v53  ;;  %v1468_v33 = vmul.f32 %v1462_v46, %v5364_v57 }
 0x112   : >> { %v1469_v39 = vmul.f32 %v1462_v46, %v5371_v59  ;;  %v1470_v50 = vmul.f32 %v1462_v46, %v5374_v19  ;;  %v1471_v15 = vmul.f32 %v1462_v46, %v5377_v18  ;;  %v1472_v34 = vmul.f32 %v1462_v46, %v7148_v52 }
 0x113   : >> { %v1473_v7 = vmul.f32 %v1462_v46, %v7149_v0  ;;  %v1474_v14 = vmul.f32 %v1462_v46, %v5394_v24  ;;  %v1475_v38 = vmul.f32 %v1462_v46, %v5447_v49  ;;  %v1476_v22 = vmul.f32 %v1462_v46, %v5450_v1 }
 0x114   : >> { %v1477_v10 = vmul.f32 %v1462_v46, %v5469_v48  ;;  %v1478_v2 = vmul.f32 %v1462_v46, %v5472_v23  ;;  %v1479_v40 = vadd.f32 %v1463_v17, %v1443_v35  ;;  %v1480_v25 = vadd.f32 %v1464_v43, %v1444_v54  ;;  %v7150_v46 = vld [vmem:[#allocation27_spill] sm:$0xff] }
 0x115   : >> { %v1481_v61 = vadd.f32 %v1465_v55, %v1445_v32  ;;  %v1482_v47 = vadd.f32 %v1466_v13, %v1446_v27  ;;  %v1483_v16 = vadd.f32 %v1467_v29, %v1447_v62  ;;  %v1484_v30 = vadd.f32 %v1468_v33, %v1448_v31 }
 0x116   : >> { %v1485_v4 = vadd.f32 %v1469_v39, %v1449_v8  ;;  %v1486_v26 = vadd.f32 %v1470_v50, %v1450_v45  ;;  %v1487_v9 = vadd.f32 %v1471_v15, %v1451_v3  ;;  %v1488_v58 = vadd.f32 %v1472_v34, %v1452_v44 }
 0x117   : >> { %v1489_v41 = vadd.f32 %v1473_v7, %v1453_v28  ;;  %v1490_v6 = vadd.f32 %v1474_v14, %v1454_v12  ;;  %v1491_v36 = vadd.f32 %v1475_v38, %v1455_v11  ;;  %v1492_v5 = vadd.f32 %v1476_v22, %v1456_v37 }
 0x118   : >> { %v1493_v56 = vadd.f32 %v1477_v10, %v1457_v21  ;;  %v1494_v60 = vadd.f32 %v1478_v2, %v1458_v20  ;;  %v1499_v35 = vmul.f32 %v7150_v46, %v5355_v42  ;;  %v1500_v27 = vmul.f32 %v7150_v46, %v5358_v63  ;;  %v5499_v20 = vld [vmem:[%s4476_s20 + $0x148] sm:$0xff]  ;;  %v5502_v63 = vld [vmem:[%s4476_s20 + $0x150] sm:$0xff]  ;;  %v7151_v2 = vld [vmem:[#allocation29_spill] sm:$0xff] }
 0x119   : >> { %v1501_v31 = vmul.f32 %v7150_v46, %v5361_v53  ;;  %v1502_v45 = vmul.f32 %v7150_v46, %v5364_v57  ;;  %v1503_v44 = vmul.f32 %v7150_v46, %v5371_v59  ;;  %v1504_v3 = vmul.f32 %v7150_v46, %v5374_v19 }
 0x11a   : >> { %v1505_v8 = vmul.f32 %v7150_v46, %v5377_v18  ;;  %v1506_v42 = vmul.f32 %v7150_v46, %v7148_v52  ;;  %v1507_v21 = vmul.f32 %v7150_v46, %v7149_v0  ;;  %v1508_v32 = vmul.f32 %v7150_v46, %v5394_v24 }
 0x11b   : >> { %v1509_v62 = vmul.f32 %v7150_v46, %v5447_v49  ;;  %v1510_v37 = vmul.f32 %v7150_v46, %v5450_v1  ;;  %v1511_v54 = vmul.f32 %v7150_v46, %v5469_v48  ;;  %v1512_v11 = vmul.f32 %v7150_v46, %v5472_v23 }
 0x11c   : >> { %v1513_v12 = vmul.f32 %v7150_v46, %v5499_v20  ;;  %v1514_v28 = vmul.f32 %v7150_v46, %v5502_v63  ;;  %v1515_v51 = vadd.f32 %v1499_v35, %v1479_v40  ;;  %v1516_v17 = vadd.f32 %v1500_v27, %v1480_v25 }
 0x11d   : >> { %v1517_v43 = vadd.f32 %v1501_v31, %v1481_v61  ;;  %v1518_v55 = vadd.f32 %v1502_v45, %v1482_v47  ;;  %v1519_v13 = vadd.f32 %v1503_v44, %v1483_v16  ;;  %v1520_v29 = vadd.f32 %v1504_v3, %v1484_v30 }
 0x11e   : >> { %v1521_v33 = vadd.f32 %v1505_v8, %v1485_v4  ;;  %v1522_v39 = vadd.f32 %v1506_v42, %v1486_v26  ;;  %v1523_v50 = vadd.f32 %v1507_v21, %v1487_v9  ;;  %v1524_v15 = vadd.f32 %v1508_v32, %v1488_v58  ;;  %v5537_v26 = vld [vmem:[%s4476_s20 + $0x168] sm:$0xff] }
 0x11f   : >> { %v1525_v34 = vadd.f32 %v1509_v62, %v1489_v41  ;;  %v1526_v7 = vadd.f32 %v1510_v37, %v1490_v6  ;;  %v1527_v14 = vadd.f32 %v1511_v54, %v1491_v36  ;;  %v1528_v38 = vadd.f32 %v1512_v11, %v1492_v5 }
 0x120   : >> { %v1529_v22 = vadd.f32 %v1513_v12, %v1493_v56  ;;  %v1530_v10 = vadd.f32 %v1514_v28, %v1494_v60  ;;  %v1535_v40 = vmul.f32 %v7151_v2, %v5361_v53  ;;  %v1536_v25 = vmul.f32 %v7151_v2, %v5364_v57  ;;  %v5540_v57 = vld [vmem:[%s4476_s20 + $0x170] sm:$0xff]  ;;  %v7152_v28 = vld [vmem:[#allocation30_spill] sm:$0xff] }
 0x121   : >> { %v1537_v61 = vmul.f32 %v7151_v2, %v5371_v59  ;;  %v1538_v47 = vmul.f32 %v7151_v2, %v5374_v19  ;;  %v1539_v16 = vmul.f32 %v7151_v2, %v5377_v18  ;;  %v1540_v30 = vmul.f32 %v7151_v2, %v7148_v52 }
 0x122   : >> { %v1541_v4 = vmul.f32 %v7151_v2, %v7149_v0  ;;  %v1542_v53 = vmul.f32 %v7151_v2, %v5394_v24  ;;  %v1543_v9 = vmul.f32 %v7151_v2, %v5447_v49  ;;  %v1544_v58 = vmul.f32 %v7151_v2, %v5450_v1 }
 0x123   : >> { %v1545_v41 = vmul.f32 %v7151_v2, %v5469_v48  ;;  %v1546_v6 = vmul.f32 %v7151_v2, %v5472_v23  ;;  %v1547_v36 = vmul.f32 %v7151_v2, %v5499_v20  ;;  %v1548_v5 = vmul.f32 %v7151_v2, %v5502_v63 }
 0x124   : >> { %v1549_v56 = vmul.f32 %v7151_v2, %v5537_v26  ;;  %v1550_v60 = vmul.f32 %v7151_v2, %v5540_v57  ;;  %v1551_v46 = vadd.f32 %v1535_v40, %v1515_v51  ;;  %v1552_v35 = vadd.f32 %v1536_v25, %v1516_v17 }
 0x125   : >> { %v1553_v27 = vadd.f32 %v1537_v61, %v1517_v43  ;;  %v1554_v31 = vadd.f32 %v1538_v47, %v1518_v55  ;;  %v1555_v45 = vadd.f32 %v1539_v16, %v1519_v13  ;;  %v1556_v44 = vadd.f32 %v1540_v30, %v1520_v29 }
 0x126   : >> { %v1557_v3 = vadd.f32 %v1541_v4, %v1521_v33  ;;  %v1558_v8 = vadd.f32 %v1542_v53, %v1522_v39  ;;  %v1559_v42 = vadd.f32 %v1543_v9, %v1523_v50  ;;  %v1560_v21 = vadd.f32 %v1544_v58, %v1524_v15  ;;  %v1383_v39 = vld [vmem:[%s4476_s20 + $0x188] sm:$0xff] }
 0x127   : >> { %v1561_v32 = vadd.f32 %v1545_v41, %v1525_v34  ;;  %v1562_v62 = vadd.f32 %v1546_v6, %v1526_v7  ;;  %v1563_v37 = vadd.f32 %v1547_v36, %v1527_v14  ;;  %v1564_v54 = vadd.f32 %v1548_v5, %v1528_v38 }
 0x128   : >> { %v1565_v11 = vadd.f32 %v1549_v56, %v1529_v22  ;;  %v1566_v12 = vadd.f32 %v1550_v60, %v1530_v10  ;;  %v1571_v51 = vmul.f32 %v7152_v28, %v5371_v59  ;;  %v1572_v17 = vmul.f32 %v7152_v28, %v5374_v19  ;;  %v1384_v19 = vld [vmem:[%s4476_s20 + $0x190] sm:$0xff]  ;;  %v1385_v60 = vld [vmem:[%s4476_s20 + $0x1a8] sm:$0xff] }
 0x129   : >> { %v1573_v43 = vmul.f32 %v7152_v28, %v5377_v18  ;;  %v1574_v55 = vmul.f32 %v7152_v28, %v7148_v52  ;;  %v1575_v13 = vmul.f32 %v7152_v28, %v7149_v0  ;;  %v1576_v29 = vmul.f32 %v7152_v28, %v5394_v24 }
 0x12a   : >> { %v1577_v33 = vmul.f32 %v7152_v28, %v5447_v49  ;;  %v1578_v59 = vmul.f32 %v7152_v28, %v5450_v1  ;;  %v1579_v50 = vmul.f32 %v7152_v28, %v5469_v48  ;;  %v1580_v15 = vmul.f32 %v7152_v28, %v5472_v23 }
 0x12b   : >> { %v1581_v34 = vmul.f32 %v7152_v28, %v5499_v20  ;;  %v1582_v7 = vmul.f32 %v7152_v28, %v5502_v63  ;;  %v1583_v14 = vmul.f32 %v7152_v28, %v5537_v26  ;;  %v1584_v38 = vmul.f32 %v7152_v28, %v5540_v57 }
 0x12c   : >> { %v1585_v22 = vmul.f32 %v7152_v28, %v1383_v39  ;;  %v1586_v10 = vmul.f32 %v7152_v28, %v1384_v19  ;;  %v1587_v2 = vadd.f32 %v1571_v51, %v1551_v46  ;;  %v1588_v40 = vadd.f32 %v1572_v17, %v1552_v35  ;;  %v1386_v28 = vld [vmem:[%s4476_s20 + $0x1b0] sm:$0xff] }
 0x12d   : >> { %v1589_v25 = vadd.f32 %v1573_v43, %v1553_v27  ;;  %v1590_v61 = vadd.f32 %v1574_v55, %v1554_v31  ;;  %v1591_v47 = vadd.f32 %v1575_v13, %v1555_v45  ;;  %v1592_v16 = vadd.f32 %v1576_v29, %v1556_v44  ;;  %v7153_v46 = vld [vmem:[#allocation31_spill] sm:$0xff] }
 0x12e   : >> { %v1593_v30 = vadd.f32 %v1577_v33, %v1557_v3  ;;  %v1594_v4 = vadd.f32 %v1578_v59, %v1558_v8  ;;  %v1595_v53 = vadd.f32 %v1579_v50, %v1559_v42  ;;  %v1596_v9 = vadd.f32 %v1580_v15, %v1560_v21  ;;  %v1642_v13 = vld [vmem:[%s4476_s20 + $0x31] sm:$0xff]  ;;  %v5631_v15 = vld [vmem:[%s4476_s20 + $0x69] sm:$0xff] }
 0x12f   : >> { %v1597_v58 = vadd.f32 %v1581_v34, %v1561_v32  ;;  %v1598_v41 = vadd.f32 %v1582_v7, %v1562_v62  ;;  %v1599_v6 = vadd.f32 %v1583_v14, %v1563_v37  ;;  %v1600_v36 = vadd.f32 %v1584_v38, %v1564_v54  ;;  %v1639_v54 = vld [vmem:[%s4476_s20 + $0x9] sm:$0xff]  ;;  %v5628_v50 = vld [vmem:[%s4476_s20 + $0x51] sm:$0xff] }
 0x130   : >> { %v1601_v5 = vadd.f32 %v1585_v22, %v1565_v11  ;;  %v1602_v56 = vadd.f32 %v1586_v10, %v1566_v12  ;;  %v1607_v35 = vmul.f32 %v7153_v46, %v5377_v18  ;;  %v1608_v27 = vmul.f32 %v7153_v46, %v7148_v52  ;;  %v1640_v11 = vld [vmem:[%s4476_s20 + $0x11] sm:$0xff]  ;;  %v1641_v12 = vld [vmem:[%s4476_s20 + $0x29] sm:$0xff] }
 0x131   : >> { %v1609_v31 = vmul.f32 %v7153_v46, %v7149_v0  ;;  %v1610_v45 = vmul.f32 %v7153_v46, %v5394_v24  ;;  %v1611_v44 = vmul.f32 %v7153_v46, %v5447_v49  ;;  %v1612_v3 = vmul.f32 %v7153_v46, %v5450_v1  ;;  %v5634_v34 = vld [vmem:[%s4476_s20 + $0x71] sm:$0xff]  ;;  %v5637_v7 = vld [vmem:[%s4476_s20 + $0x89] sm:$0xff] }
 0x132   : >> { %v1613_v8 = vmul.f32 %v7153_v46, %v5469_v48  ;;  %v1614_v18 = vmul.f32 %v7153_v46, %v5472_v23  ;;  %v1615_v52 = vmul.f32 %v7153_v46, %v5499_v20  ;;  %v1616_v0 = vmul.f32 %v7153_v46, %v5502_v63  ;;  %v5640_v14 = vld [vmem:[%s4476_s20 + $0x91] sm:$0xff] }
 0x133   : >> { %v1617_v24 = vmul.f32 %v7153_v46, %v5537_v26  ;;  %v1618_v49 = vmul.f32 %v7153_v46, %v5540_v57  ;;  %v1619_v1 = vmul.f32 %v7153_v46, %v1383_v39  ;;  %v1620_v48 = vmul.f32 %v7153_v46, %v1384_v19  ;;  %v5625_v19 = vld [vmem:[%s4476_s20 + $0x49] sm:$0xff]  ;;  %v7154_v38 = vld [vmem:[#allocation32_spill] sm:$0xff] }
 0x134   : >> { %v1621_v23 = vmul.f32 %v7153_v46, %v1385_v60  ;;  %v1622_v20 = vmul.f32 %v7153_v46, %v1386_v28  ;;  %v1623_v42 = vadd.f32 %v1607_v35, %v1587_v2  ;;  %v1624_v21 = vadd.f32 %v1608_v27, %v1588_v40 }
 0x135   : >> { %v1625_v63 = vadd.f32 %v1609_v31, %v1589_v25  ;;  %v1626_v32 = vadd.f32 %v1610_v45, %v1590_v61  ;;  %v1627_v62 = vadd.f32 %v1611_v44, %v1591_v47  ;;  %v1628_v26 = vadd.f32 %v1612_v3, %v1592_v16  ;;  %v5647_v25 = vld [vmem:[%s4476_s20 + $0xa9] sm:$0xff]  ;;  %v5650_v61 = vld [vmem:[%s4476_s20 + $0xb1] sm:$0xff] }
 0x136   : >> { %v1629_v37 = vadd.f32 %v1613_v8, %v1593_v30  ;;  %v1630_v57 = vadd.f32 %v1614_v18, %v1594_v4  ;;  %v1631_v51 = vadd.f32 %v1615_v52, %v1595_v53  ;;  %v1632_v17 = vadd.f32 %v1616_v0, %v1596_v9  ;;  %v5653_v47 = vld [vmem:[%s4476_s20 + $0xc9] sm:$0xff]  ;;  %v5664_v9 = vld [vmem:[%s4476_s20 + $0xd1] sm:$0xff] }
 0x137   : >> { %v1633_v43 = vadd.f32 %v1617_v24, %v1597_v58  ;;  %v1634_v55 = vadd.f32 %v1618_v49, %v1598_v41  ;;  %v1635_v29 = vadd.f32 %v1619_v1, %v1599_v6  ;;  %v1636_v33 = vadd.f32 %v1620_v48, %v1600_v36  ;;  %v5667_v58 = vld [vmem:[%s4476_s20 + $0xe9] sm:$0xff]  ;;  %v5670_v41 = vld [vmem:[%s4476_s20 + $0xf1] sm:$0xff] }
 0x138   : >> { %v1637_v59 = vadd.f32 %v1621_v23, %v1601_v5  ;;  %v1638_v39 = vadd.f32 %v1622_v20, %v1602_v56  ;;  %v1671_v22 = vmul.f32 %v7154_v38, %v1639_v54  ;;  %v1672_v10 = vmul.f32 %v7154_v38, %v1640_v11  ;;  %7155 = vst [vmem:[#allocation25_spill] sm:$0xff] %v5670_v41  ;;  %v7156_v11 = vld [vmem:[#allocation33_spill] sm:$0xff] }
 0x139   : >> { %v1673_v2 = vmul.f32 %v7154_v38, %v1641_v12  ;;  %v1674_v40 = vmul.f32 %v7154_v38, %v1642_v13  ;;  %v1675_v16 = vmul.f32 %v7154_v38, %v5625_v19  ;;  %v1676_v30 = vmul.f32 %v7154_v38, %v5628_v50 }
 0x13a   : >> { %v1677_v4 = vmul.f32 %v7154_v38, %v5631_v15  ;;  %v1678_v53 = vmul.f32 %v7154_v38, %v5634_v34  ;;  %v1679_v6 = vmul.f32 %v7154_v38, %v5637_v7  ;;  %v1680_v36 = vmul.f32 %v7154_v38, %v5640_v14 }
 0x13b   : >> { %v1681_v5 = vmul.f32 %v7154_v38, %v5647_v25  ;;  %v1682_v56 = vmul.f32 %v7154_v38, %v5650_v61  ;;  %v1683_v60 = vmul.f32 %v7154_v38, %v5653_v47  ;;  %v1684_v28 = vmul.f32 %v7154_v38, %v5664_v9 }
 0x13c   : >> { %v1685_v46 = vmul.f32 %v7154_v38, %v5667_v58  ;;  %v1686_v35 = vmul.f32 %v7154_v38, %v5670_v41  ;;  %v1687_v27 = vadd.f32 %v1671_v22, %v1623_v42  ;;  %v1688_v31 = vadd.f32 %v1672_v10, %v1624_v21 }
 0x13d   : >> { %v1689_v45 = vadd.f32 %v1673_v2, %v1625_v63  ;;  %v1690_v44 = vadd.f32 %v1674_v40, %v1626_v32  ;;  %v1691_v3 = vadd.f32 %v1675_v16, %v1627_v62  ;;  %v1692_v8 = vadd.f32 %v1676_v30, %v1628_v26 }
 0x13e   : >> { %v1693_v18 = vadd.f32 %v1677_v4, %v1629_v37  ;;  %v1694_v52 = vadd.f32 %v1678_v53, %v1630_v57  ;;  %v1695_v0 = vadd.f32 %v1679_v6, %v1631_v51  ;;  %v1696_v24 = vadd.f32 %v1680_v36, %v1632_v17  ;;  %v5703_v57 = vld [vmem:[%s4476_s20 + $0x109] sm:$0xff] }
 0x13f   : >> { %v1697_v49 = vadd.f32 %v1681_v5, %v1633_v43  ;;  %v1698_v1 = vadd.f32 %v1682_v56, %v1634_v55  ;;  %v1699_v48 = vadd.f32 %v1683_v60, %v1635_v29  ;;  %v1700_v23 = vadd.f32 %v1684_v28, %v1636_v33  ;;  %7157 = vst [vmem:[#allocation26_spill] sm:$0xff] %v5703_v57 }
 0x140   : >> { %v1701_v20 = vadd.f32 %v1685_v46, %v1637_v59  ;;  %v1702_v54 = vadd.f32 %v1686_v35, %v1638_v39  ;;  %v1707_v38 = vmul.f32 %v7156_v11, %v1641_v12  ;;  %v1708_v42 = vmul.f32 %v7156_v11, %v1642_v13  ;;  %v5706_v12 = vld [vmem:[%s4476_s20 + $0x111] sm:$0xff] }
 0x141   : >> { %v1709_v21 = vmul.f32 %v7156_v11, %v5625_v19  ;;  %v1710_v63 = vmul.f32 %v7156_v11, %v5628_v50  ;;  %v1711_v32 = vmul.f32 %v7156_v11, %v5631_v15  ;;  %v1712_v62 = vmul.f32 %v7156_v11, %v5634_v34  ;;  %v7158_v35 = vld [vmem:[#allocation24_spill] sm:$0xff] }
 0x142   : >> { %v1713_v26 = vmul.f32 %v7156_v11, %v5637_v7  ;;  %v1714_v37 = vmul.f32 %v7156_v11, %v5640_v14  ;;  %v1715_v51 = vmul.f32 %v7156_v11, %v5647_v25  ;;  %v1716_v17 = vmul.f32 %v7156_v11, %v5650_v61 }
 0x143   : >> { %v1717_v43 = vmul.f32 %v7156_v11, %v5653_v47  ;;  %v1718_v55 = vmul.f32 %v7156_v11, %v5664_v9  ;;  %v1719_v13 = vmul.f32 %v7156_v11, %v5667_v58  ;;  %v1720_v29 = vmul.f32 %v7156_v11, %v5670_v41 }
 0x144   : >> { %v1721_v33 = vmul.f32 %v7156_v11, %v5703_v57  ;;  %v1722_v59 = vmul.f32 %v7156_v11, %v5706_v12  ;;  %v1723_v39 = vadd.f32 %v1707_v38, %v1687_v27  ;;  %v1724_v22 = vadd.f32 %v1708_v42, %v1688_v31  ;;  %v7159_v57 = vld [vmem:[#allocation12_spill] sm:$0xff]  ;;  %v7161_v27 = vld [vmem:[#allocation13_spill] sm:$0xff]  ;;  %v7176_v38 = vld [vmem:[#allocation23_spill] sm:$0xff] }
 0x145   : >> { %v1725_v10 = vadd.f32 %v1709_v21, %v1689_v45  ;;  %v1726_v2 = vadd.f32 %v1710_v63, %v1690_v44  ;;  %v1727_v40 = vadd.f32 %v1711_v32, %v1691_v3  ;;  %v1728_v16 = vadd.f32 %v1712_v62, %v1692_v8  ;;  %v7160_v11 = vld [vmem:[#allocation28_spill] sm:$0xff]  ;;  %v7162_v45 = vld [vmem:[#allocation18_spill] sm:$0xff]  ;;  %v7165_v8 = vld [vmem:[#allocation19_spill] sm:$0xff] }
 0x146   : >> { %v1729_v30 = vadd.f32 %v1713_v26, %v1693_v18  ;;  %v1730_v4 = vadd.f32 %v1714_v37, %v1694_v52  ;;  %v1731_v53 = vadd.f32 %v1715_v51, %v1695_v0  ;;  %v1732_v6 = vadd.f32 %v1716_v17, %v1696_v24  ;;  %v7163_v44 = vld [vmem:[#allocation14_spill] sm:$0xff]  ;;  %v7167_v52 = vld [vmem:[#allocation20_spill] sm:$0xff]  ;;  %v7168_v0 = vld [vmem:[#allocation15_spill] sm:$0xff] }
 0x147   : >> { %v1733_v36 = vadd.f32 %v1717_v43, %v1697_v49  ;;  %v1734_v5 = vadd.f32 %v1718_v55, %v1698_v1  ;;  %v1735_v56 = vadd.f32 %v1719_v13, %v1699_v48  ;;  %v1736_v60 = vadd.f32 %v1720_v29, %v1700_v23  ;;  %v7170_v49 = vld [vmem:[#allocation21_spill] sm:$0xff]  ;;  %v7171_v1 = vld [vmem:[#allocation10_spill] sm:$0xff]  ;;  %v5764_v55 = vld [vmem:[%s4476_s20 + $0x131] sm:$0xff] }
 0x148   : >> { %v1737_v28 = vadd.f32 %v1721_v33, %v1701_v20  ;;  %v1738_v46 = vadd.f32 %v1722_v59, %v1702_v54  ;;  %v1742_v41 = vrot.slane %v7159_v57, %v7158_v35  ;;  %v1778_v31 = vrot.slane %v7161_v27, %v7160_v11  ;;  %v7173_v23 = vld [vmem:[#allocation22_spill] sm:$0xff]  ;;  %v7174_v20 = vld [vmem:[#allocation11_spill] sm:$0xff]  ;;  %v7178_v29 = vld [vmem:[#allocation25_spill] sm:$0xff] }
 0x149   : >> { %v5730_v3 = vrot.slane %v7163_v44, %v7162_v45  ;;  %v5734_v18 = vrot.slane %v7163_v44, %v7165_v8  ;;  %v5738_v24 = vrot.slane %v7168_v0, %v7167_v52  ;;  %v5742_v48 = vrot.slane %v7171_v1, %v7170_v49  ;;  %v5761_v43 = vld [vmem:[%s4476_s20 + $0x129] sm:$0xff] }
 0x14a   : >> { %v5746_v54 = vrot.slane %v7174_v20, %v7173_v23  ;;  %v5750_v42 = vrot.slane %v7159_v57, %v7176_v38  ;;  %v1743_v21 = vmul.f32 %v1742_v41, %v5625_v19  ;;  %v1744_v63 = vmul.f32 %v1742_v41, %v5628_v50  ;;  %v7179_v59 = vld [vmem:[#allocation26_spill] sm:$0xff] }
 0x14b   : >> { %7164 = vst [vmem:[#allocation27_spill] sm:$0xff] %v5730_v3  ;;  %7166 = vst [vmem:[#allocation29_spill] sm:$0xff] %v5734_v18  ;;  %v1745_v32 = vmul.f32 %v1742_v41, %v5631_v15  ;;  %v1746_v62 = vmul.f32 %v1742_v41, %v5634_v34  ;;  %v1747_v26 = vmul.f32 %v1742_v41, %v5637_v7 }
 0x14c   : >> { %7169 = vst [vmem:[#allocation30_spill] sm:$0xff] %v5738_v24  ;;  %7172 = vst [vmem:[#allocation31_spill] sm:$0xff] %v5742_v48  ;;  %v1748_v37 = vmul.f32 %v1742_v41, %v5640_v14  ;;  %v1749_v51 = vmul.f32 %v1742_v41, %v5647_v25  ;;  %v1750_v17 = vmul.f32 %v1742_v41, %v5650_v61 }
 0x14d   : >> { %7175 = vst [vmem:[#allocation32_spill] sm:$0xff] %v5746_v54  ;;  %7177 = vst [vmem:[#allocation33_spill] sm:$0xff] %v5750_v42  ;;  %v1751_v19 = vmul.f32 %v1742_v41, %v5653_v47  ;;  %v1752_v50 = vmul.f32 %v1742_v41, %v5664_v9  ;;  %v1753_v13 = vmul.f32 %v1742_v41, %v5667_v58 }
 0x14e   : >> { %v1754_v33 = vmul.f32 %v1742_v41, %v7178_v29  ;;  %v1755_v38 = vmul.f32 %v1742_v41, %v7179_v59  ;;  %v1756_v57 = vmul.f32 %v1742_v41, %v5706_v12  ;;  %v1757_v23 = vmul.f32 %v1742_v41, %v5761_v43 }
 0x14f   : >> { %v1758_v20 = vmul.f32 %v1742_v41, %v5764_v55  ;;  %v1759_v49 = vadd.f32 %v1743_v21, %v1723_v39  ;;  %v1760_v1 = vadd.f32 %v1744_v63, %v1724_v22  ;;  %v1761_v52 = vadd.f32 %v1745_v32, %v1725_v10 }
 0x150   : >> { %v1762_v8 = vadd.f32 %v1746_v62, %v1726_v2  ;;  %v1763_v0 = vadd.f32 %v1747_v26, %v1727_v40  ;;  %v1764_v45 = vadd.f32 %v1748_v37, %v1728_v16  ;;  %v1765_v44 = vadd.f32 %v1749_v51, %v1729_v30 }
 0x151   : >> { %v1766_v11 = vadd.f32 %v1750_v17, %v1730_v4  ;;  %v1767_v27 = vadd.f32 %v1751_v19, %v1731_v53  ;;  %v1768_v35 = vadd.f32 %v1752_v50, %v1732_v6  ;;  %v1769_v42 = vadd.f32 %v1753_v13, %v1733_v36  ;;  %v5783_v4 = vld [vmem:[%s4476_s20 + $0x149] sm:$0xff] }
 0x152   : >> { %v1770_v54 = vadd.f32 %v1754_v33, %v1734_v5  ;;  %v1771_v48 = vadd.f32 %v1755_v38, %v1735_v56  ;;  %v1772_v24 = vadd.f32 %v1756_v57, %v1736_v60  ;;  %v1773_v18 = vadd.f32 %v1757_v23, %v1737_v28  ;;  %v5786_v57 = vld [vmem:[%s4476_s20 + $0x151] sm:$0xff] }
 0x153   : >> { %v1774_v3 = vadd.f32 %v1758_v20, %v1738_v46  ;;  %v1779_v41 = vmul.f32 %v1778_v31, %v5631_v15  ;;  %v1780_v39 = vmul.f32 %v1778_v31, %v5634_v34  ;;  %v1781_v22 = vmul.f32 %v1778_v31, %v5637_v7 }
 0x154   : >> { %v1782_v10 = vmul.f32 %v1778_v31, %v5640_v14  ;;  %v1783_v2 = vmul.f32 %v1778_v31, %v5647_v25  ;;  %v1784_v40 = vmul.f32 %v1778_v31, %v5650_v61  ;;  %v1785_v16 = vmul.f32 %v1778_v31, %v5653_v47 }
 0x155   : >> { %v1786_v30 = vmul.f32 %v1778_v31, %v5664_v9  ;;  %v1787_v15 = vmul.f32 %v1778_v31, %v5667_v58  ;;  %v1788_v34 = vmul.f32 %v1778_v31, %v7178_v29  ;;  %v1789_v53 = vmul.f32 %v1778_v31, %v7179_v59 }
 0x156   : >> { %v1790_v6 = vmul.f32 %v1778_v31, %v5706_v12  ;;  %v1791_v36 = vmul.f32 %v1778_v31, %v5761_v43  ;;  %v1792_v5 = vmul.f32 %v1778_v31, %v5764_v55  ;;  %v1793_v56 = vmul.f32 %v1778_v31, %v5783_v4 }
 0x157   : >> { %v1794_v60 = vmul.f32 %v1778_v31, %v5786_v57  ;;  %v1795_v28 = vadd.f32 %v1779_v41, %v1759_v49  ;;  %v1796_v46 = vadd.f32 %v1780_v39, %v1760_v1  ;;  %v1797_v23 = vadd.f32 %v1781_v22, %v1761_v52  ;;  %v7180_v31 = vld [vmem:[#allocation27_spill] sm:$0xff] }
 0x158   : >> { %v1798_v20 = vadd.f32 %v1782_v10, %v1762_v8  ;;  %v1799_v38 = vadd.f32 %v1783_v2, %v1763_v0  ;;  %v1800_v21 = vadd.f32 %v1784_v40, %v1764_v45  ;;  %v1801_v63 = vadd.f32 %v1785_v16, %v1765_v44 }
 0x159   : >> { %v1802_v32 = vadd.f32 %v1786_v30, %v1766_v11  ;;  %v1803_v62 = vadd.f32 %v1787_v15, %v1767_v27  ;;  %v1804_v26 = vadd.f32 %v1788_v34, %v1768_v35  ;;  %v1805_v37 = vadd.f32 %v1789_v53, %v1769_v42 }
 0x15a   : >> { %v1806_v51 = vadd.f32 %v1790_v6, %v1770_v54  ;;  %v1807_v17 = vadd.f32 %v1791_v36, %v1771_v48  ;;  %v1808_v19 = vadd.f32 %v1792_v5, %v1772_v24  ;;  %v1809_v50 = vadd.f32 %v1793_v56, %v1773_v18 }
 0x15b   : >> { %v1810_v13 = vadd.f32 %v1794_v60, %v1774_v3  ;;  %v1815_v49 = vmul.f32 %v7180_v31, %v5637_v7  ;;  %v1816_v8 = vmul.f32 %v7180_v31, %v5640_v14  ;;  %v1817_v45 = vmul.f32 %v7180_v31, %v5647_v25  ;;  %v5813_v3 = vld [vmem:[%s4476_s20 + $0x169] sm:$0xff]  ;;  %v5816_v14 = vld [vmem:[%s4476_s20 + $0x171] sm:$0xff]  ;;  %v7181_v60 = vld [vmem:[#allocation29_spill] sm:$0xff] }
 0x15c   : >> { %v1818_v11 = vmul.f32 %v7180_v31, %v5650_v61  ;;  %v1819_v35 = vmul.f32 %v7180_v31, %v5653_v47  ;;  %v1820_v27 = vmul.f32 %v7180_v31, %v5664_v9  ;;  %v1821_v44 = vmul.f32 %v7180_v31, %v5667_v58 }
 0x15d   : >> { %v1822_v7 = vmul.f32 %v7180_v31, %v7178_v29  ;;  %v1823_v18 = vmul.f32 %v7180_v31, %v7179_v59  ;;  %v1824_v52 = vmul.f32 %v7180_v31, %v5706_v12  ;;  %v1825_v0 = vmul.f32 %v7180_v31, %v5761_v43 }
 0x15e   : >> { %v1826_v24 = vmul.f32 %v7180_v31, %v5764_v55  ;;  %v1827_v1 = vmul.f32 %v7180_v31, %v5783_v4  ;;  %v1828_v48 = vmul.f32 %v7180_v31, %v5786_v57  ;;  %v1829_v54 = vmul.f32 %v7180_v31, %v5813_v3 }
 0x15f   : >> { %v1830_v42 = vmul.f32 %v7180_v31, %v5816_v14  ;;  %v1831_v33 = vadd.f32 %v1815_v49, %v1795_v28  ;;  %v1832_v41 = vadd.f32 %v1816_v8, %v1796_v46  ;;  %v1833_v39 = vadd.f32 %v1817_v45, %v1797_v23 }
 0x160   : >> { %v1834_v22 = vadd.f32 %v1818_v11, %v1798_v20  ;;  %v1835_v10 = vadd.f32 %v1819_v35, %v1799_v38  ;;  %v1836_v2 = vadd.f32 %v1820_v27, %v1800_v21  ;;  %v1837_v40 = vadd.f32 %v1821_v44, %v1801_v63 }
 0x161   : >> { %v1838_v16 = vadd.f32 %v1822_v7, %v1802_v32  ;;  %v1839_v30 = vadd.f32 %v1823_v18, %v1803_v62  ;;  %v1840_v15 = vadd.f32 %v1824_v52, %v1804_v26  ;;  %v1841_v34 = vadd.f32 %v1825_v0, %v1805_v37  ;;  %v1663_v32 = vld [vmem:[%s4476_s20 + $0x189] sm:$0xff] }
 0x162   : >> { %v1842_v53 = vadd.f32 %v1826_v24, %v1806_v51  ;;  %v1843_v6 = vadd.f32 %v1827_v1, %v1807_v17  ;;  %v1844_v36 = vadd.f32 %v1828_v48, %v1808_v19  ;;  %v1845_v5 = vadd.f32 %v1829_v54, %v1809_v50 }
 0x163   : >> { %v1846_v56 = vadd.f32 %v1830_v42, %v1810_v13  ;;  %v1851_v28 = vmul.f32 %v7181_v60, %v5647_v25  ;;  %v1852_v46 = vmul.f32 %v7181_v60, %v5650_v61  ;;  %v1853_v23 = vmul.f32 %v7181_v60, %v5653_v47  ;;  %v1664_v61 = vld [vmem:[%s4476_s20 + $0x191] sm:$0xff]  ;;  %v1665_v42 = vld [vmem:[%s4476_s20 + $0x1a9] sm:$0xff] }
 0x164   : >> { %v1854_v20 = vmul.f32 %v7181_v60, %v5664_v9  ;;  %v1855_v38 = vmul.f32 %v7181_v60, %v5667_v58  ;;  %v1856_v21 = vmul.f32 %v7181_v60, %v7178_v29  ;;  %v1857_v63 = vmul.f32 %v7181_v60, %v7179_v59 }
 0x165   : >> { %v1858_v25 = vmul.f32 %v7181_v60, %v5706_v12  ;;  %v1859_v62 = vmul.f32 %v7181_v60, %v5761_v43  ;;  %v1860_v26 = vmul.f32 %v7181_v60, %v5764_v55  ;;  %v1861_v37 = vmul.f32 %v7181_v60, %v5783_v4 }
 0x166   : >> { %v1862_v51 = vmul.f32 %v7181_v60, %v5786_v57  ;;  %v1863_v17 = vmul.f32 %v7181_v60, %v5813_v3  ;;  %v1864_v19 = vmul.f32 %v7181_v60, %v5816_v14  ;;  %v1865_v50 = vmul.f32 %v7181_v60, %v1663_v32 }
 0x167   : >> { %v1866_v13 = vmul.f32 %v7181_v60, %v1664_v61  ;;  %v1867_v31 = vadd.f32 %v1851_v28, %v1831_v33  ;;  %v1868_v49 = vadd.f32 %v1852_v46, %v1832_v41  ;;  %v1869_v8 = vadd.f32 %v1853_v23, %v1833_v39  ;;  %v1666_v60 = vld [vmem:[%s4476_s20 + $0x1b1] sm:$0xff]  ;;  %v7182_v33 = vld [vmem:[#allocation30_spill] sm:$0xff] }
 0x168   : >> { %v1870_v45 = vadd.f32 %v1854_v20, %v1834_v22  ;;  %v1871_v11 = vadd.f32 %v1855_v38, %v1835_v10  ;;  %v1872_v35 = vadd.f32 %v1856_v21, %v1836_v2  ;;  %v1873_v27 = vadd.f32 %v1857_v63, %v1837_v40  ;;  %v1922_v38 = vld [vmem:[%s4476_s20 + $0x32] sm:$0xff] }
 0x169   : >> { %v1874_v44 = vadd.f32 %v1858_v25, %v1838_v16  ;;  %v1875_v7 = vadd.f32 %v1859_v62, %v1839_v30  ;;  %v1876_v18 = vadd.f32 %v1860_v26, %v1840_v15  ;;  %v1877_v52 = vadd.f32 %v1861_v37, %v1841_v34  ;;  %v5904_v62 = vld [vmem:[%s4476_s20 + $0x52] sm:$0xff]  ;;  %v5907_v26 = vld [vmem:[%s4476_s20 + $0x6a] sm:$0xff] }
 0x16a   : >> { %v1878_v0 = vadd.f32 %v1862_v51, %v1842_v53  ;;  %v1879_v24 = vadd.f32 %v1863_v17, %v1843_v6  ;;  %v1880_v1 = vadd.f32 %v1864_v19, %v1844_v36  ;;  %v1881_v48 = vadd.f32 %v1865_v50, %v1845_v5  ;;  %v1919_v36 = vld [vmem:[%s4476_s20 + $0xa] sm:$0xff]  ;;  %v1920_v5 = vld [vmem:[%s4476_s20 + $0x12] sm:$0xff] }
 0x16b   : >> { %v1882_v54 = vadd.f32 %v1866_v13, %v1846_v56  ;;  %v1887_v41 = vmul.f32 %v7182_v33, %v5653_v47  ;;  %v1888_v39 = vmul.f32 %v7182_v33, %v5664_v9  ;;  %v1889_v22 = vmul.f32 %v7182_v33, %v5667_v58  ;;  %v1921_v56 = vld [vmem:[%s4476_s20 + $0x2a] sm:$0xff]  ;;  %v5910_v37 = vld [vmem:[%s4476_s20 + $0x72] sm:$0xff] }
 0x16c   : >> { %v1890_v10 = vmul.f32 %v7182_v33, %v7178_v29  ;;  %v1891_v2 = vmul.f32 %v7182_v33, %v7179_v59  ;;  %v1892_v40 = vmul.f32 %v7182_v33, %v5706_v12  ;;  %v1893_v16 = vmul.f32 %v7182_v33, %v5761_v43  ;;  %v5913_v51 = vld [vmem:[%s4476_s20 + $0x8a] sm:$0xff]  ;;  %v5916_v17 = vld [vmem:[%s4476_s20 + $0x92] sm:$0xff] }
 0x16d   : >> { %v1894_v47 = vmul.f32 %v7182_v33, %v5764_v55  ;;  %v1895_v9 = vmul.f32 %v7182_v33, %v5783_v4  ;;  %v1896_v58 = vmul.f32 %v7182_v33, %v5786_v57  ;;  %v1897_v29 = vmul.f32 %v7182_v33, %v5813_v3  ;;  %v7183_v19 = vld [vmem:[#allocation31_spill] sm:$0xff] }
 0x16e   : >> { %v1898_v12 = vmul.f32 %v7182_v33, %v5816_v14  ;;  %v1899_v43 = vmul.f32 %v7182_v33, %v1663_v32  ;;  %v1900_v59 = vmul.f32 %v7182_v33, %v1664_v61  ;;  %v1901_v55 = vmul.f32 %v7182_v33, %v1665_v42  ;;  %v5901_v61 = vld [vmem:[%s4476_s20 + $0x4a] sm:$0xff] }
 0x16f   : >> { %v1902_v4 = vmul.f32 %v7182_v33, %v1666_v60  ;;  %v1903_v30 = vadd.f32 %v1887_v41, %v1867_v31  ;;  %v1904_v15 = vadd.f32 %v1888_v39, %v1868_v49  ;;  %v1905_v57 = vadd.f32 %v1889_v22, %v1869_v8  ;;  %v5923_v8 = vld [vmem:[%s4476_s20 + $0xaa] sm:$0xff] }
 0x170   : >> { %v1906_v34 = vadd.f32 %v1890_v10, %v1870_v45  ;;  %v1907_v53 = vadd.f32 %v1891_v2, %v1871_v11  ;;  %v1908_v3 = vadd.f32 %v1892_v40, %v1872_v35  ;;  %v1909_v6 = vadd.f32 %v1893_v16, %v1873_v27  ;;  %v5926_v45 = vld [vmem:[%s4476_s20 + $0xb2] sm:$0xff]  ;;  %v5929_v11 = vld [vmem:[%s4476_s20 + $0xca] sm:$0xff] }
 0x171   : >> { %v1910_v14 = vadd.f32 %v1894_v47, %v1874_v44  ;;  %v1911_v28 = vadd.f32 %v1895_v9, %v1875_v7  ;;  %v1912_v46 = vadd.f32 %v1896_v58, %v1876_v18  ;;  %v1913_v23 = vadd.f32 %v1897_v29, %v1877_v52  ;;  %v5940_v18 = vld [vmem:[%s4476_s20 + $0xd2] sm:$0xff]  ;;  %v5943_v52 = vld [vmem:[%s4476_s20 + $0xea] sm:$0xff] }
 0x172   : >> { %v1914_v20 = vadd.f32 %v1898_v12, %v1878_v0  ;;  %v1915_v21 = vadd.f32 %v1899_v43, %v1879_v24  ;;  %v1916_v63 = vadd.f32 %v1900_v59, %v1880_v1  ;;  %v1917_v25 = vadd.f32 %v1901_v55, %v1881_v48  ;;  %v5946_v0 = vld [vmem:[%s4476_s20 + $0xf2] sm:$0xff] }
 0x173   : >> { %v1918_v32 = vadd.f32 %v1902_v4, %v1882_v54  ;;  %v1951_v50 = vmul.f32 %v7183_v19, %v1919_v36  ;;  %v1952_v13 = vmul.f32 %v7183_v19, %v1920_v5  ;;  %v1953_v31 = vmul.f32 %v7183_v19, %v1921_v56  ;;  %v7184_v5 = vld [vmem:[#allocation32_spill] sm:$0xff] }
 0x174   : >> { %v1954_v49 = vmul.f32 %v7183_v19, %v1922_v38  ;;  %v1955_v35 = vmul.f32 %v7183_v19, %v5901_v61  ;;  %v1956_v27 = vmul.f32 %v7183_v19, %v5904_v62  ;;  %v1957_v44 = vmul.f32 %v7183_v19, %v5907_v26 }
 0x175   : >> { %v1958_v7 = vmul.f32 %v7183_v19, %v5910_v37  ;;  %v1959_v24 = vmul.f32 %v7183_v19, %v5913_v51  ;;  %v1960_v1 = vmul.f32 %v7183_v19, %v5916_v17  ;;  %v1961_v48 = vmul.f32 %v7183_v19, %v5923_v8 }
 0x176   : >> { %v1962_v54 = vmul.f32 %v7183_v19, %v5926_v45  ;;  %v1963_v42 = vmul.f32 %v7183_v19, %v5929_v11  ;;  %v1964_v60 = vmul.f32 %v7183_v19, %v5940_v18  ;;  %v1965_v33 = vmul.f32 %v7183_v19, %v5943_v52 }
 0x177   : >> { %v1966_v41 = vmul.f32 %v7183_v19, %v5946_v0  ;;  %v1967_v39 = vadd.f32 %v1951_v50, %v1903_v30  ;;  %v1968_v22 = vadd.f32 %v1952_v13, %v1904_v15  ;;  %v1969_v10 = vadd.f32 %v1953_v31, %v1905_v57 }
 0x178   : >> { %v1970_v2 = vadd.f32 %v1954_v49, %v1906_v34  ;;  %v1971_v40 = vadd.f32 %v1955_v35, %v1907_v53  ;;  %v1972_v16 = vadd.f32 %v1956_v27, %v1908_v3  ;;  %v1973_v47 = vadd.f32 %v1957_v44, %v1909_v6 }
 0x179   : >> { %v1974_v9 = vadd.f32 %v1958_v7, %v1910_v14  ;;  %v1975_v58 = vadd.f32 %v1959_v24, %v1911_v28  ;;  %v1976_v29 = vadd.f32 %v1960_v1, %v1912_v46  ;;  %v1977_v12 = vadd.f32 %v1961_v48, %v1913_v23  ;;  %v5979_v14 = vld [vmem:[%s4476_s20 + $0x10a] sm:$0xff] }
 0x17a   : >> { %v1978_v43 = vadd.f32 %v1962_v54, %v1914_v20  ;;  %v1979_v59 = vadd.f32 %v1963_v42, %v1915_v21  ;;  %v1980_v55 = vadd.f32 %v1964_v60, %v1916_v63  ;;  %v1981_v4 = vadd.f32 %v1965_v33, %v1917_v25 }
 0x17b   : >> { %v1982_v36 = vadd.f32 %v1966_v41, %v1918_v32  ;;  %v1987_v19 = vmul.f32 %v7184_v5, %v1921_v56  ;;  %v1988_v30 = vmul.f32 %v7184_v5, %v1922_v38  ;;  %v1989_v15 = vmul.f32 %v7184_v5, %v5901_v61  ;;  %v5982_v56 = vld [vmem:[%s4476_s20 + $0x112] sm:$0xff]  ;;  %v7186_v41 = vld [vmem:[#allocation33_spill] sm:$0xff] }
 0x17c   : >> { %v1990_v57 = vmul.f32 %v7184_v5, %v5904_v62  ;;  %v1991_v34 = vmul.f32 %v7184_v5, %v5907_v26  ;;  %v1992_v53 = vmul.f32 %v7184_v5, %v5910_v37  ;;  %v1993_v3 = vmul.f32 %v7184_v5, %v5913_v51  ;;  %7185 = vst [vmem:[#allocation25_spill] sm:$0xff] %v5982_v56 }
 0x17d   : >> { %v1994_v6 = vmul.f32 %v7184_v5, %v5916_v17  ;;  %v1995_v28 = vmul.f32 %v7184_v5, %v5923_v8  ;;  %v1996_v46 = vmul.f32 %v7184_v5, %v5926_v45  ;;  %v1997_v23 = vmul.f32 %v7184_v5, %v5929_v11 }
 0x17e   : >> { %v1998_v20 = vmul.f32 %v7184_v5, %v5940_v18  ;;  %v1999_v38 = vmul.f32 %v7184_v5, %v5943_v52  ;;  %v2000_v21 = vmul.f32 %v7184_v5, %v5946_v0  ;;  %v2001_v63 = vmul.f32 %v7184_v5, %v5979_v14 }
 0x17f   : >> { %v2002_v25 = vmul.f32 %v7184_v5, %v5982_v56  ;;  %v2003_v32 = vadd.f32 %v1987_v19, %v1967_v39  ;;  %v2004_v50 = vadd.f32 %v1988_v30, %v1968_v22  ;;  %v2005_v13 = vadd.f32 %v1989_v15, %v1969_v10 }
 0x180   : >> { %v2006_v31 = vadd.f32 %v1990_v57, %v1970_v2  ;;  %v2007_v49 = vadd.f32 %v1991_v34, %v1971_v40  ;;  %v2008_v35 = vadd.f32 %v1992_v53, %v1972_v16  ;;  %v2009_v27 = vadd.f32 %v1993_v3, %v1973_v47 }
 0x181   : >> { %v2010_v44 = vadd.f32 %v1994_v6, %v1974_v9  ;;  %v2011_v7 = vadd.f32 %v1995_v28, %v1975_v58  ;;  %v2012_v24 = vadd.f32 %v1996_v46, %v1976_v29  ;;  %v2013_v1 = vadd.f32 %v1997_v23, %v1977_v12  ;;  %v6017_v9 = vld [vmem:[%s4476_s20 + $0x12a] sm:$0xff] }
 0x182   : >> { %v2014_v48 = vadd.f32 %v1998_v20, %v1978_v43  ;;  %v2015_v54 = vadd.f32 %v1999_v38, %v1979_v59  ;;  %v2016_v42 = vadd.f32 %v2000_v21, %v1980_v55  ;;  %v2017_v60 = vadd.f32 %v2001_v63, %v1981_v4  ;;  %7187 = vst [vmem:[#allocation26_spill] sm:$0xff] %v6017_v9 }
 0x183   : >> { %v2018_v33 = vadd.f32 %v2002_v25, %v1982_v36  ;;  %v2023_v39 = vmul.f32 %v7186_v41, %v5901_v61  ;;  %v2024_v22 = vmul.f32 %v7186_v41, %v5904_v62  ;;  %v2025_v10 = vmul.f32 %v7186_v41, %v5907_v26  ;;  %v6020_v62 = vld [vmem:[%s4476_s20 + $0x132] sm:$0xff] }
 0x184   : >> { %v2026_v2 = vmul.f32 %v7186_v41, %v5910_v37  ;;  %v2027_v40 = vmul.f32 %v7186_v41, %v5913_v51  ;;  %v2028_v16 = vmul.f32 %v7186_v41, %v5916_v17  ;;  %v2029_v47 = vmul.f32 %v7186_v41, %v5923_v8  ;;  %v7188_v25 = vld [vmem:[#allocation24_spill] sm:$0xff] }
 0x185   : >> { %v2030_v61 = vmul.f32 %v7186_v41, %v5926_v45  ;;  %v2031_v58 = vmul.f32 %v7186_v41, %v5929_v11  ;;  %v2032_v29 = vmul.f32 %v7186_v41, %v5940_v18  ;;  %v2033_v12 = vmul.f32 %v7186_v41, %v5943_v52 }
 0x186   : >> { %v2034_v43 = vmul.f32 %v7186_v41, %v5946_v0  ;;  %v2035_v59 = vmul.f32 %v7186_v41, %v5979_v14  ;;  %v2036_v55 = vmul.f32 %v7186_v41, %v5982_v56  ;;  %v2037_v4 = vmul.f32 %v7186_v41, %v6017_v9  ;;  %v7189_v9 = vld [vmem:[#allocation13_spill] sm:$0xff] }
 0x187   : >> { %v2038_v36 = vmul.f32 %v7186_v41, %v6020_v62  ;;  %v2039_v5 = vadd.f32 %v2023_v39, %v2003_v32  ;;  %v2040_v19 = vadd.f32 %v2024_v22, %v2004_v50  ;;  %v2041_v30 = vadd.f32 %v2025_v10, %v2005_v13  ;;  %v7190_v41 = vld [vmem:[#allocation28_spill] sm:$0xff]  ;;  %v7191_v32 = vld [vmem:[#allocation14_spill] sm:$0xff]  ;;  %v7206_v39 = vld [vmem:[#allocation23_spill] sm:$0xff] }
 0x188   : >> { %v2042_v15 = vadd.f32 %v2026_v2, %v2006_v31  ;;  %v2043_v57 = vadd.f32 %v2027_v40, %v2007_v49  ;;  %v2044_v34 = vadd.f32 %v2028_v16, %v2008_v35  ;;  %v2045_v53 = vadd.f32 %v2029_v47, %v2009_v27  ;;  %v7192_v13 = vld [vmem:[#allocation18_spill] sm:$0xff]  ;;  %v7193_v31 = vld [vmem:[#allocation15_spill] sm:$0xff] }
 0x189   : >> { %v2046_v3 = vadd.f32 %v2030_v61, %v2010_v44  ;;  %v2047_v6 = vadd.f32 %v2031_v58, %v2011_v7  ;;  %v2048_v28 = vadd.f32 %v2032_v29, %v2012_v24  ;;  %v2049_v46 = vadd.f32 %v2033_v12, %v2013_v1  ;;  %v7195_v35 = vld [vmem:[#allocation19_spill] sm:$0xff]  ;;  %v7197_v44 = vld [vmem:[#allocation20_spill] sm:$0xff]  ;;  %v7198_v7 = vld [vmem:[#allocation10_spill] sm:$0xff] }
 0x18a   : >> { %v2050_v23 = vadd.f32 %v2034_v43, %v2014_v48  ;;  %v2051_v20 = vadd.f32 %v2035_v59, %v2015_v54  ;;  %v2052_v38 = vadd.f32 %v2036_v55, %v2016_v42  ;;  %v2053_v21 = vadd.f32 %v2037_v4, %v2017_v60  ;;  %v7200_v1 = vld [vmem:[#allocation21_spill] sm:$0xff]  ;;  %v7201_v48 = vld [vmem:[#allocation11_spill] sm:$0xff]  ;;  %v7203_v42 = vld [vmem:[#allocation22_spill] sm:$0xff] }
 0x18b   : >> { %v2054_v63 = vadd.f32 %v2038_v36, %v2018_v33  ;;  %v2058_v56 = vrot.slane %v7189_v9, %v7188_v25  ;;  %v2094_v50 = vrot.slane %v7191_v32, %v7190_v41  ;;  %v6044_v49 = vrot.slane %v7193_v31, %v7192_v13  ;;  %v7204_v60 = vld [vmem:[#allocation12_spill] sm:$0xff]  ;;  %v6075_v12 = vld [vmem:[%s4476_s20 + $0x14a] sm:$0xff]  ;;  %v7208_v59 = vld [vmem:[#allocation25_spill] sm:$0xff] }
 0x18c   : >> { %v6048_v27 = vrot.slane %v7193_v31, %v7195_v35  ;;  %v6052_v24 = vrot.slane %v7198_v7, %v7197_v44  ;;  %v6056_v54 = vrot.slane %v7201_v48, %v7200_v1  ;;  %v6060_v33 = vrot.slane %v7204_v60, %v7203_v42  ;;  %v7209_v4 = vld [vmem:[#allocation26_spill] sm:$0xff] }
 0x18d   : >> { %7194 = vst [vmem:[#allocation27_spill] sm:$0xff] %v6044_v49  ;;  %v6064_v22 = vrot.slane %v7189_v9, %v7206_v39  ;;  %v2059_v10 = vmul.f32 %v2058_v56, %v5907_v26  ;;  %v2060_v2 = vmul.f32 %v2058_v56, %v5910_v37  ;;  %v2061_v40 = vmul.f32 %v2058_v56, %v5913_v51  ;;  %v6078_v9 = vld [vmem:[%s4476_s20 + $0x152] sm:$0xff] }
 0x18e   : >> { %7196 = vst [vmem:[#allocation29_spill] sm:$0xff] %v6048_v27  ;;  %7199 = vst [vmem:[#allocation30_spill] sm:$0xff] %v6052_v24  ;;  %v2062_v16 = vmul.f32 %v2058_v56, %v5916_v17  ;;  %v2063_v47 = vmul.f32 %v2058_v56, %v5923_v8  ;;  %v2064_v61 = vmul.f32 %v2058_v56, %v5926_v45 }
 0x18f   : >> { %7202 = vst [vmem:[#allocation31_spill] sm:$0xff] %v6056_v54  ;;  %7205 = vst [vmem:[#allocation32_spill] sm:$0xff] %v6060_v33  ;;  %v2065_v58 = vmul.f32 %v2058_v56, %v5929_v11  ;;  %v2066_v29 = vmul.f32 %v2058_v56, %v5940_v18  ;;  %v2067_v26 = vmul.f32 %v2058_v56, %v5943_v52 }
 0x190   : >> { %7207 = vst [vmem:[#allocation33_spill] sm:$0xff] %v6064_v22  ;;  %v2068_v37 = vmul.f32 %v2058_v56, %v5946_v0  ;;  %v2069_v43 = vmul.f32 %v2058_v56, %v5979_v14  ;;  %v2070_v55 = vmul.f32 %v2058_v56, %v7208_v59  ;;  %v2071_v36 = vmul.f32 %v2058_v56, %v7209_v4 }
 0x191   : >> { %v2072_v13 = vmul.f32 %v2058_v56, %v6020_v62  ;;  %v2073_v35 = vmul.f32 %v2058_v56, %v6075_v12  ;;  %v2074_v44 = vmul.f32 %v2058_v56, %v6078_v9  ;;  %v2075_v7 = vadd.f32 %v2059_v10, %v2039_v5 }
 0x192   : >> { %v2076_v1 = vadd.f32 %v2060_v2, %v2040_v19  ;;  %v2077_v48 = vadd.f32 %v2061_v40, %v2041_v30  ;;  %v2078_v42 = vadd.f32 %v2062_v16, %v2042_v15  ;;  %v2079_v60 = vadd.f32 %v2063_v47, %v2043_v57 }
 0x193   : >> { %v2080_v39 = vadd.f32 %v2064_v61, %v2044_v34  ;;  %v2081_v31 = vadd.f32 %v2065_v58, %v2045_v53  ;;  %v2082_v41 = vadd.f32 %v2066_v29, %v2046_v3  ;;  %v2083_v32 = vadd.f32 %v2067_v26, %v2047_v6  ;;  %v6097_v3 = vld [vmem:[%s4476_s20 + $0x16a] sm:$0xff]  ;;  %v6100_v6 = vld [vmem:[%s4476_s20 + $0x172] sm:$0xff] }
 0x194   : >> { %v2084_v25 = vadd.f32 %v2068_v37, %v2048_v28  ;;  %v2085_v22 = vadd.f32 %v2069_v43, %v2049_v46  ;;  %v2086_v33 = vadd.f32 %v2070_v55, %v2050_v23  ;;  %v2087_v54 = vadd.f32 %v2071_v36, %v2051_v20 }
 0x195   : >> { %v2088_v24 = vadd.f32 %v2072_v13, %v2052_v38  ;;  %v2089_v27 = vadd.f32 %v2073_v35, %v2053_v21  ;;  %v2090_v49 = vadd.f32 %v2074_v44, %v2054_v63  ;;  %v2095_v56 = vmul.f32 %v2094_v50, %v5913_v51 }
 0x196   : >> { %v2096_v5 = vmul.f32 %v2094_v50, %v5916_v17  ;;  %v2097_v19 = vmul.f32 %v2094_v50, %v5923_v8  ;;  %v2098_v30 = vmul.f32 %v2094_v50, %v5926_v45  ;;  %v2099_v15 = vmul.f32 %v2094_v50, %v5929_v11 }
 0x197   : >> { %v2100_v57 = vmul.f32 %v2094_v50, %v5940_v18  ;;  %v2101_v34 = vmul.f32 %v2094_v50, %v5943_v52  ;;  %v2102_v53 = vmul.f32 %v2094_v50, %v5946_v0  ;;  %v2103_v51 = vmul.f32 %v2094_v50, %v5979_v14 }
 0x198   : >> { %v2104_v17 = vmul.f32 %v2094_v50, %v7208_v59  ;;  %v2105_v28 = vmul.f32 %v2094_v50, %v7209_v4  ;;  %v2106_v46 = vmul.f32 %v2094_v50, %v6020_v62  ;;  %v2107_v23 = vmul.f32 %v2094_v50, %v6075_v12 }
 0x199   : >> { %v2108_v20 = vmul.f32 %v2094_v50, %v6078_v9  ;;  %v2109_v38 = vmul.f32 %v2094_v50, %v6097_v3  ;;  %v2110_v21 = vmul.f32 %v2094_v50, %v6100_v6  ;;  %v2111_v63 = vadd.f32 %v2095_v56, %v2075_v7  ;;  %v7210_v50 = vld [vmem:[#allocation27_spill] sm:$0xff] }
 0x19a   : >> { %v2112_v10 = vadd.f32 %v2096_v5, %v2076_v1  ;;  %v2113_v2 = vadd.f32 %v2097_v19, %v2077_v48  ;;  %v2114_v40 = vadd.f32 %v2098_v30, %v2078_v42  ;;  %v2115_v16 = vadd.f32 %v2099_v15, %v2079_v60 }
 0x19b   : >> { %v2116_v47 = vadd.f32 %v2100_v57, %v2080_v39  ;;  %v2117_v61 = vadd.f32 %v2101_v34, %v2081_v31  ;;  %v2118_v58 = vadd.f32 %v2102_v53, %v2082_v41  ;;  %v2119_v29 = vadd.f32 %v2103_v51, %v2083_v32 }
 0x19c   : >> { %v2120_v26 = vadd.f32 %v2104_v17, %v2084_v25  ;;  %v2121_v37 = vadd.f32 %v2105_v28, %v2085_v22  ;;  %v2122_v43 = vadd.f32 %v2106_v46, %v2086_v33  ;;  %v2123_v55 = vadd.f32 %v2107_v23, %v2087_v54 }
 0x19d   : >> { %v2124_v36 = vadd.f32 %v2108_v20, %v2088_v24  ;;  %v2125_v13 = vadd.f32 %v2109_v38, %v2089_v27  ;;  %v2126_v35 = vadd.f32 %v2110_v21, %v2090_v49  ;;  %v2131_v44 = vmul.f32 %v7210_v50, %v5923_v8  ;;  %v1943_v27 = vld [vmem:[%s4476_s20 + $0x18a] sm:$0xff] }
 0x19e   : >> { %v2132_v7 = vmul.f32 %v7210_v50, %v5926_v45  ;;  %v2133_v31 = vmul.f32 %v7210_v50, %v5929_v11  ;;  %v2134_v41 = vmul.f32 %v7210_v50, %v5940_v18  ;;  %v2135_v25 = vmul.f32 %v7210_v50, %v5943_v52  ;;  %v1944_v45 = vld [vmem:[%s4476_s20 + $0x192] sm:$0xff]  ;;  %v1945_v21 = vld [vmem:[%s4476_s20 + $0x1aa] sm:$0xff] }
 0x19f   : >> { %v2136_v32 = vmul.f32 %v7210_v50, %v5946_v0  ;;  %v2137_v49 = vmul.f32 %v7210_v50, %v5979_v14  ;;  %v2138_v8 = vmul.f32 %v7210_v50, %v7208_v59  ;;  %v2139_v24 = vmul.f32 %v7210_v50, %v7209_v4 }
 0x1a0   : >> { %v2140_v54 = vmul.f32 %v7210_v50, %v6020_v62  ;;  %v2141_v33 = vmul.f32 %v7210_v50, %v6075_v12  ;;  %v2142_v22 = vmul.f32 %v7210_v50, %v6078_v9  ;;  %v2143_v1 = vmul.f32 %v7210_v50, %v6097_v3 }
 0x1a1   : >> { %v2144_v48 = vmul.f32 %v7210_v50, %v6100_v6  ;;  %v2145_v42 = vmul.f32 %v7210_v50, %v1943_v27  ;;  %v2146_v60 = vmul.f32 %v7210_v50, %v1944_v45  ;;  %v2147_v39 = vadd.f32 %v2131_v44, %v2111_v63  ;;  %v1946_v50 = vld [vmem:[%s4476_s20 + $0x1b2] sm:$0xff]  ;;  %v7211_v63 = vld [vmem:[#allocation29_spill] sm:$0xff] }
 0x1a2   : >> { %v2148_v56 = vadd.f32 %v2132_v7, %v2112_v10  ;;  %v2149_v5 = vadd.f32 %v2133_v31, %v2113_v2  ;;  %v2150_v19 = vadd.f32 %v2134_v41, %v2114_v40  ;;  %v2151_v30 = vadd.f32 %v2135_v25, %v2115_v16  ;;  %v2202_v25 = vld [vmem:[%s4476_s20 + $0x33] sm:$0xff] }
 0x1a3   : >> { %v2152_v15 = vadd.f32 %v2136_v32, %v2116_v47  ;;  %v2153_v57 = vadd.f32 %v2137_v49, %v2117_v61  ;;  %v2154_v34 = vadd.f32 %v2138_v8, %v2118_v58  ;;  %v2155_v53 = vadd.f32 %v2139_v24, %v2119_v29  ;;  %v6180_v24 = vld [vmem:[%s4476_s20 + $0x53] sm:$0xff] }
 0x1a4   : >> { %v2156_v51 = vadd.f32 %v2140_v54, %v2120_v26  ;;  %v2157_v17 = vadd.f32 %v2141_v33, %v2121_v37  ;;  %v2158_v28 = vadd.f32 %v2142_v22, %v2122_v43  ;;  %v2159_v46 = vadd.f32 %v2143_v1, %v2123_v55  ;;  %v6183_v54 = vld [vmem:[%s4476_s20 + $0x6b] sm:$0xff]  ;;  %v6186_v33 = vld [vmem:[%s4476_s20 + $0x73] sm:$0xff] }
 0x1a5   : >> { %v2160_v23 = vadd.f32 %v2144_v48, %v2124_v36  ;;  %v2161_v20 = vadd.f32 %v2145_v42, %v2125_v13  ;;  %v2162_v38 = vadd.f32 %v2146_v60, %v2126_v35  ;;  %v2167_v10 = vmul.f32 %v7211_v63, %v5929_v11  ;;  %v2199_v36 = vld [vmem:[%s4476_s20 + $0xb] sm:$0xff]  ;;  %v2200_v13 = vld [vmem:[%s4476_s20 + $0x13] sm:$0xff]  ;;  %v7212_v48 = vld [vmem:[#allocation30_spill] sm:$0xff] }
 0x1a6   : >> { %v2168_v2 = vmul.f32 %v7211_v63, %v5940_v18  ;;  %v2169_v40 = vmul.f32 %v7211_v63, %v5943_v52  ;;  %v2170_v16 = vmul.f32 %v7211_v63, %v5946_v0  ;;  %v2171_v47 = vmul.f32 %v7211_v63, %v5979_v14  ;;  %v2201_v35 = vld [vmem:[%s4476_s20 + $0x2b] sm:$0xff]  ;;  %v6192_v1 = vld [vmem:[%s4476_s20 + $0x93] sm:$0xff] }
 0x1a7   : >> { %v2172_v61 = vmul.f32 %v7211_v63, %v7208_v59  ;;  %v2173_v58 = vmul.f32 %v7211_v63, %v7209_v4  ;;  %v2174_v11 = vmul.f32 %v7211_v63, %v6020_v62  ;;  %v2175_v18 = vmul.f32 %v7211_v63, %v6075_v12  ;;  %v6189_v22 = vld [vmem:[%s4476_s20 + $0x8b] sm:$0xff] }
 0x1a8   : >> { %v2176_v52 = vmul.f32 %v7211_v63, %v6078_v9  ;;  %v2177_v0 = vmul.f32 %v7211_v63, %v6097_v3  ;;  %v2178_v14 = vmul.f32 %v7211_v63, %v6100_v6  ;;  %v2179_v59 = vmul.f32 %v7211_v63, %v1943_v27 }
 0x1a9   : >> { %v2180_v4 = vmul.f32 %v7211_v63, %v1944_v45  ;;  %v2181_v62 = vmul.f32 %v7211_v63, %v1945_v21  ;;  %v2182_v12 = vmul.f32 %v7211_v63, %v1946_v50  ;;  %v2183_v29 = vadd.f32 %v2167_v10, %v2147_v39  ;;  %v6177_v45 = vld [vmem:[%s4476_s20 + $0x4b] sm:$0xff] }
 0x1aa   : >> { %v2184_v26 = vadd.f32 %v2168_v2, %v2148_v56  ;;  %v2185_v9 = vadd.f32 %v2169_v40, %v2149_v5  ;;  %v2186_v37 = vadd.f32 %v2170_v16, %v2150_v19  ;;  %v2187_v43 = vadd.f32 %v2171_v47, %v2151_v30  ;;  %v6199_v5 = vld [vmem:[%s4476_s20 + $0xab] sm:$0xff]  ;;  %v6202_v19 = vld [vmem:[%s4476_s20 + $0xb3] sm:$0xff] }
 0x1ab   : >> { %v2188_v3 = vadd.f32 %v2172_v61, %v2152_v15  ;;  %v2189_v55 = vadd.f32 %v2173_v58, %v2153_v57  ;;  %v2190_v6 = vadd.f32 %v2174_v11, %v2154_v34  ;;  %v2191_v44 = vadd.f32 %v2175_v18, %v2155_v53  ;;  %v6205_v30 = vld [vmem:[%s4476_s20 + $0xcb] sm:$0xff] }
 0x1ac   : >> { %v2192_v7 = vadd.f32 %v2176_v52, %v2156_v51  ;;  %v2193_v31 = vadd.f32 %v2177_v0, %v2157_v17  ;;  %v2194_v41 = vadd.f32 %v2178_v14, %v2158_v28  ;;  %v2195_v32 = vadd.f32 %v2179_v59, %v2159_v46  ;;  %v6216_v51 = vld [vmem:[%s4476_s20 + $0xd3] sm:$0xff]  ;;  %v6219_v17 = vld [vmem:[%s4476_s20 + $0xeb] sm:$0xff] }
 0x1ad   : >> { %v2196_v49 = vadd.f32 %v2180_v4, %v2160_v23  ;;  %v2197_v8 = vadd.f32 %v2181_v62, %v2161_v20  ;;  %v2198_v27 = vadd.f32 %v2182_v12, %v2162_v38  ;;  %v2231_v42 = vmul.f32 %v7212_v48, %v2199_v36  ;;  %v6222_v28 = vld [vmem:[%s4476_s20 + $0xf3] sm:$0xff] }
 0x1ae   : >> { %v2232_v60 = vmul.f32 %v7212_v48, %v2200_v13  ;;  %v2233_v39 = vmul.f32 %v7212_v48, %v2201_v35  ;;  %v2234_v56 = vmul.f32 %v7212_v48, %v2202_v25  ;;  %v2235_v15 = vmul.f32 %v7212_v48, %v6177_v45  ;;  %v7213_v13 = vld [vmem:[#allocation31_spill] sm:$0xff] }
 0x1af   : >> { %v2236_v57 = vmul.f32 %v7212_v48, %v6180_v24  ;;  %v2237_v34 = vmul.f32 %v7212_v48, %v6183_v54  ;;  %v2238_v53 = vmul.f32 %v7212_v48, %v6186_v33  ;;  %v2239_v46 = vmul.f32 %v7212_v48, %v6189_v22 }
 0x1b0   : >> { %v2240_v23 = vmul.f32 %v7212_v48, %v6192_v1  ;;  %v2241_v20 = vmul.f32 %v7212_v48, %v6199_v5  ;;  %v2242_v38 = vmul.f32 %v7212_v48, %v6202_v19  ;;  %v2243_v21 = vmul.f32 %v7212_v48, %v6205_v30 }
 0x1b1   : >> { %v2244_v50 = vmul.f32 %v7212_v48, %v6216_v51  ;;  %v2245_v63 = vmul.f32 %v7212_v48, %v6219_v17  ;;  %v2246_v10 = vmul.f32 %v7212_v48, %v6222_v28  ;;  %v2247_v2 = vadd.f32 %v2231_v42, %v2183_v29 }
 0x1b2   : >> { %v2248_v40 = vadd.f32 %v2232_v60, %v2184_v26  ;;  %v2249_v16 = vadd.f32 %v2233_v39, %v2185_v9  ;;  %v2250_v47 = vadd.f32 %v2234_v56, %v2186_v37  ;;  %v2251_v61 = vadd.f32 %v2235_v15, %v2187_v43 }
 0x1b3   : >> { %v2252_v58 = vadd.f32 %v2236_v57, %v2188_v3  ;;  %v2253_v11 = vadd.f32 %v2237_v34, %v2189_v55  ;;  %v2254_v18 = vadd.f32 %v2238_v53, %v2190_v6  ;;  %v2255_v52 = vadd.f32 %v2239_v46, %v2191_v44  ;;  %v6255_v6 = vld [vmem:[%s4476_s20 + $0x10b] sm:$0xff] }
 0x1b4   : >> { %v2256_v0 = vadd.f32 %v2240_v23, %v2192_v7  ;;  %v2257_v14 = vadd.f32 %v2241_v20, %v2193_v31  ;;  %v2258_v59 = vadd.f32 %v2242_v38, %v2194_v41  ;;  %v2259_v4 = vadd.f32 %v2243_v21, %v2195_v32 }
 0x1b5   : >> { %v2260_v62 = vadd.f32 %v2244_v50, %v2196_v49  ;;  %v2261_v12 = vadd.f32 %v2245_v63, %v2197_v8  ;;  %v2262_v36 = vadd.f32 %v2246_v10, %v2198_v27  ;;  %v2267_v48 = vmul.f32 %v7213_v13, %v2201_v35  ;;  %v6258_v35 = vld [vmem:[%s4476_s20 + $0x113] sm:$0xff] }
 0x1b6   : >> { %v2268_v29 = vmul.f32 %v7213_v13, %v2202_v25  ;;  %v2269_v26 = vmul.f32 %v7213_v13, %v6177_v45  ;;  %v2270_v9 = vmul.f32 %v7213_v13, %v6180_v24  ;;  %v2271_v37 = vmul.f32 %v7213_v13, %v6183_v54  ;;  %v7214_v10 = vld [vmem:[#allocation32_spill] sm:$0xff] }
 0x1b7   : >> { %v2272_v43 = vmul.f32 %v7213_v13, %v6186_v33  ;;  %v2273_v3 = vmul.f32 %v7213_v13, %v6189_v22  ;;  %v2274_v55 = vmul.f32 %v7213_v13, %v6192_v1  ;;  %v2275_v44 = vmul.f32 %v7213_v13, %v6199_v5 }
 0x1b8   : >> { %v2276_v7 = vmul.f32 %v7213_v13, %v6202_v19  ;;  %v2277_v31 = vmul.f32 %v7213_v13, %v6205_v30  ;;  %v2278_v41 = vmul.f32 %v7213_v13, %v6216_v51  ;;  %v2279_v25 = vmul.f32 %v7213_v13, %v6219_v17 }
 0x1b9   : >> { %v2280_v32 = vmul.f32 %v7213_v13, %v6222_v28  ;;  %v2281_v49 = vmul.f32 %v7213_v13, %v6255_v6  ;;  %v2282_v8 = vmul.f32 %v7213_v13, %v6258_v35  ;;  %v2283_v27 = vadd.f32 %v2267_v48, %v2247_v2 }
 0x1ba   : >> { %v2284_v42 = vadd.f32 %v2268_v29, %v2248_v40  ;;  %v2285_v60 = vadd.f32 %v2269_v26, %v2249_v16  ;;  %v2286_v39 = vadd.f32 %v2270_v9, %v2250_v47  ;;  %v2287_v56 = vadd.f32 %v2271_v37, %v2251_v61 }
 0x1bb   : >> { %v2288_v15 = vadd.f32 %v2272_v43, %v2252_v58  ;;  %v2289_v57 = vadd.f32 %v2273_v3, %v2253_v11  ;;  %v2290_v34 = vadd.f32 %v2274_v55, %v2254_v18  ;;  %v2291_v53 = vadd.f32 %v2275_v44, %v2255_v52  ;;  %v6293_v18 = vld [vmem:[%s4476_s20 + $0x12b] sm:$0xff] }
 0x1bc   : >> { %v2292_v46 = vadd.f32 %v2276_v7, %v2256_v0  ;;  %v2293_v23 = vadd.f32 %v2277_v31, %v2257_v14  ;;  %v2294_v20 = vadd.f32 %v2278_v41, %v2258_v59  ;;  %v2295_v38 = vadd.f32 %v2279_v25, %v2259_v4 }
 0x1bd   : >> { %v2296_v21 = vadd.f32 %v2280_v32, %v2260_v62  ;;  %v2297_v50 = vadd.f32 %v2281_v49, %v2261_v12  ;;  %v2298_v63 = vadd.f32 %v2282_v8, %v2262_v36  ;;  %v2303_v2 = vmul.f32 %v7214_v10, %v6177_v45  ;;  %v7216_v8 = vld [vmem:[#allocation33_spill] sm:$0xff] }
 0x1be   : >> { %v2304_v40 = vmul.f32 %v7214_v10, %v6180_v24  ;;  %v2305_v16 = vmul.f32 %v7214_v10, %v6183_v54  ;;  %v2306_v47 = vmul.f32 %v7214_v10, %v6186_v33  ;;  %v2307_v61 = vmul.f32 %v7214_v10, %v6189_v22  ;;  %v6296_v24 = vld [vmem:[%s4476_s20 + $0x133] sm:$0xff] }
 0x1bf   : >> { %v2308_v58 = vmul.f32 %v7214_v10, %v6192_v1  ;;  %v2309_v11 = vmul.f32 %v7214_v10, %v6199_v5  ;;  %v2310_v45 = vmul.f32 %v7214_v10, %v6202_v19  ;;  %7215 = vst [vmem:[#allocation18_spill] sm:$0xff] %v6296_v24  ;;  %v2311_v52 = vmul.f32 %v7214_v10, %v6205_v30 }
 0x1c0   : >> { %v2312_v0 = vmul.f32 %v7214_v10, %v6216_v51  ;;  %v2313_v14 = vmul.f32 %v7214_v10, %v6219_v17  ;;  %v2314_v59 = vmul.f32 %v7214_v10, %v6222_v28  ;;  %v2315_v4 = vmul.f32 %v7214_v10, %v6255_v6 }
 0x1c1   : >> { %v2316_v62 = vmul.f32 %v7214_v10, %v6258_v35  ;;  %v2317_v12 = vmul.f32 %v7214_v10, %v6293_v18  ;;  %v2318_v36 = vmul.f32 %v7214_v10, %v6296_v24  ;;  %v2319_v13 = vadd.f32 %v2303_v2, %v2283_v27 }
 0x1c2   : >> { %v2320_v48 = vadd.f32 %v2304_v40, %v2284_v42  ;;  %v2321_v29 = vadd.f32 %v2305_v16, %v2285_v60  ;;  %v2322_v26 = vadd.f32 %v2306_v47, %v2286_v39  ;;  %v2323_v9 = vadd.f32 %v2307_v61, %v2287_v56 }
 0x1c3   : >> { %v2324_v37 = vadd.f32 %v2308_v58, %v2288_v15  ;;  %v2325_v43 = vadd.f32 %v2309_v11, %v2289_v57  ;;  %v2326_v3 = vadd.f32 %v2310_v45, %v2290_v34  ;;  %v2327_v55 = vadd.f32 %v2311_v52, %v2291_v53  ;;  %v6331_v34 = vld [vmem:[%s4476_s20 + $0x14b] sm:$0xff] }
 0x1c4   : >> { %v2328_v44 = vadd.f32 %v2312_v0, %v2292_v46  ;;  %v2329_v7 = vadd.f32 %v2313_v14, %v2293_v23  ;;  %v2330_v31 = vadd.f32 %v2314_v59, %v2294_v20  ;;  %v2331_v41 = vadd.f32 %v2315_v4, %v2295_v38  ;;  %7217 = vst [vmem:[#allocation19_spill] sm:$0xff] %v6331_v34 }
 0x1c5   : >> { %v2332_v25 = vadd.f32 %v2316_v62, %v2296_v21  ;;  %v2333_v32 = vadd.f32 %v2317_v12, %v2297_v50  ;;  %v2334_v49 = vadd.f32 %v2318_v36, %v2298_v63  ;;  %v2339_v27 = vmul.f32 %v7216_v8, %v6183_v54  ;;  %v7218_v36 = vld [vmem:[#allocation24_spill] sm:$0xff] }
 0x1c6   : >> { %v2340_v42 = vmul.f32 %v7216_v8, %v6186_v33  ;;  %v2341_v60 = vmul.f32 %v7216_v8, %v6189_v22  ;;  %v2342_v39 = vmul.f32 %v7216_v8, %v6192_v1  ;;  %v2343_v56 = vmul.f32 %v7216_v8, %v6199_v5  ;;  %v6334_v33 = vld [vmem:[%s4476_s20 + $0x153] sm:$0xff] }
 0x1c7   : >> { %v2344_v15 = vmul.f32 %v7216_v8, %v6202_v19  ;;  %v2345_v57 = vmul.f32 %v7216_v8, %v6205_v30  ;;  %v2346_v54 = vmul.f32 %v7216_v8, %v6216_v51  ;;  %v2347_v53 = vmul.f32 %v7216_v8, %v6219_v17 }
 0x1c8   : >> { %v2348_v46 = vmul.f32 %v7216_v8, %v6222_v28  ;;  %v2349_v23 = vmul.f32 %v7216_v8, %v6255_v6  ;;  %v2350_v20 = vmul.f32 %v7216_v8, %v6258_v35  ;;  %v2351_v38 = vmul.f32 %v7216_v8, %v6293_v18 }
 0x1c9   : >> { %v2352_v21 = vmul.f32 %v7216_v8, %v6296_v24  ;;  %v2353_v50 = vmul.f32 %v7216_v8, %v6331_v34  ;;  %v2354_v63 = vmul.f32 %v7216_v8, %v6334_v33  ;;  %v2355_v10 = vadd.f32 %v2339_v27, %v2319_v13  ;;  %v7219_v34 = vld [vmem:[#allocation14_spill] sm:$0xff]  ;;  %v7220_v8 = vld [vmem:[#allocation28_spill] sm:$0xff]  ;;  %v7221_v13 = vld [vmem:[#allocation15_spill] sm:$0xff] }
 0x1ca   : >> { %v2356_v2 = vadd.f32 %v2340_v42, %v2320_v48  ;;  %v2357_v40 = vadd.f32 %v2341_v60, %v2321_v29  ;;  %v2358_v16 = vadd.f32 %v2342_v39, %v2322_v26  ;;  %v2359_v47 = vadd.f32 %v2343_v56, %v2323_v9  ;;  %v7222_v29 = vld [vmem:[#allocation16_spill] sm:$0xff]  ;;  %v7229_v56 = vld [vmem:[#allocation18_spill] sm:$0xff] }
 0x1cb   : >> { %v2360_v61 = vadd.f32 %v2344_v15, %v2324_v37  ;;  %v2361_v58 = vadd.f32 %v2345_v57, %v2325_v43  ;;  %v2362_v11 = vadd.f32 %v2346_v54, %v2326_v3  ;;  %v2363_v45 = vadd.f32 %v2347_v53, %v2327_v55  ;;  %v6389_v42 = vld [vmem:[%s4476_s20 + $0x16b] sm:$0xff]  ;;  %v6392_v60 = vld [vmem:[%s4476_s20 + $0x173] sm:$0xff] }
 0x1cc   : >> { %v2364_v52 = vadd.f32 %v2348_v46, %v2328_v44  ;;  %v2365_v0 = vadd.f32 %v2349_v23, %v2329_v7  ;;  %v2366_v14 = vadd.f32 %v2350_v20, %v2330_v31  ;;  %v2367_v59 = vadd.f32 %v2351_v38, %v2331_v41  ;;  %v7230_v57 = vld [vmem:[#allocation19_spill] sm:$0xff] }
 0x1cd   : >> { %v2368_v4 = vadd.f32 %v2352_v21, %v2332_v25  ;;  %v2369_v62 = vadd.f32 %v2353_v50, %v2333_v32  ;;  %v2370_v12 = vadd.f32 %v2354_v63, %v2334_v49  ;;  %v2374_v24 = vrot.slane %v7219_v34, %v7218_v36 }
 0x1ce   : >> { %v2410_v48 = vrot.slane %v7221_v13, %v7220_v8  ;;  %v6358_v26 = vmul.f32 %v7222_v29, %v6205_v30  ;;  %v6362_v9 = vmul.f32 %v7222_v29, %v6216_v51  ;;  %v6366_v37 = vmul.f32 %v7222_v29, %v6219_v17 }
 0x1cf   : >> { %v6370_v43 = vmul.f32 %v7222_v29, %v6222_v28  ;;  %v6374_v3 = vmul.f32 %v7222_v29, %v6255_v6  ;;  %v6378_v55 = vmul.f32 %v7222_v29, %v6258_v35  ;;  %v2375_v44 = vmul.f32 %v2374_v24, %v6189_v22 }
 0x1d0   : >> { %7223 = vst [vmem:[#allocation20_spill] sm:$0xff] %v6358_v26  ;;  %7224 = vst [vmem:[#allocation21_spill] sm:$0xff] %v6362_v9  ;;  %v2376_v7 = vmul.f32 %v2374_v24, %v6192_v1  ;;  %v2377_v31 = vmul.f32 %v2374_v24, %v6199_v5  ;;  %v2378_v41 = vmul.f32 %v2374_v24, %v6202_v19 }
 0x1d1   : >> { %7225 = vst [vmem:[#allocation22_spill] sm:$0xff] %v6366_v37  ;;  %7226 = vst [vmem:[#allocation23_spill] sm:$0xff] %v6370_v43  ;;  %v2379_v25 = vmul.f32 %v2374_v24, %v6205_v30  ;;  %v2380_v32 = vmul.f32 %v2374_v24, %v6216_v51  ;;  %v2381_v49 = vmul.f32 %v2374_v24, %v6219_v17 }
 0x1d2   : >> { %7227 = vst [vmem:[#allocation25_spill] sm:$0xff] %v6374_v3  ;;  %7228 = vst [vmem:[#allocation26_spill] sm:$0xff] %v6378_v55  ;;  %v2382_v27 = vmul.f32 %v2374_v24, %v6222_v28  ;;  %v2383_v22 = vmul.f32 %v2374_v24, %v6255_v6  ;;  %v2384_v1 = vmul.f32 %v2374_v24, %v6258_v35 }
 0x1d3   : >> { %v2385_v39 = vmul.f32 %v2374_v24, %v6293_v18  ;;  %v2386_v15 = vmul.f32 %v2374_v24, %v7229_v56  ;;  %v2387_v54 = vmul.f32 %v2374_v24, %v7230_v57  ;;  %v2388_v34 = vmul.f32 %v2374_v24, %v6334_v33 }
 0x1d4   : >> { %v2389_v53 = vmul.f32 %v2374_v24, %v6389_v42  ;;  %v2390_v46 = vmul.f32 %v2374_v24, %v6392_v60  ;;  %v2391_v23 = vadd.f32 %v2375_v44, %v2355_v10  ;;  %v2392_v20 = vadd.f32 %v2376_v7, %v2356_v2 }
 0x1d5   : >> { %v2393_v38 = vadd.f32 %v2377_v31, %v2357_v40  ;;  %v2394_v21 = vadd.f32 %v2378_v41, %v2358_v16  ;;  %v2395_v50 = vadd.f32 %v2379_v25, %v2359_v47  ;;  %v2396_v63 = vadd.f32 %v2380_v32, %v2360_v61  ;;  %v2225_v32 = vld [vmem:[%s4476_s20 + $0x1ab] sm:$0xff] }
 0x1d6   : >> { %v2397_v36 = vadd.f32 %v2381_v49, %v2361_v58  ;;  %v2398_v8 = vadd.f32 %v2382_v27, %v2362_v11  ;;  %v2399_v13 = vadd.f32 %v2383_v22, %v2363_v45  ;;  %v2400_v55 = vadd.f32 %v2384_v1, %v2364_v52  ;;  %v2223_v11 = vld [vmem:[%s4476_s20 + $0x18b] sm:$0xff]  ;;  %v2224_v45 = vld [vmem:[%s4476_s20 + $0x193] sm:$0xff] }
 0x1d7   : >> { %v2401_v3 = vadd.f32 %v2385_v39, %v2365_v0  ;;  %v2402_v43 = vadd.f32 %v2386_v15, %v2366_v14  ;;  %v2403_v37 = vadd.f32 %v2387_v54, %v2367_v59  ;;  %v2404_v9 = vadd.f32 %v2388_v34, %v2368_v4  ;;  %v2226_v49 = vld [vmem:[%s4476_s20 + $0x1b3] sm:$0xff] }
 0x1d8   : >> { %v2405_v26 = vadd.f32 %v2389_v53, %v2369_v62  ;;  %v2406_v29 = vadd.f32 %v2390_v46, %v2370_v12  ;;  %v2411_v24 = vmul.f32 %v2410_v48, %v6199_v5  ;;  %v2412_v10 = vmul.f32 %v2410_v48, %v6202_v19 }
 0x1d9   : >> { %v2413_v2 = vmul.f32 %v2410_v48, %v6205_v30  ;;  %v2414_v40 = vmul.f32 %v2410_v48, %v6216_v51  ;;  %v2415_v16 = vmul.f32 %v2410_v48, %v6219_v17  ;;  %v2416_v47 = vmul.f32 %v2410_v48, %v6222_v28 }
 0x1da   : >> { %v2417_v61 = vmul.f32 %v2410_v48, %v6255_v6  ;;  %v2418_v58 = vmul.f32 %v2410_v48, %v6258_v35  ;;  %v2419_v52 = vmul.f32 %v2410_v48, %v6293_v18  ;;  %v2420_v5 = vmul.f32 %v2410_v48, %v7229_v56 }
 0x1db   : >> { %v2421_v19 = vmul.f32 %v2410_v48, %v7230_v57  ;;  %v2422_v30 = vmul.f32 %v2410_v48, %v6334_v33  ;;  %v2423_v51 = vmul.f32 %v2410_v48, %v6389_v42  ;;  %v2424_v17 = vmul.f32 %v2410_v48, %v6392_v60 }
 0x1dc   : >> { %v2425_v28 = vmul.f32 %v2410_v48, %v2223_v11  ;;  %v2426_v6 = vmul.f32 %v2410_v48, %v2224_v45  ;;  %v2427_v0 = vadd.f32 %v2411_v24, %v2391_v23  ;;  %v2428_v35 = vadd.f32 %v2412_v10, %v2392_v20  ;;  %v7231_v48 = vld [vmem:[#allocation16_spill] sm:$0xff]  ;;  %v7235_v23 = vld [vmem:[#allocation23_spill] sm:$0xff]  ;;  %v7236_v20 = vld [vmem:[#allocation25_spill] sm:$0xff] }
 0x1dd   : >> { %v2429_v14 = vadd.f32 %v2413_v2, %v2393_v38  ;;  %v2430_v59 = vadd.f32 %v2414_v40, %v2394_v21  ;;  %v2431_v4 = vadd.f32 %v2415_v16, %v2395_v50  ;;  %v2432_v62 = vadd.f32 %v2416_v47, %v2396_v63  ;;  %v7238_v47 = vld [vmem:[#allocation17_spill] sm:$0xff] }
 0x1de   : >> { %v2433_v12 = vadd.f32 %v2417_v61, %v2397_v36  ;;  %v2434_v44 = vadd.f32 %v2418_v58, %v2398_v8  ;;  %v2435_v7 = vadd.f32 %v2419_v52, %v2399_v13  ;;  %v2436_v31 = vadd.f32 %v2420_v5, %v2400_v55  ;;  %v7232_v55 = vld [vmem:[#allocation20_spill] sm:$0xff] }
 0x1df   : >> { %v2437_v41 = vadd.f32 %v2421_v19, %v2401_v3  ;;  %v2438_v25 = vadd.f32 %v2422_v30, %v2402_v43  ;;  %v2439_v27 = vadd.f32 %v2423_v51, %v2403_v37  ;;  %v2440_v22 = vadd.f32 %v2424_v17, %v2404_v9 }
 0x1e0   : >> { %v2441_v1 = vadd.f32 %v2425_v28, %v2405_v26  ;;  %v2442_v39 = vadd.f32 %v2426_v6, %v2406_v29  ;;  %v2453_v15 = vmul.f32 %v7231_v48, %v6293_v18  ;;  %v2454_v54 = vmul.f32 %v7231_v48, %v7229_v56 }
 0x1e1   : >> { %v2455_v34 = vmul.f32 %v7231_v48, %v7230_v57  ;;  %v2456_v3 = vmul.f32 %v7231_v48, %v6334_v33  ;;  %v2457_v43 = vmul.f32 %v7231_v48, %v6389_v42  ;;  %v2458_v9 = vmul.f32 %v7231_v48, %v6392_v60  ;;  %v7233_v57 = vld [vmem:[#allocation21_spill] sm:$0xff]  ;;  %v7234_v33 = vld [vmem:[#allocation22_spill] sm:$0xff] }
 0x1e2   : >> { %v2459_v29 = vmul.f32 %v7231_v48, %v2223_v11  ;;  %v2460_v26 = vmul.f32 %v7231_v48, %v2224_v45  ;;  %v2461_v18 = vmul.f32 %v7231_v48, %v2225_v32  ;;  %v2462_v37 = vmul.f32 %v7231_v48, %v2226_v49  ;;  %v7237_v60 = vld [vmem:[#allocation26_spill] sm:$0xff] }
 0x1e3   : >> { %v2463_v56 = vadd.f32 %v7232_v55, %v2427_v0  ;;  %v2464_v53 = vadd.f32 %v7233_v57, %v2428_v35  ;;  %v2465_v46 = vadd.f32 %v7234_v33, %v2429_v14  ;;  %v2466_v42 = vadd.f32 %v7235_v23, %v2430_v59 }
 0x1e4   : >> { %v2467_v38 = vadd.f32 %v7236_v20, %v2431_v4  ;;  %v2468_v21 = vadd.f32 %v7237_v60, %v2432_v62  ;;  %v2469_v50 = vadd.f32 %v2453_v15, %v2433_v12  ;;  %v2470_v63 = vadd.f32 %v2454_v54, %v2434_v44 }
 0x1e5   : >> { %v2471_v36 = vadd.f32 %v2455_v34, %v2435_v7  ;;  %v2472_v8 = vadd.f32 %v2456_v3, %v2436_v31  ;;  %v2473_v13 = vadd.f32 %v2457_v43, %v2437_v41  ;;  %v2474_v24 = vadd.f32 %v2458_v9, %v2438_v25 }
 0x1e6   : >> { %v2475_v10 = vadd.f32 %v2459_v29, %v2439_v27  ;;  %v2476_v2 = vadd.f32 %v2460_v26, %v2440_v22  ;;  %v2477_v40 = vadd.f32 %v2461_v18, %v2441_v1  ;;  %v2478_v16 = vadd.f32 %v2462_v37, %v2442_v39 }
 0x1e7   : >> { %v2485_v61 = vadd.f32 %v7238_v47, %v2463_v56  ;;  %v2486_v58 = vadd.f32 %v7238_v47, %v2464_v53  ;;  %v2487_v11 = vadd.f32 %v7238_v47, %v2465_v46  ;;  %v2488_v45 = vadd.f32 %v7238_v47, %v2466_v42 }
 0x1e8   : >> { %v2489_v52 = vadd.f32 %v7238_v47, %v2467_v38  ;;  %v2490_v5 = vadd.f32 %v7238_v47, %v2468_v21  ;;  %v2491_v19 = vadd.f32 %v7238_v47, %v2469_v50  ;;  %v2492_v30 = vadd.f32 %v7238_v47, %v2470_v63 }
 0x1e9   : >> { %v2493_v51 = vadd.f32 %v7238_v47, %v2471_v36  ;;  %v2494_v17 = vadd.f32 %v7238_v47, %v2472_v8  ;;  %2503 = vst.msk [vmem:[%s2502_s12] sm:$0xff] %vm378_vm0, %v2485_v61  ;;  %2504 = vst.msk [vmem:[%s2502_s12 + $0x8] sm:$0xff] %vm378_vm0, %v2486_v58  ;;  %v2495_v28 = vadd.f32 %v7238_v47, %v2473_v13  ;;  %v2519_v4 = vsel %vm378_vm0, %v2485_v61, 0.0 }
 0x1ea   : >> { %v2496_v6 = vadd.f32 %v7238_v47, %v2474_v24  ;;  %v2497_v0 = vadd.f32 %v7238_v47, %v2475_v10  ;;  %v2498_v35 = vadd.f32 %v7238_v47, %v2476_v2  ;;  %2505 = vst.msk [vmem:[%s2502_s12 + $0x10] sm:$0xff] %vm378_vm0, %v2487_v11  ;;  %2506 = vst.msk [vmem:[%s2502_s12 + $0x18] sm:$0xff] %vm378_vm0, %v2488_v45  ;;  %v2520_v62 = vsel %vm378_vm0, %v2486_v58, 0.0 }
 0x1eb   : >> { %2507 = vst.msk [vmem:[%s2502_s12 + $0x20] sm:$0xff] %vm378_vm0, %v2489_v52  ;;  %2508 = vst.msk [vmem:[%s2502_s12 + $0x28] sm:$0xff] %vm378_vm0, %v2490_v5  ;;  %v2499_v14 = vadd.f32 %v7238_v47, %v2477_v40  ;;  %v2500_v59 = vadd.f32 %v7238_v47, %v2478_v16  ;;  %v2521_v12 = vadd.f32 %v2520_v62, %v2519_v4  ;;  %v2522_v44 = vsel %vm378_vm0, %v2487_v11, 0.0 }
 0x1ec   : >> { %2509 = vst.msk [vmem:[%s2502_s12 + $0x30] sm:$0xff] %vm378_vm0, %v2491_v19  ;;  %2510 = vst.msk [vmem:[%s2502_s12 + $0x38] sm:$0xff] %vm378_vm0, %v2492_v30  ;;  %v2524_v7 = vsel %vm378_vm0, %v2488_v45, 0.0  ;;  %v2526_v41 = vsel %vm378_vm0, %v2489_v52, 0.0  ;;  %v2528_v32 = vsel %vm378_vm0, %v2490_v5, 0.0  ;;  %v2530_v27 = vsel %vm378_vm0, %v2491_v19, 0.0 }
 0x1ed   : >> { %2511 = vst.msk [vmem:[%s2502_s12 + $0x40] sm:$0xff] %vm378_vm0, %v2493_v51  ;;  %2512 = vst.msk [vmem:[%s2502_s12 + $0x48] sm:$0xff] %vm378_vm0, %v2494_v17  ;;  %v2523_v31 = vadd.f32 %v2522_v44, %v2521_v12  ;;  %v2532_v1 = vsel %vm378_vm0, %v2492_v30, 0.0  ;;  %v2534_v15 = vsel %vm378_vm0, %v2493_v51, 0.0  ;;  %v2536_v34 = vsel %vm378_vm0, %v2494_v17, 0.0 }
 0x1ee   : >> { %2513 = vst.msk [vmem:[%s2502_s12 + $0x50] sm:$0xff] %vm378_vm0, %v2495_v28  ;;  %2514 = vst.msk [vmem:[%s2502_s12 + $0x58] sm:$0xff] %vm378_vm0, %v2496_v6  ;;  %v2538_v43 = vsel %vm378_vm0, %v2495_v28, 0.0  ;;  %v2540_v29 = vsel %vm378_vm0, %v2496_v6, 0.0  ;;  %v2542_v18 = vsel %vm378_vm0, %v2497_v0, 0.0  ;;  %v2544_v55 = vsel %vm378_vm0, %v2498_v35, 0.0 }
 0x1ef   : >> { %2515 = vst.msk [vmem:[%s2502_s12 + $0x60] sm:$0xff] %vm378_vm0, %v2497_v0  ;;  %2516 = vst.msk [vmem:[%s2502_s12 + $0x68] sm:$0xff] %vm378_vm0, %v2498_v35  ;;  %v2525_v25 = vadd.f32 %v2524_v7, %v2523_v31  ;;  %v2546_v57 = vsel %vm378_vm0, %v2499_v14, 0.0  ;;  %v2548_v33 = vsel %vm378_vm0, %v2500_v59, 0.0 }
 0x1f0   : >> { %2517 = vst.msk [vmem:[%s2502_s12 + $0x70] sm:$0xff] %vm378_vm0, %v2499_v14  ;;  %2518 = vst.msk [vmem:[%s2502_s12 + $0x78] sm:$0xff] %vm378_vm0, %v2500_v59 }
 0x1f1   : >> { %v2527_v49 = vadd.f32 %v2526_v41, %v2525_v25 }
 0x1f3   : >> { %v2529_v22 = vadd.f32 %v2528_v32, %v2527_v49 }
 0x1f5   : >> { %v2531_v39 = vadd.f32 %v2530_v27, %v2529_v22 }
 0x1f7   : >> { %v2533_v54 = vadd.f32 %v2532_v1, %v2531_v39 }
 0x1f9   : >> { %v2535_v3 = vadd.f32 %v2534_v15, %v2533_v54 }
 0x1fb   : >> { %v2537_v9 = vadd.f32 %v2536_v34, %v2535_v3 }
 0x1fd   : >> { %v2539_v26 = vadd.f32 %v2538_v43, %v2537_v9 }
 0x1ff   : >> { %v2541_v37 = vadd.f32 %v2540_v29, %v2539_v26 }
 0x201   : >> { %v2543_v56 = vadd.f32 %v2542_v18, %v2541_v37 }
 0x203   : >> { %v2545_v53 = vadd.f32 %v2544_v55, %v2543_v56 }
 0x205   : >> { %v2547_v46 = vadd.f32 %v2546_v57, %v2545_v53 }
 0x207   : >> { %v2549_v23 = vadd.f32 %v2548_v33, %v2547_v46 }
 0x209   : >> { %2550 = vadd.xlane.f32.xlu0 %v2549_v23 }
 0x296   : >> { %v2551_v42 = vpop.xlane.xlu0 %2550 }
 0x297   : >> { %v2552_v20 = vrot.slane %v2551_v42, 4 }
 0x299   : >> { %v2553_v38 = vadd.f32 %v2552_v20, %v2551_v42 }
 0x29b   : >> { %v2554_v60 = vrot.slane %v2553_v38, 2 }
 0x29d   : >> { %v2555_v21 = vadd.f32 %v2554_v60, %v2553_v38 }
 0x29f   : >> { %v2556_v50 = vrot.slane %v2555_v21, 1 }
 0x2a1   : >> { %v2557_v63 = vadd.f32 %v2556_v50, %v2555_v21 }
 0x2a3   : >> { %3895 = vpush %v2557_v63 }
 0x2d2   : > { %513 = sbr.rel (!%p511_p12) target bundleno = 76 (0x4c), region = 120 }
 0x2d4   : >> { %s3896_s19 = spop %3895 }
 0x2d5   : >> { %s6492_s27 = sadd.f32 %s4156_s27, %s3896_s19  }
 0x2d7   : >> { %s7239_s22 = smov %s6492_s27 }
 0x2d8   : >> { %s7240_s27 = smov %s7239_s22  ;;  %s2562_s24 = smul.f32 (%p511_p12), 0.0009765625, %s7239_s22 }
 0x2d9 LB: >> { %s3641_s17 = sshll.u32 %s4168_s29, 7  ;;  %s2568_s29 = sadd.s32 1, %s4168_s29   ;;  %s4168_s29 = sphi %s6503_s29, %s2568_s29   ;;  %s4164_s28 = sphi %s6501_s28, %s7241_s28  }
 0x2da   : >> { %v6514_v36 = vstv %s2562_s24  ;;  %s6516_s27 = scalar_lea.vmem [#allocation3], %s3641_s17  ;;  %p2565_p13 = scmp.ge.s32.totalorder %s2568_s29, 2  }
 0x2db   : >> { %v2572_v48 = vld [vmem:[%s6516_s27] sm:$0xff]  ;;  %v2573_v8 = vld [vmem:[%s6516_s27 + $0x8] sm:$0xff]  ;;  %v2574_v13 = vld [vmem:[%s6516_s27 + $0x10] sm:$0xff]  ;;  %vm2865_vm1 = vcmask (%p2565_p13), 1041408   ;;  %s4171_s17 = smov (%p2565_p13), 0.0   ;;  %vm2673_vm2 = vcmask (%p2565_p13), 24576  }
 0x2dc   : >> { %v2575_v24 = vld [vmem:[%s6516_s27 + $0x18] sm:$0xff]  ;;  %v2589_v10 = vsub.f32 %v2572_v48, %v6514_v36  ;;  %v2590_v2 = vsub.f32 %v2573_v8, %v6514_v36  ;;  %v2576_v40 = vld [vmem:[%s6516_s27 + $0x20] sm:$0xff]  ;;  %v2591_v16 = vsub.f32 %v2574_v13, %v6514_v36  ;;  %v2577_v61 = vld [vmem:[%s6516_s27 + $0x28] sm:$0xff]  ;;  %vm3411_vm4 = vcmask (%p2565_p13), 130048   ;;  %s4173_s29 = smov (%p2565_p13), [#allocation5]  }
 0x2dd   : >> { %v2592_v47 = vsub.f32 %v2575_v24, %v6514_v36  ;;  %v2593_v58 = vsub.f32 %v2576_v40, %v6514_v36  ;;  %v2578_v52 = vld [vmem:[%s6516_s27 + $0x30] sm:$0xff]  ;;  %v2594_v19 = vsub.f32 %v2577_v61, %v6514_v36  ;;  %v2579_v51 = vld [vmem:[%s6516_s27 + $0x38] sm:$0xff]  ;;  %v2580_v35 = vld [vmem:[%s6516_s27 + $0x40] sm:$0xff] }
 0x2de   : >> { %v2605_v11 = vmul.f32 %v2589_v10, %v2589_v10  ;;  %v2606_v45 = vmul.f32 %v2590_v2, %v2590_v2  ;;  %v2607_v5 = vmul.f32 %v2591_v16, %v2591_v16  ;;  %v2595_v17 = vsub.f32 %v2578_v52, %v6514_v36  ;;  %v2581_v44 = vld [vmem:[%s6516_s27 + $0x48] sm:$0xff]  ;;  %v2582_v32 = vld [vmem:[%s6516_s27 + $0x50] sm:$0xff]  ;;  %v2583_v39 = vld [vmem:[%s6516_s27 + $0x58] sm:$0xff] }
 0x2df   : >> { %v2608_v30 = vmul.f32 %v2592_v47, %v2592_v47  ;;  %v2609_v28 = vmul.f32 %v2593_v58, %v2593_v58  ;;  %v2596_v4 = vsub.f32 %v2579_v51, %v6514_v36  ;;  %v2610_v62 = vmul.f32 %v2594_v19, %v2594_v19  ;;  %v2584_v43 = vld [vmem:[%s6516_s27 + $0x60] sm:$0xff]  ;;  %v2585_v37 = vld [vmem:[%s6516_s27 + $0x68] sm:$0xff]  ;;  %v2586_v33 = vld [vmem:[%s6516_s27 + $0x70] sm:$0xff] }
 0x2e0   : >> { %v2621_v6 = vsel %vm378_vm0, %v2605_v11, 0.0  ;;  %v2622_v0 = vsel %vm378_vm0, %v2606_v45, 0.0  ;;  %v2624_v59 = vsel %vm378_vm0, %v2607_v5, 0.0  ;;  %v2597_v31 = vsub.f32 %v2580_v35, %v6514_v36  ;;  %v2587_v38 = vld [vmem:[%s6516_s27 + $0x78] sm:$0xff]  ;;  %vm6668_vm3 = vmpackc.low (%p2565_p13), %vm378_vm0, %vm378_vm0 }
 0x2e1   : >> { %v2623_v14 = vadd.f32 %v2622_v0, %v2621_v6  ;;  %v2626_v12 = vsel %vm378_vm0, %v2608_v30, 0.0  ;;  %v2611_v41 = vmul.f32 %v2595_v17, %v2595_v17  ;;  %v2628_v25 = vsel %vm378_vm0, %v2609_v28, 0.0 }
 0x2e2   : >> { %v2598_v27 = vsub.f32 %v2581_v44, %v6514_v36  ;;  %v2612_v22 = vmul.f32 %v2596_v4, %v2596_v4  ;;  %v2630_v1 = vsel %vm378_vm0, %v2610_v62, 0.0  ;;  %v2599_v54 = vsub.f32 %v2582_v32, %v6514_v36  ;;  %v2690_v32 = vld [vmem:[#allocation3] sm:$0xff] (%p2565_p13) }
 0x2e3   : >> { %v2625_v7 = vadd.f32 %v2624_v59, %v2623_v14  ;;  %v2613_v34 = vmul.f32 %v2597_v31, %v2597_v31  ;;  %v2632_v3 = vsel %vm378_vm0, %v2611_v41, 0.0  ;;  %v2600_v29 = vsub.f32 %v2583_v39, %v6514_v36  ;;  %v2682_v14 = vld [vmem:[%s6951_s5] sm:$0x3] (%p2565_p13) }
 0x2e4   : >> { %v2614_v26 = vmul.f32 %v2598_v27, %v2598_v27  ;;  %v2634_v18 = vsel %vm378_vm0, %v2612_v22, 0.0  ;;  %v2601_v56 = vsub.f32 %v2584_v43, %v6514_v36  ;;  %v2615_v57 = vmul.f32 %v2599_v54, %v2599_v54  ;;  %3886 = vmatprep.subr.msk.bf16.mxu1 (%p2565_p13), %vm2865_vm1, %v2682_v14  ;;  %v2675_v31 = vld [vmem:[%s6950_s4] sm:$0x1] (%p2565_p13)  ;;  %v2692_v22 = vld [vmem:[#allocation3 + $0x10] sm:$0xff] (%p2565_p13) }
 0x2e5   : >> { %v2627_v49 = vadd.f32 %v2626_v12, %v2625_v7  ;;  %v2636_v53 = vsel %vm378_vm0, %v2613_v34, 0.0  ;;  %v2602_v23 = vsub.f32 %v2585_v37, %v6514_v36  ;;  %v2616_v42 = vmul.f32 %v2600_v29, %v2600_v29  ;;  %v2670_v12 = vld [vmem:[%s6949_s3] sm:$0x1] (%p2565_p13) }
 0x2e6   : >> { %v2638_v20 = vsel %vm378_vm0, %v2614_v26, 0.0  ;;  %v2603_v21 = vsub.f32 %v2586_v33, %v6514_v36  ;;  %v2617_v50 = vmul.f32 %v2601_v56, %v2601_v56  ;;  %v2640_v63 = vsel %vm378_vm0, %v2615_v57, 0.0  ;;  %v2694_v39 = vld [vmem:[#allocation3 + $0x20] sm:$0xff] (%p2565_p13) }
 0x2e7   : >> { %v2629_v15 = vadd.f32 %v2628_v25, %v2627_v49  ;;  %v2604_v8 = vsub.f32 %v2587_v38, %v6514_v36  ;;  %v2618_v13 = vmul.f32 %v2602_v23, %v2602_v23  ;;  %v2642_v24 = vsel %vm378_vm0, %v2616_v42, 0.0  ;;  %v2691_v49 = vld [vmem:[#allocation3 + $0x8] sm:$0xff] (%p2565_p13)  ;;  %v2697_v23 = vld [vmem:[#allocation3 + $0x38] sm:$0xff] (%p2565_p13)  ;;  %v2698_v42 = vld [vmem:[#allocation3 + $0x40] sm:$0xff] (%p2565_p13) }
 0x2e8   : >> { %v2619_v2 = vmul.f32 %v2603_v21, %v2603_v21  ;;  %v2644_v40 = vsel %vm378_vm0, %v2617_v50, 0.0  ;;  %v2867_v59 = vsel (%p2565_p13), %vm2865_vm1, %v2682_v14, 0 }
 0x2e9   : >> { %v2631_v9 = vadd.f32 %v2630_v1, %v2629_v15  ;;  %v2620_v47 = vmul.f32 %v2604_v8, %v2604_v8  ;;  %v2646_v61 = vsel %vm378_vm0, %v2618_v13, 0.0  ;;  %3805 = vmatpush3.bf16.msra.mxu1 (%p2565_p13), %v2867_v59  ;;  %v2693_v1 = vld [vmem:[#allocation3 + $0x18] sm:$0xff] (%p2565_p13)  ;;  %v2695_v15 = vld [vmem:[#allocation3 + $0x28] sm:$0xff] (%p2565_p13) }
 0x2ea   : >> { %v2648_v11 = vsel %vm378_vm0, %v2619_v2, 0.0  ;;  %v2701_v2 = vld [vmem:[#allocation3 + $0x58] sm:$0xff] (%p2565_p13) }
 0x2eb   : >> { %v2633_v55 = vadd.f32 %v2632_v3, %v2631_v9  ;;  %v2650_v52 = vsel %vm378_vm0, %v2620_v47, 0.0  ;;  %v2703_v47 = vld [vmem:[#allocation3 + $0x68] sm:$0xff] (%p2565_p13) }
 0x2ed   : >> { %v2635_v46 = vadd.f32 %v2634_v18, %v2633_v55 }
 0x2ef   : >> { %v2637_v60 = vadd.f32 %v2636_v53, %v2635_v46  ;;  %v2696_v46 = vld [vmem:[#allocation3 + $0x30] sm:$0xff] (%p2565_p13) }
 0x2f1   : >> { %v2639_v48 = vadd.f32 %v2638_v20, %v2637_v60  ;;  %v2699_v20 = vld [vmem:[#allocation3 + $0x48] sm:$0xff] (%p2565_p13) }
 0x2f3   : >> { %v2641_v10 = vadd.f32 %v2640_v63, %v2639_v48 }
 0x2f5   : >> { %v2643_v16 = vadd.f32 %v2642_v24, %v2641_v10  ;;  %v2700_v10 = vld [vmem:[#allocation3 + $0x50] sm:$0xff] (%p2565_p13) }
 0x2f7   : >> { %v2645_v58 = vadd.f32 %v2644_v40, %v2643_v16  ;;  %v2702_v16 = vld [vmem:[#allocation3 + $0x60] sm:$0xff] (%p2565_p13) }
 0x2f9   : >> { %v2647_v45 = vadd.f32 %v2646_v61, %v2645_v58 }
 0x2fb   : >> { %v2649_v5 = vadd.f32 %v2648_v11, %v2647_v45 }
 0x2fd   : >> { %v2651_v19 = vadd.f32 %v2650_v52, %v2649_v5 }
 0x2ff   : >> { %2652 = vadd.xlane.f32.xlu0 %v2651_v19 }
 0x38c   : >> { %v2653_v30 = vpop.xlane.xlu0 %2652 }
 0x38d   : >> { %v2654_v51 = vrot.slane %v2653_v30, 4 }
 0x38f   : >> { %v2655_v17 = vadd.f32 %v2654_v51, %v2653_v30 }
 0x391   : >> { %v2656_v28 = vrot.slane %v2655_v17, 2 }
 0x393   : >> { %v2657_v6 = vadd.f32 %v2656_v28, %v2655_v17  ;;  %v2704_v17 = vld [vmem:[#allocation3 + $0x70] sm:$0xff] (%p2565_p13)  ;;  %v2705_v28 = vld [vmem:[#allocation3 + $0x78] sm:$0xff] (%p2565_p13) }
 0x395   : >> { %v2658_v0 = vrot.slane %v2657_v6, 1 }
 0x397   : >> { %v2659_v35 = vadd.f32 %v2658_v0, %v2657_v6  ;;  %v2706_v0 = vld [vmem:[#allocation3 + $0x80] sm:$0xff] (%p2565_p13) }
 0x399   : >> { %3897 = vpush %v2659_v35  ;;  %v2707_v35 = vld [vmem:[#allocation3 + $0x88] sm:$0xff] (%p2565_p13) }
 0x3c7   : > { %2567 = sbr.rel (!%p2565_p13) target bundleno = 729 (0x2d9), region = 131 }
 0x3ca   : >> { %s3898_s30 = spop %3897 }
 0x3cb   : >> { %s2661_s20 = sadd.f32 %s4164_s28, %s3898_s30   ;;  %s3530_s30 = sshll.u32 (%p2565_p13), %s4457_s21, 4  ;;  %s6897_s30 = int_to_ptr.vmem [resolvable:$true] %s3530_s30 }
 0x3cc   : > { %s4058_s1 = scalar_lea.vmem (%p2565_p13), %s6897_s30, 256 }
 0x3cd   : >> { %s7241_s28 = smov %s2661_s20  ;;  %s2664_s11 = smul.f32 (%p2565_p13), 0.0009765625, %s2661_s20 }
 0x3ce   : > { %p4059_p0 = scmp.ne.s32.totalorder %s6897_s30, %s4058_s1  ;;  %s4062_s20 = sshll.u32 %s4173_s29, 4  ;;  %s4063_s20 = int_to_ptr.vmem [resolvable:$false] %s4062_s20 }
 0x3cf   : > { %s2665_s27 = smax.f32 %s4171_s17, %s2664_s11  ;;  %s4064_s11 = scalar_lea.vmem %s4063_s20, 512 }
 0x3d0   : > { %s2666_s0 = sadd.f32 1e-05, %s2665_s27  ;;  %s3734_s27 = sshll.u32 %s4144_s16, 8 }
 0x3d1   : > { %s6895_s28 = scalar_lea.hbm %s6956_s10, %s3734_s27  ;;  %p4060_p1 = pnand %p4059_p0, %p4269_p4 }
 0x3d2   : > { %v2667_v4 = vstv %s2666_s0  ;;  %s7244_s0 = sand.u32 1, %s4136_s14   ;;  %p4065_p3 = scmp.lt.s32.totalorder %s6897_s30, %s4063_s20 }
 0x3d3   : > { %3992 = vrsqrt.f32 %v2667_v4  ;;  %s3514_s16 = scalar_lea.sflag [#allocation6], %s7244_s0  ;;  %p4061_p2 = pneg %p4060_p1 }
 0x3d4   : > { %p4066_p5 = scmp.lt.s32.totalorder %s4064_s11, %s4058_s1 }
 0x3d6   : > { %p4067_p6 = por %p4066_p5, %p4065_p3 }
 0x3d8   : > { %p4068_p7 = pnand %p4067_p6, %p4061_p2 }
 0x3dd   : > { %v3993_v62 = vpop.eup %3992 }
 0x3de   : > { %3899 = vpush %v3993_v62 }
 0x40f   : > { %s3900_s22 = spop %3899 }
 0x410   : > { %v2671_v44 = vstv %s3900_s22 }
 0x411   : > { %v2672_v7 = vmul.f32 %v2671_v44, %v2670_v12 }
 0x413   : > { %2674 = vst.msk [vmem:[#allocation4] sm:$0x1] %vm2673_vm2, %v2672_v7  ;;  %v2677_v41 = vmul.f32 %v2672_v7, %v6514_v36 }
 0x415   : > { %v2678_v25 = vsub.f32 %v2675_v31, %v2677_v41 }
 0x417   : > { %2679 = vst.msk [vmem:[#allocation4 + $0x1] sm:$0x1] %vm2673_vm2, %v2678_v25  ;;  %v2708_v25 = vld [vmem:[#allocation3 + $0x90] sm:$0xff] }
 0x41a   : > { %v6582_v27 = vld [vmem:[#allocation4] ss:$0 sm:$0xff] }
 0x41b   : > { %v2726_v54 = vmul.f32 %v6582_v27, %v2690_v32  ;;  %v2727_v34 = vmul.f32 %v6582_v27, %v2691_v49  ;;  %v2728_v3 = vmul.f32 %v6582_v27, %v2692_v22  ;;  %v2729_v43 = vmul.f32 %v6582_v27, %v2693_v1  ;;  %v2709_v32 = vld [vmem:[#allocation3 + $0x98] sm:$0xff]  ;;  %v2710_v22 = vld [vmem:[#allocation3 + $0xa0] sm:$0xff]  ;;  %v2711_v1 = vld [vmem:[#allocation3 + $0xa8] sm:$0xff] }
 0x41c   : > { %v2730_v36 = vmul.f32 %v6582_v27, %v2694_v39  ;;  %v2731_v29 = vmul.f32 %v6582_v27, %v2695_v15  ;;  %v2732_v60 = vmul.f32 %v6582_v27, %v2696_v46  ;;  %v2733_v21 = vmul.f32 %v6582_v27, %v2697_v23 }
 0x41d   : > { %v2734_v50 = vmul.f32 %v6582_v27, %v2698_v42  ;;  %v2735_v63 = vmul.f32 %v6582_v27, %v2699_v20  ;;  %v2736_v58 = vmul.f32 %v6582_v27, %v2700_v10  ;;  %v2737_v11 = vmul.f32 %v6582_v27, %v2701_v2 }
 0x41e   : > { %v6588_v9 = vld [vmem:[#allocation4 + $0x1] ss:$0 sm:$0xff]  ;;  %v2738_v45 = vmul.f32 %v6582_v27, %v2702_v16  ;;  %v2739_v52 = vmul.f32 %v6582_v27, %v2703_v47  ;;  %v2740_v59 = vmul.f32 %v6582_v27, %v2704_v17  ;;  %v2741_v4 = vmul.f32 %v6582_v27, %v2705_v28 }
 0x41f   : > { %v2762_v26 = vadd.f32 %v6588_v9, %v2726_v54  ;;  %v2763_v18 = vadd.f32 %v6588_v9, %v2727_v34  ;;  %v2764_v37 = vadd.f32 %v6588_v9, %v2728_v3  ;;  %v2765_v55 = vadd.f32 %v6588_v9, %v2729_v43 }
 0x420   : > { %v2766_v56 = vadd.f32 %v6588_v9, %v2730_v36  ;;  %v2767_v57 = vadd.f32 %v6588_v9, %v2731_v29  ;;  %v2768_v48 = vadd.f32 %v6588_v9, %v2732_v60  ;;  %v2769_v8 = vadd.f32 %v6588_v9, %v2733_v21 }
 0x421   : > { %v2794_v53 = vpack.c.bf16 %v2763_v18, %v2762_v26  ;;  %v2795_v33 = vpack.c.bf16 %v2765_v55, %v2764_v37  ;;  %v2770_v13 = vadd.f32 %v6588_v9, %v2734_v50  ;;  %v2771_v24 = vadd.f32 %v6588_v9, %v2735_v63  ;;  %v2712_v18 = vld [vmem:[#allocation3 + $0xb0] sm:$0xff]  ;;  %v2713_v37 = vld [vmem:[#allocation3 + $0xb8] sm:$0xff] }
 0x422   : > { %v2796_v38 = vpack.c.bf16 %v2767_v57, %v2766_v56  ;;  %v2797_v40 = vpack.c.bf16 %v2769_v8, %v2768_v48  ;;  %v2772_v5 = vadd.f32 %v6588_v9, %v2736_v58  ;;  %v2773_v19 = vadd.f32 %v6588_v9, %v2737_v11  ;;  %v2714_v56 = vld [vmem:[#allocation3 + $0xc0] sm:$0xff]  ;;  %v2715_v57 = vld [vmem:[#allocation3 + $0xc8] sm:$0xff]  ;;  %v2716_v50 = vld [vmem:[#allocation3 + $0xd0] sm:$0xff] }
 0x423   : > { %3806 = vmatprep.mubr.msk.bf16.mxu1 %vm378_vm0, %v2794_v53  ;;  %v2798_v61 = vpack.c.bf16 %v2771_v24, %v2770_v13  ;;  %v2774_v30 = vadd.f32 %v6588_v9, %v2738_v45  ;;  %v2775_v51 = vadd.f32 %v6588_v9, %v2739_v52  ;;  %v2742_v62 = vmul.f32 %v6582_v27, %v2706_v0  ;;  %v2717_v63 = vld [vmem:[#allocation3 + $0xd8] sm:$0xff]  ;;  %v2718_v8 = vld [vmem:[#allocation3 + $0xe0] sm:$0xff]  ;;  %v2719_v13 = vld [vmem:[#allocation3 + $0xe8] sm:$0xff] }
 0x424   : > { %3807 = vmatmul.mubr.msk.bf16.vlgmr.msra.gmra.mrb[0].mxu1 %vm378_vm0, %v2795_v33  ;;  %v2799_v6 = vpack.c.bf16 %v2773_v19, %v2772_v5  ;;  %v2743_v12 = vmul.f32 %v6582_v27, %v2707_v35  ;;  %v2776_v44 = vadd.f32 %v6588_v9, %v2740_v59  ;;  %v2777_v7 = vadd.f32 %v6588_v9, %v2741_v4  ;;  %v2720_v45 = vld [vmem:[#allocation3 + $0xf0] sm:$0xff]  ;;  %v2721_v52 = vld [vmem:[#allocation3 + $0xf8] sm:$0xff]  ;;  %v3677_v0 = vld [vmem:[#allocation2 + $0x168] sm:$0xff] }
 0x425   : > { %3810 = vmatprep.mubr.msk.bf16.mxu1 %vm378_vm0, %v2796_v38  ;;  %v2800_v14 = vpack.c.bf16 %v2775_v51, %v2774_v30  ;;  %v2778_v31 = vadd.f32 %v6588_v9, %v2742_v62  ;;  %v2744_v15 = vmul.f32 %v6582_v27, %v2708_v25  ;;  %v2745_v54 = vmul.f32 %v6582_v27, %v2709_v32  ;;  %v3678_v35 = vld [vmem:[#allocation2 + $0x170] sm:$0xff]  ;;  %v3661_v59 = vld [vmem:[#allocation2 + $0x68] sm:$0xff] }
 0x426   : > { %v2779_v41 = vadd.f32 %v6588_v9, %v2743_v12  ;;  %v2801_v49 = vpack.c.bf16 %v2777_v7, %v2776_v44  ;;  %v2746_v34 = vmul.f32 %v6582_v27, %v2710_v22  ;;  %v2747_v3 = vmul.f32 %v6582_v27, %v2711_v1  ;;  %v3662_v4 = vld [vmem:[#allocation2 + $0x70] sm:$0xff]  ;;  %v3663_v7 = vld [vmem:[#allocation2 + $0x88] sm:$0xff] }
 0x427   : > { %v2780_v43 = vadd.f32 %v6588_v9, %v2744_v15  ;;  %v2781_v36 = vadd.f32 %v6588_v9, %v2745_v54  ;;  %v2748_v33 = vmul.f32 %v6582_v27, %v2712_v18  ;;  %v2749_v46 = vmul.f32 %v6582_v27, %v2713_v37  ;;  %v3680_v12 = vld [vmem:[#allocation2 + $0x190] sm:$0xff]  ;;  %v3681_v25 = vld [vmem:[#allocation2 + $0x1a8] sm:$0xff] }
 0x428   : > { %v2802_v39 = vpack.c.bf16 %v2779_v41, %v2778_v31  ;;  %v2782_v29 = vadd.f32 %v6588_v9, %v2746_v34  ;;  %v2783_v26 = vadd.f32 %v6588_v9, %v2747_v3  ;;  %v2750_v23 = vmul.f32 %v6582_v27, %v2714_v56  ;;  %v3664_v31 = vld [vmem:[#allocation2 + $0x90] sm:$0xff]  ;;  %v3665_v22 = vld [vmem:[#allocation2 + $0xa8] sm:$0xff] }
 0x429   : > { %v2803_v55 = vpack.c.bf16 %v2781_v36, %v2780_v43  ;;  %v2751_v42 = vmul.f32 %v6582_v27, %v2715_v57  ;;  %v2784_v20 = vadd.f32 %v6588_v9, %v2748_v33  ;;  %v2785_v38 = vadd.f32 %v6588_v9, %v2749_v46  ;;  %v3682_v32 = vld [vmem:[#allocation2 + $0x1b0] sm:$0xff]  ;;  %v3667_v3 = vld [vmem:[#allocation2 + $0xc8] sm:$0xff] }
 0x42a   : > { %v2804_v53 = vpack.c.bf16 %v2783_v26, %v2782_v29  ;;  %v2786_v60 = vadd.f32 %v6588_v9, %v2750_v23  ;;  %v2752_v10 = vmul.f32 %v6582_v27, %v2716_v50  ;;  %v2753_v2 = vmul.f32 %v6582_v27, %v2717_v63  ;;  %v3666_v1 = vld [vmem:[#allocation2 + $0xb0] sm:$0xff]  ;;  %v3685_v36 = vld [vmem:[#allocation2 + $0x1e8] sm:$0xff] }
 0x42b   : > { %v2787_v21 = vadd.f32 %v6588_v9, %v2751_v42  ;;  %v2805_v48 = vpack.c.bf16 %v2785_v38, %v2784_v20  ;;  %v2755_v16 = vmul.f32 %v6582_v27, %v2719_v13  ;;  %v2756_v30 = vmul.f32 %v6582_v27, %v2720_v45  ;;  %v3684_v15 = vld [vmem:[#allocation2 + $0x1d0] sm:$0xff]  ;;  %v3669_v37 = vld [vmem:[#allocation2 + $0xe8] sm:$0xff]  ;;  %v6704_v13 = vld [vmem:[%s6953_s7] sm:$0xf] }
 0x42c   : > { %3811 = vmatmul.mubr.msk.bf16.gmra.mrb[4].mxu1 %vm378_vm0, %v2797_v40  ;;  %v2754_v40 = vmul.f32 %v6582_v27, %v2718_v8  ;;  %v2788_v47 = vadd.f32 %v6588_v9, %v2752_v10  ;;  %v2757_v51 = vmul.f32 %v6582_v27, %v2721_v52  ;;  %v3841_v27 = vpack.c.bf16 %v3662_v4, %v3661_v59  ;;  %v3668_v43 = vld [vmem:[#allocation2 + $0xd0] sm:$0xff]  ;;  %v3687_v56 = vld [vmem:[#allocation2 + $0x208] sm:$0xff]  ;;  %v2685_v8 = vld [vmem:[%s6954_s8] sm:$0xff] }
 0x42d   : > { %3814 = vmatprep.mubr.msk.bf16.mxu1 %vm378_vm0, %v2798_v61  ;;  %v2806_v24 = vpack.c.bf16 %v2787_v21, %v2786_v60  ;;  %v2789_v61 = vadd.f32 %v6588_v9, %v2753_v2  ;;  %v2791_v11 = vadd.f32 %v6588_v9, %v2755_v16  ;;  %v2792_v17 = vadd.f32 %v6588_v9, %v2756_v30  ;;  %v3686_v29 = vld [vmem:[#allocation2 + $0x1f0] sm:$0xff]  ;;  %v3671_v46 = vld [vmem:[#allocation2 + $0x108] sm:$0xff]  ;;  %v2686_v16 = vld [vmem:[%s6955_s9] sm:$0xff] }
 0x42e   : > { %v2790_v58 = vadd.f32 %v6588_v9, %v2754_v40  ;;  %v2793_v28 = vadd.f32 %v6588_v9, %v2757_v51  ;;  %v3679_v9 = vld [vmem:[#allocation2 + $0x188] sm:$0xff]  ;;  %v3847_v41 = vpack.c.bf16 %v3664_v31, %v3663_v7  ;;  %v3853_v54 = vpack.c.bf16 %v3666_v1, %v3665_v22  ;;  %v3688_v57 = vld [vmem:[#allocation2 + $0x210] sm:$0xff]  ;;  %3802 = vmatprep.mubr.msk.bf16.mxu0 %vm3411_vm4, %v6704_v13 }
 0x42f   : > { %v2807_v5 = vpack.c.bf16 %v2789_v61, %v2788_v47  ;;  %v3844_v44 = vpack.c.bf16 %v3680_v12, %v3679_v9  ;;  %v3859_v26 = vpack.c.bf16 %v3668_v43, %v3667_v3  ;;  %v3862_v18 = vpack.c.bf16 %v3686_v29, %v3685_v36  ;;  %v3672_v23 = vld [vmem:[#allocation2 + $0x110] sm:$0xff]  ;;  %v3689_v42 = vld [vmem:[#allocation2 + $0x228] sm:$0xff]  ;;  %v6719_v61 = vld [vmem:[%s6952_s6] ss:$0 sm:$0xff] }
 0x430   : > { %v2808_v19 = vpack.c.bf16 %v2791_v11, %v2790_v58  ;;  %v3868_v33 = vpack.c.bf16 %v3688_v57, %v3687_v56  ;;  %v3690_v20 = vld [vmem:[#allocation2 + $0x230] sm:$0xff]  ;;  %v3871_v38 = vpack.c.bf16 %v3672_v23, %v3671_v46  ;;  %v3673_v21 = vld [vmem:[#allocation2 + $0x128] sm:$0xff]  ;;  %v4172_v47 = vmov 0  }
 0x431   : > { %v3874_v60 = vpack.c.bf16 %v3690_v20, %v3689_v42  ;;  %v3674_v50 = vld [vmem:[#allocation2 + $0x130] sm:$0xff]  ;;  %v3691_v63 = vld [vmem:[#allocation2 + $0x248] sm:$0xff]  ;;  %3991 = vset.pattern.permute.xlu0 %v4172_v47 }
 0x432   : > { %v3675_v2 = vld [vmem:[#allocation2 + $0x148] sm:$0xff]  ;;  %v3676_v40 = vld [vmem:[#allocation2 + $0x150] sm:$0xff]  ;;  %3506 = vperm.xlu0 %3991, %v2686_v16  }
 0x433   : > { %v3883_v58 = vpack.c.bf16 %v3676_v40, %v3675_v2 }
 0x434   : > { %3815 = vmatmul.mubr.msk.bf16.gmra.mrb[8].mxu1 %vm378_vm0, %v2799_v6  ;;  %v2809_v6 = vpack.c.bf16 %v2793_v28, %v2792_v17 }
 0x435   : > { %3818 = vmatprep.mubr.msk.bf16.mxu1 %vm378_vm0, %v2800_v14  ;;  %v3838_v14 = vpack.c.bf16 %v3678_v35, %v3677_v0 }
 0x437   : > { %3840 = vmatprep.subr.msk.bf16.mxu1 %vm6668_vm3, %v3838_v14 }
 0x438   : > { %3843 = vmatpush3.bf16.xpose.msk.msra.mxu1 %vm6668_vm3, %v3841_v27 }
 0x439   : > { %3846 = vmatprep.subr.msk.bf16.mxu1 %vm6668_vm3, %v3844_v44 }
 0x43c   : > { %3819 = vmatmul.mubr.msk.bf16.gmra.mrb[12].mxu1 %vm378_vm0, %v2801_v49  ;;  %v3850_v49 = vpack.c.bf16 %v3682_v32, %v3681_v25 }
 0x43d   : > { %3822 = vmatprep.mubr.msk.bf16.mxu1 %vm378_vm0, %v2802_v39  ;;  %v3683_v39 = vld [vmem:[#allocation2 + $0x1c8] sm:$0xff] }
 0x43e   : > { %v3856_v34 = vpack.c.bf16 %v3684_v15, %v3683_v39 }
 0x440   : > { %3849 = vmatpush3.bf16.xpose.msk.msra.mxu1 %vm6668_vm3, %v3847_v41 }
 0x441   : > { %3852 = vmatprep.subr.msk.bf16.mxu1 %vm6668_vm3, %v3850_v49 }
 0x444   : > { %3823 = vmatmul.mubr.msk.bf16.gmra.mrb[16].mxu1 %vm378_vm0, %v2803_v55  ;;  %v3670_v55 = vld [vmem:[#allocation2 + $0xf0] sm:$0xff] }
 0x445   : > { %3826 = vmatprep.mubr.msk.bf16.mxu1 %vm378_vm0, %v2804_v53  ;;  %v3865_v53 = vpack.c.bf16 %v3670_v55, %v3669_v37 }
 0x448   : > { %3855 = vmatpush3.bf16.xpose.msk.msra.mxu1 %vm6668_vm3, %v3853_v54 }
 0x449   : > { %3858 = vmatprep.subr.msk.bf16.mxu1 %vm6668_vm3, %v3856_v34 }
 0x44c   : > { %3827 = vmatmul.mubr.msk.bf16.gmra.mrb[20].mxu1 %vm378_vm0, %v2805_v48  ;;  %v3692_v48 = vld [vmem:[#allocation2 + $0x250] sm:$0xff] }
 0x44d   : > { %3830 = vmatprep.mubr.msk.bf16.mxu1 %vm378_vm0, %v2806_v24  ;;  %v3877_v24 = vpack.c.bf16 %v3674_v50, %v3673_v21  ;;  %v3880_v10 = vpack.c.bf16 %v3692_v48, %v3691_v63 }
 0x450   : > { %3861 = vmatpush3.bf16.xpose.msk.msra.mxu1 %vm6668_vm3, %v3859_v26 }
 0x451   : > { %3864 = vmatprep.subr.msk.bf16.mxu1 %vm6668_vm3, %v3862_v18 }
 0x454   : > { %3831 = vmatmul.mubr.msk.bf16.gmra.mrb[24].mxu1 %vm378_vm0, %v2807_v5 }
 0x455   : > { %3834 = vmatprep.mubr.msk.bf16.mxu1 %vm378_vm0, %v2808_v19 }
 0x458   : > { %3867 = vmatpush3.bf16.xpose.msk.msra.mxu1 %vm6668_vm3, %v3865_v53 }
 0x459   : > { %3870 = vmatprep.subr.msk.bf16.mxu1 %vm6668_vm3, %v3868_v33 }
 0x45c   : > { %3835 = vmatmul.mubr.msk.bf16.gmra.mrb[28].mxu1 %vm378_vm0, %v2809_v6 }
 0x45d   : > { %3784 = vmatprep.mubr.msk.f32.mxu1 %vm378_vm0, %v2685_v8 }
 0x460   : > { %3873 = vmatpush3.bf16.xpose.msk.msra.mxu1 %vm6668_vm3, %v3871_v38 }
 0x461   : > { %3876 = vmatprep.subr.msk.bf16.mxu1 %vm6668_vm3, %v3874_v60 }
 0x468   : > { %3879 = vmatpush3.bf16.xpose.msk.msra.mxu1 %vm6668_vm3, %v3877_v24 }
 0x469   : > { %3882 = vmatprep.subr.msk.bf16.mxu1 %vm6668_vm3, %v3880_v10 }
 0x470   : > { %3885 = vmatpush3.bf16.xpose.msk.msra.mxu1 %vm6668_vm3, %v3883_v58 }
 0x477   : > { %3785 = vmatmul.mubr.msk.f32.vlgmr.msra.gmra.mrb[32].mxu1 %vm378_vm0, %v2685_v8 }
 0x4f7   : > { %v3808_v11 = vpop.f32.mrb[0].mxu1 }
 0x4f8   : > { %v2912_v45 = vadd.f32 %v3808_v11, %v6719_v61  ;;  %v2903_v52 = vpop.f32.mrb[1].mxu1 }
 0x4f9   : > { %v2904_v5 = vadd.f32 %v6719_v61, %v2903_v52  ;;  %v3809_v19 = vpop.f32.mrb[2].mxu1 }
 0x4fa   : > { %v3064_v30 = vmul.f32 0.70710677, %v2912_v45  ;;  %v2915_v51 = vadd.f32 %v3809_v19, %v6719_v61  ;;  %v2906_v17 = vpop.f32.mrb[3].mxu1  ;;  %v3032_v39 = vmul.f32 0.5, %v2912_v45 }
 0x4fb   : > { %v3062_v28 = vmul.f32 0.70710677, %v2904_v5  ;;  %v2907_v6 = vadd.f32 %v6719_v61, %v2906_v17  ;;  %v3030_v37 = vmul.f32 0.5, %v2904_v5 }
 0x4fc   : > { %3994 = verf.f32 %v3064_v30  ;;  %v3065_v0 = vmul.f32 0.70710677, %v2915_v51  ;;  %v3033_v36 = vmul.f32 0.5, %v2915_v51 }
 0x4fd   : > { %3996 = verf.f32 %v3062_v28  ;;  %v3063_v35 = vmul.f32 0.70710677, %v2907_v6  ;;  %v3031_v46 = vmul.f32 0.5, %v2907_v6 }
 0x4fe   : > { %3998 = verf.f32 %v3065_v0 }
 0x4ff   : > { %4000 = verf.f32 %v3063_v35  ;;  %v3812_v14 = vpop.f32.mrb[4].mxu1 }
 0x500   : > { %v2928_v59 = vadd.f32 %v3812_v14, %v6719_v61  ;;  %v2919_v4 = vpop.f32.mrb[5].mxu1 }
 0x501   : > { %v2920_v62 = vadd.f32 %v6719_v61, %v2919_v4  ;;  %v3813_v27 = vpop.f32.mrb[6].mxu1 }
 0x502   : > { %v3068_v9 = vmul.f32 0.70710677, %v2928_v59  ;;  %v2931_v12 = vadd.f32 %v3813_v27, %v6719_v61  ;;  %v2922_v44 = vpop.f32.mrb[7].mxu1  ;;  %v3036_v45 = vmul.f32 0.5, %v2928_v59 }
 0x503   : > { %v3066_v7 = vmul.f32 0.70710677, %v2920_v62  ;;  %v2923_v31 = vadd.f32 %v6719_v61, %v2922_v44  ;;  %v3034_v51 = vmul.f32 0.5, %v2920_v62 }
 0x504   : > { %4002 = verf.f32 %v3068_v9  ;;  %v3069_v41 = vmul.f32 0.70710677, %v2931_v12  ;;  %v3037_v52 = vmul.f32 0.5, %v2931_v12 }
 0x505   : > { %4004 = verf.f32 %v3066_v7  ;;  %v3067_v25 = vmul.f32 0.70710677, %v2923_v31  ;;  %v3035_v17 = vmul.f32 0.5, %v2923_v31 }
 0x506   : > { %v3995_v32 = vpop.eup %3994  ;;  %4006 = verf.f32 %v3069_v41 }
 0x507   : > { %v3997_v49 = vpop.eup %3996  ;;  %4008 = verf.f32 %v3067_v25  ;;  %v3816_v22 = vpop.f32.mrb[8].mxu1  ;;  %v3128_v15 = vadd.f32 1.0, %v3995_v32 }
 0x508   : > { %v3999_v1 = vpop.eup %3998  ;;  %v6733_v54 = vadd.f32 %v3816_v22, %v6719_v61  ;;  %v2935_v34 = vpop.f32.mrb[9].mxu1  ;;  %v3126_v43 = vadd.f32 1.0, %v3997_v49 }
 0x509   : > { %v4001_v3 = vpop.eup %4000  ;;  %v3129_v29 = vadd.f32 1.0, %v3999_v1  ;;  %v6736_v26 = vadd.f32 %v6719_v61, %v2935_v34  ;;  %v3817_v18 = vpop.f32.mrb[10].mxu1  ;;  %v6744_v20 = vmul.f32 %v3128_v15, %v3032_v39 }
 0x50a   : > { %v3127_v55 = vadd.f32 1.0, %v4001_v3  ;;  %v3072_v56 = vmul.f32 0.70710677, %v6733_v54  ;;  %v2947_v57 = vadd.f32 %v3817_v18, %v6719_v61  ;;  %v2938_v53 = vpop.f32.mrb[11].mxu1  ;;  %v6746_v21 = vmul.f32 %v3126_v43, %v3030_v37 }
 0x50b   : > { %v6740_v33 = vmul.f32 %v3129_v29, %v3033_v36  ;;  %v3070_v23 = vmul.f32 0.70710677, %v6736_v26  ;;  %v2939_v42 = vadd.f32 %v6719_v61, %v2938_v53  ;;  %v3040_v3 = vmul.f32 0.5, %v6733_v54 }
 0x50c   : > { %4010 = verf.f32 %v3072_v56  ;;  %v3073_v38 = vmul.f32 0.70710677, %v2947_v57  ;;  %v6748_v50 = vmul.f32 %v3127_v55, %v3031_v46  ;;  %v3041_v43 = vmul.f32 0.5, %v2947_v57 }
 0x50d   : > { %4012 = verf.f32 %v3070_v23  ;;  %v3071_v60 = vmul.f32 0.70710677, %v2939_v42  ;;  %v3191_v48 = vpack.c.bf16 %v6740_v33, %v6744_v20  ;;  %v3038_v37 = vmul.f32 0.5, %v6736_v26 }
 0x50e   : > { %v4003_v63 = vpop.eup %4002  ;;  %4014 = verf.f32 %v3073_v38  ;;  %v3190_v2 = vpack.c.bf16 %v6748_v50, %v6746_v21  ;;  %v3039_v55 = vmul.f32 0.5, %v2939_v42 }
 0x50f   : > { %v4005_v8 = vpop.eup %4004  ;;  %v3132_v24 = vadd.f32 1.0, %v4003_v63  ;;  %4016 = verf.f32 %v3071_v60  ;;  %v3820_v10 = vpop.f32.mrb[12].mxu1 }
 0x510   : > { %v4007_v40 = vpop.eup %4006  ;;  %v3130_v16 = vadd.f32 1.0, %v4005_v8  ;;  %v6755_v47 = vadd.f32 %v3820_v10, %v6719_v61  ;;  %v2951_v58 = vpop.f32.mrb[13].mxu1 }
 0x511   : > { %v4009_v11 = vpop.eup %4008  ;;  %v3133_v5 = vadd.f32 1.0, %v4007_v40  ;;  %v6758_v19 = vadd.f32 %v6719_v61, %v2951_v58  ;;  %v3821_v30 = vpop.f32.mrb[14].mxu1  ;;  %v6761_v35 = vmul.f32 %v3132_v24, %v3036_v45 }
 0x512   : > { %v3131_v28 = vadd.f32 1.0, %v4009_v11  ;;  %v3076_v6 = vmul.f32 0.70710677, %v6755_v47  ;;  %v2954_v0 = vpop.f32.mrb[15].mxu1  ;;  %v2963_v59 = vadd.f32 %v3821_v30, %v6719_v61  ;;  %v6767_v27 = vmul.f32 %v3130_v16, %v3034_v51 }
 0x513   : > { %v6763_v14 = vmul.f32 %v3133_v5, %v3037_v52  ;;  %v3074_v4 = vmul.f32 0.70710677, %v6758_v19  ;;  %v2955_v62 = vadd.f32 %v6719_v61, %v2954_v0  ;;  %v3044_v30 = vmul.f32 0.5, %v6755_v47 }
 0x514   : > { %v6769_v9 = vmul.f32 %v3131_v28, %v3035_v17  ;;  %4018 = verf.f32 %v3076_v6  ;;  %v3077_v12 = vmul.f32 0.70710677, %v2963_v59  ;;  %v3042_v0 = vmul.f32 0.5, %v6758_v19 }
 0x515   : > { %4020 = verf.f32 %v3074_v4  ;;  %v3193_v44 = vpack.c.bf16 %v6763_v14, %v6761_v35  ;;  %v3075_v31 = vmul.f32 0.70710677, %v2955_v62  ;;  %v3045_v4 = vmul.f32 0.5, %v2963_v59 }
 0x516   : > { %v4011_v7 = vpop.eup %4010  ;;  %v3192_v41 = vpack.c.bf16 %v6769_v9, %v6767_v27  ;;  %4022 = verf.f32 %v3077_v12 }
 0x517   : > { %v4013_v25 = vpop.eup %4012  ;;  %v3136_v32 = vadd.f32 1.0, %v4011_v7  ;;  %v3824_v49 = vpop.f32.mrb[16].mxu1  ;;  %4024 = verf.f32 %v3075_v31 }
 0x518   : > { %v4015_v22 = vpop.eup %4014  ;;  %v3134_v1 = vadd.f32 1.0, %v4013_v25  ;;  %v6777_v39 = vadd.f32 %v3824_v49, %v6719_v61  ;;  %v2967_v15 = vpop.f32.mrb[17].mxu1  ;;  %v3043_v25 = vmul.f32 0.5, %v2955_v62  ;;  %v3422_v20 = vsel %vm3411_vm4, %v3192_v41, 0 }
 0x519   : > { %v4017_v34 = vpop.eup %4016  ;;  %v3137_v36 = vadd.f32 1.0, %v4015_v22  ;;  %v6781_v29 = vadd.f32 %v6719_v61, %v2967_v15  ;;  %v3825_v18 = vpop.f32.mrb[18].mxu1  ;;  %v6785_v23 = vmul.f32 %v3136_v32, %v3040_v3 }
 0x51a   : > { %v3135_v56 = vadd.f32 1.0, %v4017_v34  ;;  %v3080_v53 = vmul.f32 0.70710677, %v6777_v39  ;;  %v2970_v46 = vpop.f32.mrb[19].mxu1  ;;  %v2979_v54 = vadd.f32 %v3825_v18, %v6719_v61  ;;  %v6791_v57 = vmul.f32 %v3134_v1, %v3038_v37 }
 0x51b   : > { %v6787_v38 = vmul.f32 %v3137_v36, %v3041_v43  ;;  %v3078_v60 = vmul.f32 0.70710677, %v6781_v29  ;;  %v2971_v26 = vadd.f32 %v6719_v61, %v2970_v46 }
 0x51c   : > { %v6793_v63 = vmul.f32 %v3135_v56, %v3039_v55  ;;  %4026 = verf.f32 %v3080_v53  ;;  %v3081_v42 = vmul.f32 0.70710677, %v2979_v54 }
 0x51d   : > { %4028 = verf.f32 %v3078_v60  ;;  %v3195_v8 = vpack.c.bf16 %v6787_v38, %v6785_v23  ;;  %v3079_v10 = vmul.f32 0.70710677, %v2971_v26  ;;  %v3048_v60 = vmul.f32 0.5, %v6777_v39  ;;  %v3507_v38 = vpop.permute.xlu0 %3506 }
 0x51e   : > { %v4019_v24 = vpop.eup %4018  ;;  %v3194_v40 = vpack.c.bf16 %v6793_v63, %v6791_v57  ;;  %4030 = verf.f32 %v3081_v42  ;;  %v3046_v42 = vmul.f32 0.5, %v6781_v29 }
 0x51f   : > { %v4021_v16 = vpop.eup %4020  ;;  %v3828_v58 = vpop.f32.mrb[20].mxu1  ;;  %v3140_v11 = vadd.f32 1.0, %v4019_v24  ;;  %4032 = verf.f32 %v3079_v10  ;;  %v3049_v24 = vmul.f32 0.5, %v2979_v54  ;;  %v3431_v9 = vsel %vm3411_vm4, %v3195_v8, 0 }
 0x520   : > { %v6801_v45 = vadd.f32 %v3828_v58, %v6719_v61  ;;  %v2983_v52 = vpop.f32.mrb[21].mxu1  ;;  %v4023_v5 = vpop.eup %4022  ;;  %v3138_v51 = vadd.f32 1.0, %v4021_v16  ;;  %v3428_v27 = vsel %vm3411_vm4, %v3194_v40, 0 }
 0x521   : > { %v6805_v17 = vadd.f32 %v6719_v61, %v2983_v52  ;;  %v3829_v28 = vpop.f32.mrb[22].mxu1  ;;  %v4025_v6 = vpop.eup %4024  ;;  %v3141_v12 = vadd.f32 1.0, %v4023_v5  ;;  %v6811_v47 = vmul.f32 %v3140_v11, %v3044_v30 }
 0x522   : > { %v3084_v7 = vmul.f32 0.70710677, %v6801_v45  ;;  %v2986_v31 = vpop.f32.mrb[23].mxu1  ;;  %v3139_v32 = vadd.f32 1.0, %v4025_v6  ;;  %v2995_v22 = vadd.f32 %v3829_v28, %v6719_v61  ;;  %v6816_v34 = vmul.f32 %v3138_v51, %v3042_v0 }
 0x523   : > { %v3082_v49 = vmul.f32 0.70710677, %v6805_v17  ;;  %v6813_v1 = vmul.f32 %v3141_v12, %v3045_v4  ;;  %v2987_v15 = vadd.f32 %v6719_v61, %v2986_v31  ;;  %v3047_v28 = vmul.f32 0.5, %v2971_v26 }
 0x524   : > { %4034 = verf.f32 %v3084_v7  ;;  %v6818_v19 = vmul.f32 %v3139_v32, %v3043_v25  ;;  %v3085_v59 = vmul.f32 0.70710677, %v2995_v22 }
 0x525   : > { %4036 = verf.f32 %v3082_v49  ;;  %v3083_v62 = vmul.f32 0.70710677, %v2987_v15  ;;  %v3197_v43 = vpack.c.bf16 %v6813_v1, %v6811_v47 }
 0x526   : > { %v4027_v3 = vpop.eup %4026  ;;  %4038 = verf.f32 %v3085_v59  ;;  %v3196_v37 = vpack.c.bf16 %v6818_v19, %v6816_v34 }
 0x527   : > { %v4029_v36 = vpop.eup %4028  ;;  %v3832_v18 = vpop.f32.mrb[24].mxu1  ;;  %v3144_v55 = vadd.f32 1.0, %v4027_v3  ;;  %4040 = verf.f32 %v3083_v62  ;;  %v3437_v14 = vsel %vm3411_vm4, %v3197_v43, 0 }
 0x528   : > { %v6825_v56 = vadd.f32 %v3832_v18, %v6719_v61  ;;  %v2999_v53 = vpop.f32.mrb[25].mxu1  ;;  %v4031_v46 = vpop.eup %4030  ;;  %v3142_v51 = vadd.f32 1.0, %v4029_v36  ;;  %v3434_v35 = vsel %vm3411_vm4, %v3196_v37, 0 }
 0x529   : > { %v6830_v10 = vadd.f32 %v6719_v61, %v2999_v53  ;;  %v3833_v16 = vpop.f32.mrb[26].mxu1  ;;  %v4033_v58 = vpop.eup %4032  ;;  %v3145_v11 = vadd.f32 1.0, %v4031_v46  ;;  %v3176_v54 = vmul.f32 %v3144_v55, %v3048_v60  ;;  %v3052_v55 = vmul.f32 0.5, %v6801_v45 }
 0x52a   : > { %v3088_v52 = vmul.f32 0.70710677, %v6825_v56  ;;  %v6834_v5 = vadd.f32 %v3833_v16, %v6719_v61  ;;  %v3002_v30 = vpop.f32.mrb[27].mxu1  ;;  %v3143_v29 = vadd.f32 1.0, %v4033_v58  ;;  %v3174_v25 = vmul.f32 %v3142_v51, %v3046_v42 }
 0x52b   : > { %v3086_v6 = vmul.f32 0.70710677, %v6830_v10  ;;  %v3003_v39 = vadd.f32 %v6719_v61, %v3002_v30  ;;  %v3177_v0 = vmul.f32 %v3145_v11, %v3049_v24  ;;  %v3416_v42 = vsel %vm3411_vm4, %v3190_v2, 0 }
 0x52c   : > { %4042 = verf.f32 %v3088_v52  ;;  %v3089_v4 = vmul.f32 0.70710677, %v6834_v5  ;;  %v3175_v32 = vmul.f32 %v3143_v29, %v3047_v28  ;;  %v3050_v16 = vmul.f32 0.5, %v6805_v17 }
 0x52d   : > { %4044 = verf.f32 %v3086_v6  ;;  %v3087_v12 = vmul.f32 0.70710677, %v3003_v39  ;;  %v3199_v31 = vpack.c.bf16 %v3177_v0, %v3176_v54  ;;  %v3053_v58 = vmul.f32 0.5, %v2995_v22 }
 0x52e   : > { %v4035_v7 = vpop.eup %4034  ;;  %4046 = verf.f32 %v3089_v4  ;;  %v3198_v36 = vpack.c.bf16 %v3175_v32, %v3174_v25  ;;  %v3051_v51 = vmul.f32 0.5, %v2987_v15 }
 0x52f   : > { %v4037_v49 = vpop.eup %4036  ;;  %4048 = verf.f32 %v3087_v12  ;;  %v3836_v26 = vpop.f32.mrb[28].mxu1  ;;  %v3148_v59 = vadd.f32 1.0, %v4035_v7 }
 0x530   : > { %v3024_v3 = vadd.f32 %v3836_v26, %v6719_v61  ;;  %v3015_v62 = vpop.f32.mrb[29].mxu1  ;;  %v4039_v18 = vpop.eup %4038  ;;  %v3146_v53 = vadd.f32 1.0, %v4037_v49  ;;  %3887 = vmatprep.subr.msk.bf16.mxu0 %vm3411_vm4, %v3198_v36  ;;  %v3056_v26 = vmul.f32 0.5, %v6825_v56 }
 0x531   : > { %v3016_v46 = vadd.f32 %v6719_v61, %v3015_v62  ;;  %v3837_v60 = vpop.f32.mrb[30].mxu1  ;;  %v4041_v24 = vpop.eup %4040  ;;  %v3149_v11 = vadd.f32 1.0, %v4039_v18  ;;  %3787 = vmatpush3.bf16.xpose.msra.mxu0 %v3416_v42  ;;  %v3180_v29 = vmul.f32 %v3148_v59, %v3052_v55  ;;  %v3054_v59 = vmul.f32 0.5, %v6830_v10 }
 0x532   : > { %v3092_v52 = vmul.f32 0.70710677, %v3024_v3  ;;  %v3018_v30 = vpop.f32.mrb[31].mxu1  ;;  %v3147_v45 = vadd.f32 1.0, %v4041_v24  ;;  %v3027_v6 = vadd.f32 %v3837_v60, %v6719_v61  ;;  %3888 = vmatprep.subr.msk.bf16.mxu0 %vm3411_vm4, %v3199_v31  ;;  %v3178_v50 = vmul.f32 %v3146_v53, %v3050_v16 }
 0x533   : > { %v3090_v28 = vmul.f32 0.70710677, %v3016_v46  ;;  %v3181_v54 = vmul.f32 %v3149_v11, %v3053_v58  ;;  %v3019_v21 = vadd.f32 %v6719_v61, %v3018_v30  ;;  %v3057_v61 = vmul.f32 0.5, %v6834_v5 }
 0x534   : > { %4050 = verf.f32 %v3092_v52  ;;  %v3179_v2 = vmul.f32 %v3147_v45, %v3051_v51  ;;  %v3093_v17 = vmul.f32 0.70710677, %v3027_v6  ;;  %v3055_v62 = vmul.f32 0.5, %v3003_v39 }
 0x535   : > { %4052 = verf.f32 %v3090_v28  ;;  %v3201_v0 = vpack.c.bf16 %v3181_v54, %v3180_v29  ;;  %v3091_v4 = vmul.f32 0.70710677, %v3019_v21  ;;  %v3419_v18 = vsel %vm3411_vm4, %v3191_v48, 0 }
 0x536   : > { %v4043_v22 = vpop.eup %4042  ;;  %v3200_v12 = vpack.c.bf16 %v3179_v2, %v3178_v50  ;;  %4054 = verf.f32 %v3093_v17  ;;  %v3060_v52 = vmul.f32 0.5, %v3024_v3  ;;  %v3061_v30 = vmul.f32 0.5, %v3027_v6 }
 0x537   : > { %v4045_v15 = vpop.eup %4044  ;;  %v3152_v7 = vadd.f32 1.0, %v4043_v22  ;;  %4056 = verf.f32 %v3091_v4  ;;  %v3058_v48 = vmul.f32 0.5, %v3016_v46  ;;  %v3059_v51 = vmul.f32 0.5, %v3019_v21 }
 0x538   : > { %v4047_v25 = vpop.eup %4046  ;;  %v3150_v32 = vadd.f32 1.0, %v4045_v15  ;;  %v3425_v3 = vsel %vm3411_vm4, %v3193_v44, 0 }
 0x539   : > { %v4049_v49 = vpop.eup %4048  ;;  %v3153_v31 = vadd.f32 1.0, %v4047_v25  ;;  %v3184_v55 = vmul.f32 %v3152_v7, %v3056_v26  ;;  %3789 = vmatpush3.bf16.xpose.msra.mxu0 %v3419_v18 }
 0x53a   : > { %v3151_v36 = vadd.f32 1.0, %v4049_v49  ;;  %v3182_v60 = vmul.f32 %v3150_v32, %v3054_v59  ;;  %3889 = vmatprep.subr.msk.bf16.mxu0 %vm3411_vm4, %v3200_v12 }
 0x53b   : > { %v3185_v53 = vmul.f32 %v3153_v31, %v3057_v61 }
 0x53c   : > { %v3183_v42 = vmul.f32 %v3151_v36, %v3055_v62 }
 0x53d   : > { %v3203_v56 = vpack.c.bf16 %v3185_v53, %v3184_v55 }
 0x53e   : > { %v4051_v24 = vpop.eup %4050  ;;  %v3202_v5 = vpack.c.bf16 %v3183_v42, %v3182_v60 }
 0x53f   : > { %v4053_v16 = vpop.eup %4052  ;;  %v3156_v58 = vadd.f32 1.0, %v4051_v24 }
 0x540   : > { %v4055_v10 = vpop.eup %4054  ;;  %v3154_v39 = vadd.f32 1.0, %v4053_v16 }
 0x541   : > { %v4057_v11 = vpop.eup %4056  ;;  %v3157_v33 = vadd.f32 1.0, %v4055_v10  ;;  %3791 = vmatpush3.bf16.xpose.msra.mxu0 %v3422_v20  ;;  %v3188_v28 = vmul.f32 %v3156_v58, %v3060_v52 }
 0x542   : > { %v3155_v45 = vadd.f32 1.0, %v4057_v11  ;;  %3890 = vmatprep.subr.msk.bf16.mxu0 %vm3411_vm4, %v3201_v0  ;;  %v3186_v54 = vmul.f32 %v3154_v39, %v3058_v48 }
 0x543   : > { %v3189_v29 = vmul.f32 %v3157_v33, %v3061_v30 }
 0x544   : > { %v3187_v50 = vmul.f32 %v3155_v45, %v3059_v51 }
 0x545   : > { %v3205_v2 = vpack.c.bf16 %v3189_v29, %v3188_v28 }
 0x546   : > { %v3204_v17 = vpack.c.bf16 %v3187_v50, %v3186_v54 }
 0x549   : > { %3793 = vmatpush3.bf16.xpose.msra.mxu0 %v3425_v3 }
 0x54a   : > { %3891 = vmatprep.subr.msk.bf16.mxu0 %vm3411_vm4, %v3202_v5  ;;  %v3406_v44 = vpop.f32.mrb[32].mxu1 }
 0x54b   : > { %v3408_v41 = vpop.f32.mrb[33].mxu1 }
 0x551   : > { %3795 = vmatpush3.bf16.xpose.msra.mxu0 %v3428_v27 }
 0x552   : > { %3892 = vmatprep.subr.msk.bf16.mxu0 %vm3411_vm4, %v3203_v56 }
 0x559   : > { %3797 = vmatpush3.bf16.xpose.msra.mxu0 %v3431_v9 }
 0x55a   : > { %3893 = vmatprep.subr.msk.bf16.mxu0 %vm3411_vm4, %v3204_v17 }
 0x561   : > { %3799 = vmatpush3.bf16.xpose.msra.mxu0 %v3434_v35 }
 0x562   : > { %3894 = vmatprep.subr.msk.bf16.mxu0 %vm3411_vm4, %v3205_v2 }
 0x569   : > { %3801 = vmatpush3.bf16.xpose.msra.mxu0 %v3437_v14 }
 0x570   : > { %3803 = vmatmul.mubr.msk.bf16.vlgmr.msra.gmra.mrb[0].mxu0 %vm3411_vm4, %v6704_v13 }
 0x643   : > { %v3497_v23 = vpop.f32.mrb[0].mxu0 }
 0x644   : > { %v3498_v57 = vadd.f32 %v3497_v23, %v3406_v44  ;;  %v3499_v63 = vpop.f32.mrb[1].mxu0 }
 0x645   : > { %v3500_v8 = vadd.f32 %v3499_v63, %v3408_v41  ;;  %v3501_v40 = vpop.f32.mrb[2].mxu0 }
 0x646   : > { %v3509_v47 = vadd.f32 %v3507_v38, %v3498_v57  ;;  %v3502_v1 = vpop.f32.mrb[3].mxu0 }
 0x647   : > { %v3510_v34 = vadd.f32 %v3507_v38, %v3500_v8 }
 0x648   : > { %3511 = vst [vmem:[%s4457_s21] sm:$0xff] %v3509_v47 }
 0x649   : > { %3512 = vst [vmem:[%s4457_s21 + $0x8] sm:$0xff] %v3510_v34 }
 0x64a   : > { %4071 = shalt.err (!%p4068_p7)
}
 0x64b   : > { %s4072_s21 = scalar_lea.hbm %s6895_s28, 256  ;;  %s4076_s17 = scalar_lea.hbm %s6956_s10, 512 }
 0x64c   : > { %p4073_p9 = scmp.ne.s32.totalorder %s6895_s28, %s4072_s21  ;;  %p4077_p12 = scmp.lt.u32.totalorder %s6895_s28, %s6956_s10 }
 0x64d   : > { %p4078_p13 = scmp.lt.u32.totalorder %s4076_s17, %s4072_s21  ;;  %p4080_p1 = scmp.lt.u32.totalorder %s4072_s21, %s6895_s28 }
 0x64e   : > { %p4074_p10 = pnand %p4073_p9, %p4269_p4 }
 0x64f   : > { %p4079_p0 = por %p4078_p13, %p4077_p12 }
 0x650   : > { %p4075_p11 = pneg %p4074_p10 }
 0x651   : > { %p4081_p2 = por %p4080_p1, %p4079_p0 }
 0x653   : > { %p4082_p3 = pnand %p4081_p2, %p4075_p11 }
 0x655   : > { %4085 = shalt.err (!%p4082_p3)
}
 0x656   : > { %3901 = dma.vmem_to_hbm [thread:$0]  (%p4269_p4), %s6897_s30, 256, %s6895_s28, %s3514_s16  }
 0x657 PF: > { %p3907_p5 = scmp.ge.s32.totalorder %s4152_s18, 2  ;;  %s3542_s24 = sand.u32 1, %s4132_s13  }
 0x658   : > { %s3543_s0 = scalar_lea.sflag [#allocation6], %s3542_s24 }
 0x659   : > { %p3904_p6 = pnand %p3907_p5, %p4276_p8 }
 0x65b   : > { %4127 = dma.done.wait (!%p3904_p6), %s3543_s0, 256  }
 0x65c   : > { %4129 = vsyncadd (!%p3904_p6), %s3543_s0, 4294967040  ;;  %s23_s18 = sadd.s32 1, %s4152_s18   ;;  %s7245_s16 = sld [smem:[#allocation8_spill]] }
 0x65d   : > { %p20_p7 = scmp.ge.s32.totalorder %s23_s18, 4   ;;  %s7246_s17 = sld [smem:[#allocation9_spill]] }
 0x65e   : > { %s7247_s13 = smov %s4136_s14  ;;  %s7248_s14 = smov %s4140_s15 }
 0x65f   : > { %s7249_s15 = smov %s4282_s26  ;;  %22 = sbr.rel (!%p20_p7) target bundleno = 7 (0x7), region = 142 }
 0x666   :  { %3548 = vsyncpa [#allocation6], 1 }
 0x667   :  { %3550 = vsyncpa [#allocation6 + $0x1], 1 }

</bundles_post_ra>
